<compile_context>
chip_gen: v7x
topology: tpu7x:2x2x1
jax: 0.10.0
libtpu: 0.0.40
codegen_flags: <defaults>
</compile_context>

<pallas_src>
import jax
import jax.numpy as jnp
from jax.experimental import pallas as pl
from jax.experimental.pallas import tpu as pltpu


# ----------------------------------------------------------------------------
# Fused Seq2Seq forward kernel (single invocation, no grid).
# ----------------------------------------------------------------------------
def _seq2seq_kernel(tf_ref,                     # SMEM (T,) int32 teacher-forcing flags
                    tgt_ref,                    # VMEM (T, B) int32 target ids
                    srcp_ref,                   # VMEM (S, B, 4H) f32 pre-projected src
                    enc_wh_ref, enc_b_ref,      # (H, 4H) bf16, (1, 4H) f32
                    dec_exw_ref,                # (V, 4H) bf16  (emb @ W_ih folded)
                    dec_wh_ref, dec_b_ref,      # (H, 4H) bf16, (1, 4H) f32
                    fc_w_ref, fc_b_ref,         # (H, V) bf16,  (1, V) f32
                    out_ref):                   # VMEM (T, B, V) f32
    S = srcp_ref.shape[0]
    T, B = tgt_ref.shape
    H = enc_wh_ref.shape[0]
    V = fc_w_ref.shape[1]

    # Hoisted bias broadcasts / iota (not CSE'd if left inside the loops).
    enc_b = jnp.broadcast_to(enc_b_ref[...], (B, 4 * H))
    dec_b = jnp.broadcast_to(dec_b_ref[...], (B, 4 * H))
    fc_b = jnp.broadcast_to(fc_b_ref[...], (B, V))
    lane = jax.lax.broadcasted_iota(jnp.int32, (B, V), 1)

    def cell(pre_x, h, c, wh_ref, b):
        """pre_x: (B,4H) f32 (x already projected), h/c: (B,H) f32."""
        gates = (pre_x
                 + jnp.dot(h.astype(jnp.bfloat16), wh_ref[...],
                           preferred_element_type=jnp.float32)
                 + b)                                                  # (B, 4H) f32
        sig = jax.nn.sigmoid(gates[:, :3 * H])                         # [i, f, o]
        i_g = sig[:, :H]
        f_g = sig[:, H:2 * H]
        o_g = sig[:, 2 * H:3 * H]
        g_g = jnp.tanh(gates[:, 3 * H:])                               # [g]
        c_new = f_g * c + i_g * g_g
        h_new = o_g * jnp.tanh(c_new)
        return h_new, c_new

    # ---------------- Encoder recurrence ----------------
    h0 = jnp.zeros((B, H), jnp.float32)
    c0 = jnp.zeros((B, H), jnp.float32)

    def enc_step(t, hc):
        h, c = hc
        return cell(srcp_ref[t], h, c, enc_wh_ref, enc_b)

    h, c = jax.lax.fori_loop(0, S, enc_step, (h0, c0), unroll=True)

    # outputs[0] stays zero, like the PyTorch reference.
    out_ref[0] = jnp.zeros((B, V), jnp.float32)

    # ---------------- Decoder loop (teacher forcing / greedy feedback) -------
    ids0 = tgt_ref[0]                                                  # (B,) int32

    def dec_step(t, carry):
        h, c, ids = carry
        i = t + 1                                                      # output / target index

        # Folded embedding + input projection via one-hot MXU matmul.
        onehot = (lane == ids[:, None]).astype(jnp.bfloat16)           # (B, V)
        pre_x = jnp.dot(onehot, dec_exw_ref[...],
                        preferred_element_type=jnp.float32)            # (B, 4H) f32

        h_new, c_new = cell(pre_x, h, c, dec_wh_ref, dec_b)

        logits = (jnp.dot(h_new.astype(jnp.bfloat16), fc_w_ref[...],
                          preferred_element_type=jnp.float32)
                  + fc_b)                                              # (B, V) f32
        out_ref[i] = logits

        # Greedy argmax, then teacher-forcing select for the next step.
        m = jnp.max(logits, axis=1, keepdims=True)
        best = jnp.min(jnp.where(logits == m, lane, V), axis=1)        # (B,) int32
        nxt = jnp.where(tf_ref[i] > 0, tgt_ref[i], best)
        return h_new, c_new, nxt

    jax.lax.fori_loop(0, T - 1, dec_step, (h, c, ids0), unroll=True)


def seq2seq_pallas(tf_draws, target, src_proj, fused):
    """One kernel launch for the whole forward; returns (T, B, V) f32 logits."""
    T, B = target.shape
    V = fused["fc_w"].shape[1]
    smem = pl.BlockSpec(memory_space=pltpu.MemorySpace.SMEM)
    vmem = pl.BlockSpec(memory_space=pltpu.MemorySpace.VMEM)
    return pl.pallas_call(
        _seq2seq_kernel,
        out_shape=jax.ShapeDtypeStruct((T, B, V), jnp.float32),
        in_specs=[smem, vmem, vmem, vmem, vmem, vmem, vmem, vmem, vmem, vmem],
        out_specs=vmem,
    )(tf_draws, target, src_proj,
      fused["enc_wh"], fused["enc_b"],
      fused["dec_exw"], fused["dec_wh"], fused["dec_b"],
      fused["fc_w"], fused["fc_b"])


# ----------------------------------------------------------------------------
# Seq2Seq forward (mirrors the PyTorch module's forward).
# ----------------------------------------------------------------------------
@jax.jit
def seq2seq_forward(fused, source, target, tfr, tf_key):
    """source: (S, B) int32, target: (T, B) int32 -> outputs (T, B, V) f32."""
    T, _ = target.shape

    # Encoder embedding + input projection folded: gather rows of (emb @ W_ih).
    src_proj = fused["enc_xproj"][source]                              # (S, B, 4H) f32

    # One teacher-forcing coin flip per timestep (whole batch), like PyTorch.
    # (index 0 is drawn but unused, matching the reference loop starting at i=1)
    tf_draws = (jax.random.uniform(tf_key, (T,)) < tfr).astype(jnp.int32)

    return seq2seq_pallas(tf_draws, target, src_proj, fused)


# ----------------------------------------------------------------------------
# Parameter init (PyTorch-style gate order [i,f,g,o], transposed to (in, 4H))
# and fusion into kernel-ready layout (gate order [i,f,o,g], folded embeddings,
# bf16 MXU weights).  Single LSTM bias b corresponds to PyTorch's b_ih + b_hh.
# ----------------------------------------------------------------------------
def init_params(key, src_vocab, tgt_vocab, emb_dim, hidden):
    ks = jax.random.split(key, 10)
    s = 0.1
    return {
        "enc_emb":  s * jax.random.normal(ks[0], (src_vocab, emb_dim), jnp.float32),
        "enc_w_ih": s * jax.random.normal(ks[1], (emb_dim, 4 * hidden), jnp.float32),
        "enc_w_hh": s * jax.random.normal(ks[2], (hidden, 4 * hidden), jnp.float32),
        "enc_b":    s * jax.random.normal(ks[3], (1, 4 * hidden), jnp.float32),
        "dec_emb":  s * jax.random.normal(ks[4], (tgt_vocab, emb_dim), jnp.float32),
        "dec_w_ih": s * jax.random.normal(ks[5], (emb_dim, 4 * hidden), jnp.float32),
        "dec_w_hh": s * jax.random.normal(ks[6], (hidden, 4 * hidden), jnp.float32),
        "dec_b":    s * jax.random.normal(ks[7], (1, 4 * hidden), jnp.float32),
        "dec_fc_w": s * jax.random.normal(ks[8], (hidden, tgt_vocab), jnp.float32),
        "dec_fc_b": s * jax.random.normal(ks[9], (1, tgt_vocab), jnp.float32),
    }


def _reorder(m):
    """PyTorch gate columns [i,f,g,o] -> kernel order [i,f,o,g]."""
    i, f, g, o = jnp.split(m, 4, axis=-1)
    return jnp.concatenate([i, f, o, g], axis=-1)


def fuse_params(p):
    enc_w_ih = _reorder(p["enc_w_ih"])
    enc_w_hh = _reorder(p["enc_w_hh"])
    dec_w_ih = _reorder(p["dec_w_ih"])
    dec_w_hh = _reorder(p["dec_w_hh"])
    return {
        # Encoder: embedding folded into the x-projection, gathered in XLA.
        "enc_xproj": p["enc_emb"] @ enc_w_ih,                        # (SRC_VOCAB, 4H) f32
        "enc_wh":    enc_w_hh.astype(jnp.bfloat16),                  # (H, 4H)
        "enc_b":     _reorder(p["enc_b"]).astype(jnp.float32),       # (1, 4H)
        # Decoder: embedding folded into the x-projection (in-kernel MXU operand).
        "dec_exw":   (p["dec_emb"] @ dec_w_ih).astype(jnp.bfloat16), # (V, 4H)
        "dec_wh":    dec_w_hh.astype(jnp.bfloat16),                  # (H, 4H)
        "dec_b":     _reorder(p["dec_b"]).astype(jnp.float32),       # (1, 4H)
        "fc_w":      p["dec_fc_w"].astype(jnp.bfloat16),             # (H, V)
        "fc_b":      p["dec_fc_b"],                                  # (1, V)
    }


if __name__ == "__main__":
    SRC_VOCAB, TGT_VOCAB = 20, 128
    EMB, HIDDEN = 128, 128          # lane-dense feature dims
    SRC_LEN, TGT_LEN, BATCH = 10, 8, 8

    root = jax.random.PRNGKey(0)
    k_par, k_src, k_tgt, k_tf = jax.random.split(root, 4)

    params = init_params(k_par, SRC_VOCAB, TGT_VOCAB, EMB, HIDDEN)
    fused = fuse_params(params)
    source = jax.random.randint(k_src, (SRC_LEN, BATCH), 0, SRC_VOCAB, jnp.int32)
    target = jax.random.randint(k_tgt, (TGT_LEN, BATCH), 0, TGT_VOCAB, jnp.int32)

    outputs = seq2seq_forward(fused, source, target, 0.5, k_tf)
    jax.block_until_ready(outputs)

    assert outputs.shape == (TGT_LEN, BATCH, TGT_VOCAB)
    assert bool(jnp.all(outputs[0] == 0.0))
    assert bool(jnp.all(jnp.isfinite(outputs)))
    print("KERNEL_OK")
</pallas_src>

<mosaic_0001>
module attributes {stable_mosaic.version = 11 : i64} {
  func.func @_seq2seq_kernel(%arg0: memref<8xi32, #tpu.memory_space<smem>>, %arg1: memref<8x8xi32, #tpu.memory_space<vmem>>, %arg2: memref<10x8x512xf32, #tpu.memory_space<vmem>>, %arg3: memref<128x512xbf16, #tpu.memory_space<vmem>>, %arg4: memref<1x512xf32, #tpu.memory_space<vmem>>, %arg5: memref<128x512xbf16, #tpu.memory_space<vmem>>, %arg6: memref<128x512xbf16, #tpu.memory_space<vmem>>, %arg7: memref<1x512xf32, #tpu.memory_space<vmem>>, %arg8: memref<128x128xbf16, #tpu.memory_space<vmem>>, %arg9: memref<1x128xf32, #tpu.memory_space<vmem>>, %arg10: memref<8x8x128xf32, #tpu.memory_space<vmem>>) attributes {dimension_semantics = [], scalar_prefetch = 0 : i64, scratch_operands = 0 : i64, tpu.core_type = #tpu.core_type<tc>} {
    %c0 = arith.constant 0 : index
    %c0_0 = arith.constant 0 : index
    %0 = vector.load %arg4[%c0, %c0_0] : memref<1x512xf32, #tpu.memory_space<vmem>>, vector<1x512xf32>
    %1 = vector.shape_cast %0 : vector<1x512xf32> to vector<1x512xf32>
    %2 = vector.broadcast %1 : vector<1x512xf32> to vector<8x512xf32>
    %c0_1 = arith.constant 0 : index
    %c0_2 = arith.constant 0 : index
    %3 = vector.load %arg7[%c0_1, %c0_2] : memref<1x512xf32, #tpu.memory_space<vmem>>, vector<1x512xf32>
    %4 = vector.shape_cast %3 : vector<1x512xf32> to vector<1x512xf32>
    %5 = vector.broadcast %4 : vector<1x512xf32> to vector<8x512xf32>
    %c0_3 = arith.constant 0 : index
    %c0_4 = arith.constant 0 : index
    %6 = vector.load %arg9[%c0_3, %c0_4] : memref<1x128xf32, #tpu.memory_space<vmem>>, vector<1x128xf32>
    %7 = vector.shape_cast %6 : vector<1x128xf32> to vector<1x128xf32>
    %8 = vector.broadcast %7 : vector<1x128xf32> to vector<8x128xf32>
    %9 = tpu.iota {dimensions = array<i32: 1>} : vector<8x128xi32>
    %cst = arith.constant 0.000000e+00 : f32
    %10 = vector.broadcast %cst : f32 to vector<8x128xf32>
    %cst_5 = arith.constant 0.000000e+00 : f32
    %11 = vector.broadcast %cst_5 : f32 to vector<8x128xf32>
    %c0_i32 = arith.constant 0 : i32
    %12 = arith.index_cast %c0_i32 : i32 to index
    %c0_6 = arith.constant 0 : index
    %c0_7 = arith.constant 0 : index
    %13 = vector.load %arg2[%12, %c0_6, %c0_7] : memref<10x8x512xf32, #tpu.memory_space<vmem>>, vector<1x8x512xf32>
    %14 = vector.shape_cast %13 : vector<1x8x512xf32> to vector<8x512xf32>
    %15 = arith.truncf %10 : vector<8x128xf32> to vector<8x128xbf16>
    %c0_8 = arith.constant 0 : index
    %c0_9 = arith.constant 0 : index
    %16 = vector.load %arg3[%c0_8, %c0_9] : memref<128x512xbf16, #tpu.memory_space<vmem>>, vector<128x512xbf16>
    %cst_10 = arith.constant dense<0.000000e+00> : vector<8x512xf32>
    %17 = tpu.matmul %15, %16, %cst_10 {dimension_numbers = #tpu.dot_dimension_numbers<[1], [0], [0], [1], [0, 0, 1, 1], [], []>} : vector<8x128xbf16>, vector<128x512xbf16>, vector<8x512xf32> -> vector<8x512xf32>
    %18 = arith.addf %14, %17 : vector<8x512xf32>
    %19 = arith.addf %18, %2 : vector<8x512xf32>
    %20 = vector.extract_strided_slice %19 {offsets = [0, 0], sizes = [8, 384], strides = [1, 1]} : vector<8x512xf32> to vector<8x384xf32>
    %21 = arith.negf %20 : vector<8x384xf32>
    %22 = math.exp %21 : vector<8x384xf32>
    %cst_11 = arith.constant 1.000000e+00 : f32
    %23 = vector.broadcast %cst_11 : f32 to vector<8x384xf32>
    %24 = arith.addf %23, %22 : vector<8x384xf32>
    %25 = arith.divf %23, %24 : vector<8x384xf32>
    %26 = vector.extract_strided_slice %25 {offsets = [0, 0], sizes = [8, 128], strides = [1, 1]} : vector<8x384xf32> to vector<8x128xf32>
    %27 = vector.extract_strided_slice %25 {offsets = [0, 128], sizes = [8, 128], strides = [1, 1]} : vector<8x384xf32> to vector<8x128xf32>
    %28 = vector.extract_strided_slice %25 {offsets = [0, 256], sizes = [8, 128], strides = [1, 1]} : vector<8x384xf32> to vector<8x128xf32>
    %29 = vector.extract_strided_slice %19 {offsets = [0, 384], sizes = [8, 128], strides = [1, 1]} : vector<8x512xf32> to vector<8x128xf32>
    %30 = math.tanh %29 : vector<8x128xf32>
    %31 = arith.mulf %27, %11 : vector<8x128xf32>
    %32 = arith.mulf %26, %30 : vector<8x128xf32>
    %33 = arith.addf %31, %32 : vector<8x128xf32>
    %34 = math.tanh %33 : vector<8x128xf32>
    %35 = arith.mulf %28, %34 : vector<8x128xf32>
    %c1_i32 = arith.constant 1 : i32
    %36 = arith.index_cast %c1_i32 : i32 to index
    %c0_12 = arith.constant 0 : index
    %c0_13 = arith.constant 0 : index
    %37 = vector.load %arg2[%36, %c0_12, %c0_13] : memref<10x8x512xf32, #tpu.memory_space<vmem>>, vector<1x8x512xf32>
    %38 = vector.shape_cast %37 : vector<1x8x512xf32> to vector<8x512xf32>
    %39 = arith.truncf %35 : vector<8x128xf32> to vector<8x128xbf16>
    %c0_14 = arith.constant 0 : index
    %c0_15 = arith.constant 0 : index
    %40 = vector.load %arg3[%c0_14, %c0_15] : memref<128x512xbf16, #tpu.memory_space<vmem>>, vector<128x512xbf16>
    %cst_16 = arith.constant dense<0.000000e+00> : vector<8x512xf32>
    %41 = tpu.matmul %39, %40, %cst_16 {dimension_numbers = #tpu.dot_dimension_numbers<[1], [0], [0], [1], [0, 0, 1, 1], [], []>} : vector<8x128xbf16>, vector<128x512xbf16>, vector<8x512xf32> -> vector<8x512xf32>
    %42 = arith.addf %38, %41 : vector<8x512xf32>
    %43 = arith.addf %42, %2 : vector<8x512xf32>
    %44 = vector.extract_strided_slice %43 {offsets = [0, 0], sizes = [8, 384], strides = [1, 1]} : vector<8x512xf32> to vector<8x384xf32>
    %45 = arith.negf %44 : vector<8x384xf32>
    %46 = math.exp %45 : vector<8x384xf32>
    %cst_17 = arith.constant 1.000000e+00 : f32
    %47 = vector.broadcast %cst_17 : f32 to vector<8x384xf32>
    %48 = arith.addf %47, %46 : vector<8x384xf32>
    %49 = arith.divf %47, %48 : vector<8x384xf32>
    %50 = vector.extract_strided_slice %49 {offsets = [0, 0], sizes = [8, 128], strides = [1, 1]} : vector<8x384xf32> to vector<8x128xf32>
    %51 = vector.extract_strided_slice %49 {offsets = [0, 128], sizes = [8, 128], strides = [1, 1]} : vector<8x384xf32> to vector<8x128xf32>
    %52 = vector.extract_strided_slice %49 {offsets = [0, 256], sizes = [8, 128], strides = [1, 1]} : vector<8x384xf32> to vector<8x128xf32>
    %53 = vector.extract_strided_slice %43 {offsets = [0, 384], sizes = [8, 128], strides = [1, 1]} : vector<8x512xf32> to vector<8x128xf32>
    %54 = math.tanh %53 : vector<8x128xf32>
    %55 = arith.mulf %51, %33 : vector<8x128xf32>
    %56 = arith.mulf %50, %54 : vector<8x128xf32>
    %57 = arith.addf %55, %56 : vector<8x128xf32>
    %58 = math.tanh %57 : vector<8x128xf32>
    %59 = arith.mulf %52, %58 : vector<8x128xf32>
    %c2_i32 = arith.constant 2 : i32
    %60 = arith.index_cast %c2_i32 : i32 to index
    %c0_18 = arith.constant 0 : index
    %c0_19 = arith.constant 0 : index
    %61 = vector.load %arg2[%60, %c0_18, %c0_19] : memref<10x8x512xf32, #tpu.memory_space<vmem>>, vector<1x8x512xf32>
    %62 = vector.shape_cast %61 : vector<1x8x512xf32> to vector<8x512xf32>
    %63 = arith.truncf %59 : vector<8x128xf32> to vector<8x128xbf16>
    %c0_20 = arith.constant 0 : index
    %c0_21 = arith.constant 0 : index
    %64 = vector.load %arg3[%c0_20, %c0_21] : memref<128x512xbf16, #tpu.memory_space<vmem>>, vector<128x512xbf16>
    %cst_22 = arith.constant dense<0.000000e+00> : vector<8x512xf32>
    %65 = tpu.matmul %63, %64, %cst_22 {dimension_numbers = #tpu.dot_dimension_numbers<[1], [0], [0], [1], [0, 0, 1, 1], [], []>} : vector<8x128xbf16>, vector<128x512xbf16>, vector<8x512xf32> -> vector<8x512xf32>
    %66 = arith.addf %62, %65 : vector<8x512xf32>
    %67 = arith.addf %66, %2 : vector<8x512xf32>
    %68 = vector.extract_strided_slice %67 {offsets = [0, 0], sizes = [8, 384], strides = [1, 1]} : vector<8x512xf32> to vector<8x384xf32>
    %69 = arith.negf %68 : vector<8x384xf32>
    %70 = math.exp %69 : vector<8x384xf32>
    %cst_23 = arith.constant 1.000000e+00 : f32
    %71 = vector.broadcast %cst_23 : f32 to vector<8x384xf32>
    %72 = arith.addf %71, %70 : vector<8x384xf32>
    %73 = arith.divf %71, %72 : vector<8x384xf32>
    %74 = vector.extract_strided_slice %73 {offsets = [0, 0], sizes = [8, 128], strides = [1, 1]} : vector<8x384xf32> to vector<8x128xf32>
    %75 = vector.extract_strided_slice %73 {offsets = [0, 128], sizes = [8, 128], strides = [1, 1]} : vector<8x384xf32> to vector<8x128xf32>
    %76 = vector.extract_strided_slice %73 {offsets = [0, 256], sizes = [8, 128], strides = [1, 1]} : vector<8x384xf32> to vector<8x128xf32>
    %77 = vector.extract_strided_slice %67 {offsets = [0, 384], sizes = [8, 128], strides = [1, 1]} : vector<8x512xf32> to vector<8x128xf32>
    %78 = math.tanh %77 : vector<8x128xf32>
    %79 = arith.mulf %75, %57 : vector<8x128xf32>
    %80 = arith.mulf %74, %78 : vector<8x128xf32>
    %81 = arith.addf %79, %80 : vector<8x128xf32>
    %82 = math.tanh %81 : vector<8x128xf32>
    %83 = arith.mulf %76, %82 : vector<8x128xf32>
    %c3_i32 = arith.constant 3 : i32
    %84 = arith.index_cast %c3_i32 : i32 to index
    %c0_24 = arith.constant 0 : index
    %c0_25 = arith.constant 0 : index
    %85 = vector.load %arg2[%84, %c0_24, %c0_25] : memref<10x8x512xf32, #tpu.memory_space<vmem>>, vector<1x8x512xf32>
    %86 = vector.shape_cast %85 : vector<1x8x512xf32> to vector<8x512xf32>
    %87 = arith.truncf %83 : vector<8x128xf32> to vector<8x128xbf16>
    %c0_26 = arith.constant 0 : index
    %c0_27 = arith.constant 0 : index
    %88 = vector.load %arg3[%c0_26, %c0_27] : memref<128x512xbf16, #tpu.memory_space<vmem>>, vector<128x512xbf16>
    %cst_28 = arith.constant dense<0.000000e+00> : vector<8x512xf32>
    %89 = tpu.matmul %87, %88, %cst_28 {dimension_numbers = #tpu.dot_dimension_numbers<[1], [0], [0], [1], [0, 0, 1, 1], [], []>} : vector<8x128xbf16>, vector<128x512xbf16>, vector<8x512xf32> -> vector<8x512xf32>
    %90 = arith.addf %86, %89 : vector<8x512xf32>
    %91 = arith.addf %90, %2 : vector<8x512xf32>
    %92 = vector.extract_strided_slice %91 {offsets = [0, 0], sizes = [8, 384], strides = [1, 1]} : vector<8x512xf32> to vector<8x384xf32>
    %93 = arith.negf %92 : vector<8x384xf32>
    %94 = math.exp %93 : vector<8x384xf32>
    %cst_29 = arith.constant 1.000000e+00 : f32
    %95 = vector.broadcast %cst_29 : f32 to vector<8x384xf32>
    %96 = arith.addf %95, %94 : vector<8x384xf32>
    %97 = arith.divf %95, %96 : vector<8x384xf32>
    %98 = vector.extract_strided_slice %97 {offsets = [0, 0], sizes = [8, 128], strides = [1, 1]} : vector<8x384xf32> to vector<8x128xf32>
    %99 = vector.extract_strided_slice %97 {offsets = [0, 128], sizes = [8, 128], strides = [1, 1]} : vector<8x384xf32> to vector<8x128xf32>
    %100 = vector.extract_strided_slice %97 {offsets = [0, 256], sizes = [8, 128], strides = [1, 1]} : vector<8x384xf32> to vector<8x128xf32>
    %101 = vector.extract_strided_slice %91 {offsets = [0, 384], sizes = [8, 128], strides = [1, 1]} : vector<8x512xf32> to vector<8x128xf32>
    %102 = math.tanh %101 : vector<8x128xf32>
    %103 = arith.mulf %99, %81 : vector<8x128xf32>
    %104 = arith.mulf %98, %102 : vector<8x128xf32>
    %105 = arith.addf %103, %104 : vector<8x128xf32>
    %106 = math.tanh %105 : vector<8x128xf32>
    %107 = arith.mulf %100, %106 : vector<8x128xf32>
    %c4_i32 = arith.constant 4 : i32
    %108 = arith.index_cast %c4_i32 : i32 to index
    %c0_30 = arith.constant 0 : index
    %c0_31 = arith.constant 0 : index
    %109 = vector.load %arg2[%108, %c0_30, %c0_31] : memref<10x8x512xf32, #tpu.memory_space<vmem>>, vector<1x8x512xf32>
    %110 = vector.shape_cast %109 : vector<1x8x512xf32> to vector<8x512xf32>
    %111 = arith.truncf %107 : vector<8x128xf32> to vector<8x128xbf16>
    %c0_32 = arith.constant 0 : index
    %c0_33 = arith.constant 0 : index
    %112 = vector.load %arg3[%c0_32, %c0_33] : memref<128x512xbf16, #tpu.memory_space<vmem>>, vector<128x512xbf16>
    %cst_34 = arith.constant dense<0.000000e+00> : vector<8x512xf32>
    %113 = tpu.matmul %111, %112, %cst_34 {dimension_numbers = #tpu.dot_dimension_numbers<[1], [0], [0], [1], [0, 0, 1, 1], [], []>} : vector<8x128xbf16>, vector<128x512xbf16>, vector<8x512xf32> -> vector<8x512xf32>
    %114 = arith.addf %110, %113 : vector<8x512xf32>
    %115 = arith.addf %114, %2 : vector<8x512xf32>
    %116 = vector.extract_strided_slice %115 {offsets = [0, 0], sizes = [8, 384], strides = [1, 1]} : vector<8x512xf32> to vector<8x384xf32>
    %117 = arith.negf %116 : vector<8x384xf32>
    %118 = math.exp %117 : vector<8x384xf32>
    %cst_35 = arith.constant 1.000000e+00 : f32
    %119 = vector.broadcast %cst_35 : f32 to vector<8x384xf32>
    %120 = arith.addf %119, %118 : vector<8x384xf32>
    %121 = arith.divf %119, %120 : vector<8x384xf32>
    %122 = vector.extract_strided_slice %121 {offsets = [0, 0], sizes = [8, 128], strides = [1, 1]} : vector<8x384xf32> to vector<8x128xf32>
    %123 = vector.extract_strided_slice %121 {offsets = [0, 128], sizes = [8, 128], strides = [1, 1]} : vector<8x384xf32> to vector<8x128xf32>
    %124 = vector.extract_strided_slice %121 {offsets = [0, 256], sizes = [8, 128], strides = [1, 1]} : vector<8x384xf32> to vector<8x128xf32>
    %125 = vector.extract_strided_slice %115 {offsets = [0, 384], sizes = [8, 128], strides = [1, 1]} : vector<8x512xf32> to vector<8x128xf32>
    %126 = math.tanh %125 : vector<8x128xf32>
    %127 = arith.mulf %123, %105 : vector<8x128xf32>
    %128 = arith.mulf %122, %126 : vector<8x128xf32>
    %129 = arith.addf %127, %128 : vector<8x128xf32>
    %130 = math.tanh %129 : vector<8x128xf32>
    %131 = arith.mulf %124, %130 : vector<8x128xf32>
    %c5_i32 = arith.constant 5 : i32
    %132 = arith.index_cast %c5_i32 : i32 to index
    %c0_36 = arith.constant 0 : index
    %c0_37 = arith.constant 0 : index
    %133 = vector.load %arg2[%132, %c0_36, %c0_37] : memref<10x8x512xf32, #tpu.memory_space<vmem>>, vector<1x8x512xf32>
    %134 = vector.shape_cast %133 : vector<1x8x512xf32> to vector<8x512xf32>
    %135 = arith.truncf %131 : vector<8x128xf32> to vector<8x128xbf16>
    %c0_38 = arith.constant 0 : index
    %c0_39 = arith.constant 0 : index
    %136 = vector.load %arg3[%c0_38, %c0_39] : memref<128x512xbf16, #tpu.memory_space<vmem>>, vector<128x512xbf16>
    %cst_40 = arith.constant dense<0.000000e+00> : vector<8x512xf32>
    %137 = tpu.matmul %135, %136, %cst_40 {dimension_numbers = #tpu.dot_dimension_numbers<[1], [0], [0], [1], [0, 0, 1, 1], [], []>} : vector<8x128xbf16>, vector<128x512xbf16>, vector<8x512xf32> -> vector<8x512xf32>
    %138 = arith.addf %134, %137 : vector<8x512xf32>
    %139 = arith.addf %138, %2 : vector<8x512xf32>
    %140 = vector.extract_strided_slice %139 {offsets = [0, 0], sizes = [8, 384], strides = [1, 1]} : vector<8x512xf32> to vector<8x384xf32>
    %141 = arith.negf %140 : vector<8x384xf32>
    %142 = math.exp %141 : vector<8x384xf32>
    %cst_41 = arith.constant 1.000000e+00 : f32
    %143 = vector.broadcast %cst_41 : f32 to vector<8x384xf32>
    %144 = arith.addf %143, %142 : vector<8x384xf32>
    %145 = arith.divf %143, %144 : vector<8x384xf32>
    %146 = vector.extract_strided_slice %145 {offsets = [0, 0], sizes = [8, 128], strides = [1, 1]} : vector<8x384xf32> to vector<8x128xf32>
    %147 = vector.extract_strided_slice %145 {offsets = [0, 128], sizes = [8, 128], strides = [1, 1]} : vector<8x384xf32> to vector<8x128xf32>
    %148 = vector.extract_strided_slice %145 {offsets = [0, 256], sizes = [8, 128], strides = [1, 1]} : vector<8x384xf32> to vector<8x128xf32>
    %149 = vector.extract_strided_slice %139 {offsets = [0, 384], sizes = [8, 128], strides = [1, 1]} : vector<8x512xf32> to vector<8x128xf32>
    %150 = math.tanh %149 : vector<8x128xf32>
    %151 = arith.mulf %147, %129 : vector<8x128xf32>
    %152 = arith.mulf %146, %150 : vector<8x128xf32>
    %153 = arith.addf %151, %152 : vector<8x128xf32>
    %154 = math.tanh %153 : vector<8x128xf32>
    %155 = arith.mulf %148, %154 : vector<8x128xf32>
    %c6_i32 = arith.constant 6 : i32
    %156 = arith.index_cast %c6_i32 : i32 to index
    %c0_42 = arith.constant 0 : index
    %c0_43 = arith.constant 0 : index
    %157 = vector.load %arg2[%156, %c0_42, %c0_43] : memref<10x8x512xf32, #tpu.memory_space<vmem>>, vector<1x8x512xf32>
    %158 = vector.shape_cast %157 : vector<1x8x512xf32> to vector<8x512xf32>
    %159 = arith.truncf %155 : vector<8x128xf32> to vector<8x128xbf16>
    %c0_44 = arith.constant 0 : index
    %c0_45 = arith.constant 0 : index
    %160 = vector.load %arg3[%c0_44, %c0_45] : memref<128x512xbf16, #tpu.memory_space<vmem>>, vector<128x512xbf16>
    %cst_46 = arith.constant dense<0.000000e+00> : vector<8x512xf32>
    %161 = tpu.matmul %159, %160, %cst_46 {dimension_numbers = #tpu.dot_dimension_numbers<[1], [0], [0], [1], [0, 0, 1, 1], [], []>} : vector<8x128xbf16>, vector<128x512xbf16>, vector<8x512xf32> -> vector<8x512xf32>
    %162 = arith.addf %158, %161 : vector<8x512xf32>
    %163 = arith.addf %162, %2 : vector<8x512xf32>
    %164 = vector.extract_strided_slice %163 {offsets = [0, 0], sizes = [8, 384], strides = [1, 1]} : vector<8x512xf32> to vector<8x384xf32>
    %165 = arith.negf %164 : vector<8x384xf32>
    %166 = math.exp %165 : vector<8x384xf32>
    %cst_47 = arith.constant 1.000000e+00 : f32
    %167 = vector.broadcast %cst_47 : f32 to vector<8x384xf32>
    %168 = arith.addf %167, %166 : vector<8x384xf32>
    %169 = arith.divf %167, %168 : vector<8x384xf32>
    %170 = vector.extract_strided_slice %169 {offsets = [0, 0], sizes = [8, 128], strides = [1, 1]} : vector<8x384xf32> to vector<8x128xf32>
    %171 = vector.extract_strided_slice %169 {offsets = [0, 128], sizes = [8, 128], strides = [1, 1]} : vector<8x384xf32> to vector<8x128xf32>
    %172 = vector.extract_strided_slice %169 {offsets = [0, 256], sizes = [8, 128], strides = [1, 1]} : vector<8x384xf32> to vector<8x128xf32>
    %173 = vector.extract_strided_slice %163 {offsets = [0, 384], sizes = [8, 128], strides = [1, 1]} : vector<8x512xf32> to vector<8x128xf32>
    %174 = math.tanh %173 : vector<8x128xf32>
    %175 = arith.mulf %171, %153 : vector<8x128xf32>
    %176 = arith.mulf %170, %174 : vector<8x128xf32>
    %177 = arith.addf %175, %176 : vector<8x128xf32>
    %178 = math.tanh %177 : vector<8x128xf32>
    %179 = arith.mulf %172, %178 : vector<8x128xf32>
    %c7_i32 = arith.constant 7 : i32
    %180 = arith.index_cast %c7_i32 : i32 to index
    %c0_48 = arith.constant 0 : index
    %c0_49 = arith.constant 0 : index
    %181 = vector.load %arg2[%180, %c0_48, %c0_49] : memref<10x8x512xf32, #tpu.memory_space<vmem>>, vector<1x8x512xf32>
    %182 = vector.shape_cast %181 : vector<1x8x512xf32> to vector<8x512xf32>
    %183 = arith.truncf %179 : vector<8x128xf32> to vector<8x128xbf16>
    %c0_50 = arith.constant 0 : index
    %c0_51 = arith.constant 0 : index
    %184 = vector.load %arg3[%c0_50, %c0_51] : memref<128x512xbf16, #tpu.memory_space<vmem>>, vector<128x512xbf16>
    %cst_52 = arith.constant dense<0.000000e+00> : vector<8x512xf32>
    %185 = tpu.matmul %183, %184, %cst_52 {dimension_numbers = #tpu.dot_dimension_numbers<[1], [0], [0], [1], [0, 0, 1, 1], [], []>} : vector<8x128xbf16>, vector<128x512xbf16>, vector<8x512xf32> -> vector<8x512xf32>
    %186 = arith.addf %182, %185 : vector<8x512xf32>
    %187 = arith.addf %186, %2 : vector<8x512xf32>
    %188 = vector.extract_strided_slice %187 {offsets = [0, 0], sizes = [8, 384], strides = [1, 1]} : vector<8x512xf32> to vector<8x384xf32>
    %189 = arith.negf %188 : vector<8x384xf32>
    %190 = math.exp %189 : vector<8x384xf32>
    %cst_53 = arith.constant 1.000000e+00 : f32
    %191 = vector.broadcast %cst_53 : f32 to vector<8x384xf32>
    %192 = arith.addf %191, %190 : vector<8x384xf32>
    %193 = arith.divf %191, %192 : vector<8x384xf32>
    %194 = vector.extract_strided_slice %193 {offsets = [0, 0], sizes = [8, 128], strides = [1, 1]} : vector<8x384xf32> to vector<8x128xf32>
    %195 = vector.extract_strided_slice %193 {offsets = [0, 128], sizes = [8, 128], strides = [1, 1]} : vector<8x384xf32> to vector<8x128xf32>
    %196 = vector.extract_strided_slice %193 {offsets = [0, 256], sizes = [8, 128], strides = [1, 1]} : vector<8x384xf32> to vector<8x128xf32>
    %197 = vector.extract_strided_slice %187 {offsets = [0, 384], sizes = [8, 128], strides = [1, 1]} : vector<8x512xf32> to vector<8x128xf32>
    %198 = math.tanh %197 : vector<8x128xf32>
    %199 = arith.mulf %195, %177 : vector<8x128xf32>
    %200 = arith.mulf %194, %198 : vector<8x128xf32>
    %201 = arith.addf %199, %200 : vector<8x128xf32>
    %202 = math.tanh %201 : vector<8x128xf32>
    %203 = arith.mulf %196, %202 : vector<8x128xf32>
    %c8_i32 = arith.constant 8 : i32
    %204 = arith.index_cast %c8_i32 : i32 to index
    %c0_54 = arith.constant 0 : index
    %c0_55 = arith.constant 0 : index
    %205 = vector.load %arg2[%204, %c0_54, %c0_55] : memref<10x8x512xf32, #tpu.memory_space<vmem>>, vector<1x8x512xf32>
    %206 = vector.shape_cast %205 : vector<1x8x512xf32> to vector<8x512xf32>
    %207 = arith.truncf %203 : vector<8x128xf32> to vector<8x128xbf16>
    %c0_56 = arith.constant 0 : index
    %c0_57 = arith.constant 0 : index
    %208 = vector.load %arg3[%c0_56, %c0_57] : memref<128x512xbf16, #tpu.memory_space<vmem>>, vector<128x512xbf16>
    %cst_58 = arith.constant dense<0.000000e+00> : vector<8x512xf32>
    %209 = tpu.matmul %207, %208, %cst_58 {dimension_numbers = #tpu.dot_dimension_numbers<[1], [0], [0], [1], [0, 0, 1, 1], [], []>} : vector<8x128xbf16>, vector<128x512xbf16>, vector<8x512xf32> -> vector<8x512xf32>
    %210 = arith.addf %206, %209 : vector<8x512xf32>
    %211 = arith.addf %210, %2 : vector<8x512xf32>
    %212 = vector.extract_strided_slice %211 {offsets = [0, 0], sizes = [8, 384], strides = [1, 1]} : vector<8x512xf32> to vector<8x384xf32>
    %213 = arith.negf %212 : vector<8x384xf32>
    %214 = math.exp %213 : vector<8x384xf32>
    %cst_59 = arith.constant 1.000000e+00 : f32
    %215 = vector.broadcast %cst_59 : f32 to vector<8x384xf32>
    %216 = arith.addf %215, %214 : vector<8x384xf32>
    %217 = arith.divf %215, %216 : vector<8x384xf32>
    %218 = vector.extract_strided_slice %217 {offsets = [0, 0], sizes = [8, 128], strides = [1, 1]} : vector<8x384xf32> to vector<8x128xf32>
    %219 = vector.extract_strided_slice %217 {offsets = [0, 128], sizes = [8, 128], strides = [1, 1]} : vector<8x384xf32> to vector<8x128xf32>
    %220 = vector.extract_strided_slice %217 {offsets = [0, 256], sizes = [8, 128], strides = [1, 1]} : vector<8x384xf32> to vector<8x128xf32>
    %221 = vector.extract_strided_slice %211 {offsets = [0, 384], sizes = [8, 128], strides = [1, 1]} : vector<8x512xf32> to vector<8x128xf32>
    %222 = math.tanh %221 : vector<8x128xf32>
    %223 = arith.mulf %219, %201 : vector<8x128xf32>
    %224 = arith.mulf %218, %222 : vector<8x128xf32>
    %225 = arith.addf %223, %224 : vector<8x128xf32>
    %226 = math.tanh %225 : vector<8x128xf32>
    %227 = arith.mulf %220, %226 : vector<8x128xf32>
    %c9_i32 = arith.constant 9 : i32
    %228 = arith.index_cast %c9_i32 : i32 to index
    %c0_60 = arith.constant 0 : index
    %c0_61 = arith.constant 0 : index
    %229 = vector.load %arg2[%228, %c0_60, %c0_61] : memref<10x8x512xf32, #tpu.memory_space<vmem>>, vector<1x8x512xf32>
    %230 = vector.shape_cast %229 : vector<1x8x512xf32> to vector<8x512xf32>
    %231 = arith.truncf %227 : vector<8x128xf32> to vector<8x128xbf16>
    %c0_62 = arith.constant 0 : index
    %c0_63 = arith.constant 0 : index
    %232 = vector.load %arg3[%c0_62, %c0_63] : memref<128x512xbf16, #tpu.memory_space<vmem>>, vector<128x512xbf16>
    %cst_64 = arith.constant dense<0.000000e+00> : vector<8x512xf32>
    %233 = tpu.matmul %231, %232, %cst_64 {dimension_numbers = #tpu.dot_dimension_numbers<[1], [0], [0], [1], [0, 0, 1, 1], [], []>} : vector<8x128xbf16>, vector<128x512xbf16>, vector<8x512xf32> -> vector<8x512xf32>
    %234 = arith.addf %230, %233 : vector<8x512xf32>
    %235 = arith.addf %234, %2 : vector<8x512xf32>
    %236 = vector.extract_strided_slice %235 {offsets = [0, 0], sizes = [8, 384], strides = [1, 1]} : vector<8x512xf32> to vector<8x384xf32>
    %237 = arith.negf %236 : vector<8x384xf32>
    %238 = math.exp %237 : vector<8x384xf32>
    %cst_65 = arith.constant 1.000000e+00 : f32
    %239 = vector.broadcast %cst_65 : f32 to vector<8x384xf32>
    %240 = arith.addf %239, %238 : vector<8x384xf32>
    %241 = arith.divf %239, %240 : vector<8x384xf32>
    %242 = vector.extract_strided_slice %241 {offsets = [0, 0], sizes = [8, 128], strides = [1, 1]} : vector<8x384xf32> to vector<8x128xf32>
    %243 = vector.extract_strided_slice %241 {offsets = [0, 128], sizes = [8, 128], strides = [1, 1]} : vector<8x384xf32> to vector<8x128xf32>
    %244 = vector.extract_strided_slice %241 {offsets = [0, 256], sizes = [8, 128], strides = [1, 1]} : vector<8x384xf32> to vector<8x128xf32>
    %245 = vector.extract_strided_slice %235 {offsets = [0, 384], sizes = [8, 128], strides = [1, 1]} : vector<8x512xf32> to vector<8x128xf32>
    %246 = math.tanh %245 : vector<8x128xf32>
    %247 = arith.mulf %243, %225 : vector<8x128xf32>
    %248 = arith.mulf %242, %246 : vector<8x128xf32>
    %249 = arith.addf %247, %248 : vector<8x128xf32>
    %250 = math.tanh %249 : vector<8x128xf32>
    %251 = arith.mulf %244, %250 : vector<8x128xf32>
    %c10_i32 = arith.constant 10 : i32
    %cst_66 = arith.constant 0.000000e+00 : f32
    %252 = vector.broadcast %cst_66 : f32 to vector<8x128xf32>
    %c0_67 = arith.constant 0 : index
    %c0_68 = arith.constant 0 : index
    %c0_69 = arith.constant 0 : index
    %253 = vector.load %arg10[%c0_67, %c0_68, %c0_69] : memref<8x8x128xf32, #tpu.memory_space<vmem>>, vector<1x8x128xf32>
    %254 = vector.shape_cast %253 : vector<1x8x128xf32> to vector<8x128xf32>
    %255 = vector.shape_cast %252 : vector<8x128xf32> to vector<1x8x128xf32>
    tpu.vector_store %arg10[%c0_67, %c0_68, %c0_69], %255 {strides = array<i32>} : memref<8x8x128xf32, #tpu.memory_space<vmem>>, vector<1x8x128xf32>,
    %c0_70 = arith.constant 0 : index
    %c0_71 = arith.constant 0 : index
    %256 = vector.load %arg1[%c0_70, %c0_71] : memref<8x8xi32, #tpu.memory_space<vmem>>, vector<1x8xi32>
    %257 = vector.shape_cast %256 : vector<1x8xi32> to vector<8xi32>
    %c0_i32_72 = arith.constant 0 : i32
    %c1_i32_73 = arith.constant 1 : i32
    %258 = arith.addi %c0_i32_72, %c1_i32_73 : i32
    %259 = vector.shape_cast %257 : vector<8xi32> to vector<8x1xi32>
    %260 = vector.broadcast %259 : vector<8x1xi32> to vector<8x128xi32>
    %261 = arith.cmpi eq, %9, %260 : vector<8x128xi32>
    %262 = arith.extui %261 : vector<8x128xi1> to vector<8x128xi32>
    %263 = arith.sitofp %262 : vector<8x128xi32> to vector<8x128xf32>
    %264 = arith.truncf %263 : vector<8x128xf32> to vector<8x128xbf16>
    %c0_74 = arith.constant 0 : index
    %c0_75 = arith.constant 0 : index
    %265 = vector.load %arg5[%c0_74, %c0_75] : memref<128x512xbf16, #tpu.memory_space<vmem>>, vector<128x512xbf16>
    %cst_76 = arith.constant dense<0.000000e+00> : vector<8x512xf32>
    %266 = tpu.matmul %264, %265, %cst_76 {dimension_numbers = #tpu.dot_dimension_numbers<[1], [0], [0], [1], [0, 0, 1, 1], [], []>} : vector<8x128xbf16>, vector<128x512xbf16>, vector<8x512xf32> -> vector<8x512xf32>
    %267 = arith.truncf %251 : vector<8x128xf32> to vector<8x128xbf16>
    %c0_77 = arith.constant 0 : index
    %c0_78 = arith.constant 0 : index
    %268 = vector.load %arg6[%c0_77, %c0_78] : memref<128x512xbf16, #tpu.memory_space<vmem>>, vector<128x512xbf16>
    %cst_79 = arith.constant dense<0.000000e+00> : vector<8x512xf32>
    %269 = tpu.matmul %267, %268, %cst_79 {dimension_numbers = #tpu.dot_dimension_numbers<[1], [0], [0], [1], [0, 0, 1, 1], [], []>} : vector<8x128xbf16>, vector<128x512xbf16>, vector<8x512xf32> -> vector<8x512xf32>
    %270 = arith.addf %266, %269 : vector<8x512xf32>
    %271 = arith.addf %270, %5 : vector<8x512xf32>
    %272 = vector.extract_strided_slice %271 {offsets = [0, 0], sizes = [8, 384], strides = [1, 1]} : vector<8x512xf32> to vector<8x384xf32>
    %273 = arith.negf %272 : vector<8x384xf32>
    %274 = math.exp %273 : vector<8x384xf32>
    %cst_80 = arith.constant 1.000000e+00 : f32
    %275 = vector.broadcast %cst_80 : f32 to vector<8x384xf32>
    %276 = arith.addf %275, %274 : vector<8x384xf32>
    %277 = arith.divf %275, %276 : vector<8x384xf32>
    %278 = vector.extract_strided_slice %277 {offsets = [0, 0], sizes = [8, 128], strides = [1, 1]} : vector<8x384xf32> to vector<8x128xf32>
    %279 = vector.extract_strided_slice %277 {offsets = [0, 128], sizes = [8, 128], strides = [1, 1]} : vector<8x384xf32> to vector<8x128xf32>
    %280 = vector.extract_strided_slice %277 {offsets = [0, 256], sizes = [8, 128], strides = [1, 1]} : vector<8x384xf32> to vector<8x128xf32>
    %281 = vector.extract_strided_slice %271 {offsets = [0, 384], sizes = [8, 128], strides = [1, 1]} : vector<8x512xf32> to vector<8x128xf32>
    %282 = math.tanh %281 : vector<8x128xf32>
    %283 = arith.mulf %279, %249 : vector<8x128xf32>
    %284 = arith.mulf %278, %282 : vector<8x128xf32>
    %285 = arith.addf %283, %284 : vector<8x128xf32>
    %286 = math.tanh %285 : vector<8x128xf32>
    %287 = arith.mulf %280, %286 : vector<8x128xf32>
    %288 = arith.truncf %287 : vector<8x128xf32> to vector<8x128xbf16>
    %c0_81 = arith.constant 0 : index
    %c0_82 = arith.constant 0 : index
    %289 = vector.load %arg8[%c0_81, %c0_82] : memref<128x128xbf16, #tpu.memory_space<vmem>>, vector<128x128xbf16>
    %cst_83 = arith.constant dense<0.000000e+00> : vector<8x128xf32>
    %290 = tpu.matmul %288, %289, %cst_83 {dimension_numbers = #tpu.dot_dimension_numbers<[1], [0], [0], [1], [0, 0, 1, 1], [], []>} : vector<8x128xbf16>, vector<128x128xbf16>, vector<8x128xf32> -> vector<8x128xf32>
    %291 = arith.addf %290, %8 : vector<8x128xf32>
    %292 = arith.index_cast %258 : i32 to index
    %c0_84 = arith.constant 0 : index
    %c0_85 = arith.constant 0 : index
    %293 = vector.load %arg10[%292, %c0_84, %c0_85] : memref<8x8x128xf32, #tpu.memory_space<vmem>>, vector<1x8x128xf32>
    %294 = vector.shape_cast %293 : vector<1x8x128xf32> to vector<8x128xf32>
    %295 = vector.shape_cast %291 : vector<8x128xf32> to vector<1x8x128xf32>
    tpu.vector_store %arg10[%292, %c0_84, %c0_85], %295 {strides = array<i32>} : memref<8x8x128xf32, #tpu.memory_space<vmem>>, vector<1x8x128xf32>,
    %cst_86 = arith.constant dense<0xFF800000> : vector<8xf32>
    %296 = vector.multi_reduction <maximumf>, %291, %cst_86 [1] : vector<8x128xf32> to vector<8xf32>
    %297 = vector.shape_cast %296 : vector<8xf32> to vector<8x1xf32>
    %298 = vector.broadcast %297 : vector<8x1xf32> to vector<8x128xf32>
    %299 = arith.cmpf oeq, %291, %298 : vector<8x128xf32>
    %c128_i32 = arith.constant 128 : i32
    %300 = vector.broadcast %c128_i32 : i32 to vector<8x128xi32>
    %301 = arith.select %299, %9, %300 : vector<8x128xi1>, vector<8x128xi32>
    %cst_87 = arith.constant dense<2147483647> : vector<8xi32>
    %302 = vector.multi_reduction <minsi>, %301, %cst_87 [1] : vector<8x128xi32> to vector<8xi32>
    %303 = arith.index_cast %258 : i32 to index
    %304 = memref.load %arg0[%303] : memref<8xi32, #tpu.memory_space<smem>>
    %c0_i32_88 = arith.constant 0 : i32
    %305 = arith.cmpi sgt, %304, %c0_i32_88 : i32
    %306 = arith.index_cast %258 : i32 to index
    %c0_89 = arith.constant 0 : index
    %307 = vector.load %arg1[%306, %c0_89] : memref<8x8xi32, #tpu.memory_space<vmem>>, vector<1x8xi32>
    %308 = vector.shape_cast %307 : vector<1x8xi32> to vector<8xi32>
    %309 = arith.select %305, %308, %302 : vector<8xi32>
    %c1_i32_90 = arith.constant 1 : i32
    %c1_i32_91 = arith.constant 1 : i32
    %310 = arith.addi %c1_i32_90, %c1_i32_91 : i32
    %311 = vector.shape_cast %309 : vector<8xi32> to vector<8x1xi32>
    %312 = vector.broadcast %311 : vector<8x1xi32> to vector<8x128xi32>
    %313 = arith.cmpi eq, %9, %312 : vector<8x128xi32>
    %314 = arith.extui %313 : vector<8x128xi1> to vector<8x128xi32>
    %315 = arith.sitofp %314 : vector<8x128xi32> to vector<8x128xf32>
    %316 = arith.truncf %315 : vector<8x128xf32> to vector<8x128xbf16>
    %c0_92 = arith.constant 0 : index
    %c0_93 = arith.constant 0 : index
    %317 = vector.load %arg5[%c0_92, %c0_93] : memref<128x512xbf16, #tpu.memory_space<vmem>>, vector<128x512xbf16>
    %cst_94 = arith.constant dense<0.000000e+00> : vector<8x512xf32>
    %318 = tpu.matmul %316, %317, %cst_94 {dimension_numbers = #tpu.dot_dimension_numbers<[1], [0], [0], [1], [0, 0, 1, 1], [], []>} : vector<8x128xbf16>, vector<128x512xbf16>, vector<8x512xf32> -> vector<8x512xf32>
    %319 = arith.truncf %287 : vector<8x128xf32> to vector<8x128xbf16>
    %c0_95 = arith.constant 0 : index
    %c0_96 = arith.constant 0 : index
    %320 = vector.load %arg6[%c0_95, %c0_96] : memref<128x512xbf16, #tpu.memory_space<vmem>>, vector<128x512xbf16>
    %cst_97 = arith.constant dense<0.000000e+00> : vector<8x512xf32>
    %321 = tpu.matmul %319, %320, %cst_97 {dimension_numbers = #tpu.dot_dimension_numbers<[1], [0], [0], [1], [0, 0, 1, 1], [], []>} : vector<8x128xbf16>, vector<128x512xbf16>, vector<8x512xf32> -> vector<8x512xf32>
    %322 = arith.addf %318, %321 : vector<8x512xf32>
    %323 = arith.addf %322, %5 : vector<8x512xf32>
    %324 = vector.extract_strided_slice %323 {offsets = [0, 0], sizes = [8, 384], strides = [1, 1]} : vector<8x512xf32> to vector<8x384xf32>
    %325 = arith.negf %324 : vector<8x384xf32>
    %326 = math.exp %325 : vector<8x384xf32>
    %cst_98 = arith.constant 1.000000e+00 : f32
    %327 = vector.broadcast %cst_98 : f32 to vector<8x384xf32>
    %328 = arith.addf %327, %326 : vector<8x384xf32>
    %329 = arith.divf %327, %328 : vector<8x384xf32>
    %330 = vector.extract_strided_slice %329 {offsets = [0, 0], sizes = [8, 128], strides = [1, 1]} : vector<8x384xf32> to vector<8x128xf32>
    %331 = vector.extract_strided_slice %329 {offsets = [0, 128], sizes = [8, 128], strides = [1, 1]} : vector<8x384xf32> to vector<8x128xf32>
    %332 = vector.extract_strided_slice %329 {offsets = [0, 256], sizes = [8, 128], strides = [1, 1]} : vector<8x384xf32> to vector<8x128xf32>
    %333 = vector.extract_strided_slice %323 {offsets = [0, 384], sizes = [8, 128], strides = [1, 1]} : vector<8x512xf32> to vector<8x128xf32>
    %334 = math.tanh %333 : vector<8x128xf32>
    %335 = arith.mulf %331, %285 : vector<8x128xf32>
    %336 = arith.mulf %330, %334 : vector<8x128xf32>
    %337 = arith.addf %335, %336 : vector<8x128xf32>
    %338 = math.tanh %337 : vector<8x128xf32>
    %339 = arith.mulf %332, %338 : vector<8x128xf32>
    %340 = arith.truncf %339 : vector<8x128xf32> to vector<8x128xbf16>
    %c0_99 = arith.constant 0 : index
    %c0_100 = arith.constant 0 : index
    %341 = vector.load %arg8[%c0_99, %c0_100] : memref<128x128xbf16, #tpu.memory_space<vmem>>, vector<128x128xbf16>
    %cst_101 = arith.constant dense<0.000000e+00> : vector<8x128xf32>
    %342 = tpu.matmul %340, %341, %cst_101 {dimension_numbers = #tpu.dot_dimension_numbers<[1], [0], [0], [1], [0, 0, 1, 1], [], []>} : vector<8x128xbf16>, vector<128x128xbf16>, vector<8x128xf32> -> vector<8x128xf32>
    %343 = arith.addf %342, %8 : vector<8x128xf32>
    %344 = arith.index_cast %310 : i32 to index
    %c0_102 = arith.constant 0 : index
    %c0_103 = arith.constant 0 : index
    %345 = vector.load %arg10[%344, %c0_102, %c0_103] : memref<8x8x128xf32, #tpu.memory_space<vmem>>, vector<1x8x128xf32>
    %346 = vector.shape_cast %345 : vector<1x8x128xf32> to vector<8x128xf32>
    %347 = vector.shape_cast %343 : vector<8x128xf32> to vector<1x8x128xf32>
    tpu.vector_store %arg10[%344, %c0_102, %c0_103], %347 {strides = array<i32>} : memref<8x8x128xf32, #tpu.memory_space<vmem>>, vector<1x8x128xf32>,
    %cst_104 = arith.constant dense<0xFF800000> : vector<8xf32>
    %348 = vector.multi_reduction <maximumf>, %343, %cst_104 [1] : vector<8x128xf32> to vector<8xf32>
    %349 = vector.shape_cast %348 : vector<8xf32> to vector<8x1xf32>
    %350 = vector.broadcast %349 : vector<8x1xf32> to vector<8x128xf32>
    %351 = arith.cmpf oeq, %343, %350 : vector<8x128xf32>
    %c128_i32_105 = arith.constant 128 : i32
    %352 = vector.broadcast %c128_i32_105 : i32 to vector<8x128xi32>
    %353 = arith.select %351, %9, %352 : vector<8x128xi1>, vector<8x128xi32>
    %cst_106 = arith.constant dense<2147483647> : vector<8xi32>
    %354 = vector.multi_reduction <minsi>, %353, %cst_106 [1] : vector<8x128xi32> to vector<8xi32>
    %355 = arith.index_cast %310 : i32 to index
    %356 = memref.load %arg0[%355] : memref<8xi32, #tpu.memory_space<smem>>
    %c0_i32_107 = arith.constant 0 : i32
    %357 = arith.cmpi sgt, %356, %c0_i32_107 : i32
    %358 = arith.index_cast %310 : i32 to index
    %c0_108 = arith.constant 0 : index
    %359 = vector.load %arg1[%358, %c0_108] : memref<8x8xi32, #tpu.memory_space<vmem>>, vector<1x8xi32>
    %360 = vector.shape_cast %359 : vector<1x8xi32> to vector<8xi32>
    %361 = arith.select %357, %360, %354 : vector<8xi32>
    %c2_i32_109 = arith.constant 2 : i32
    %c1_i32_110 = arith.constant 1 : i32
    %362 = arith.addi %c2_i32_109, %c1_i32_110 : i32
    %363 = vector.shape_cast %361 : vector<8xi32> to vector<8x1xi32>
    %364 = vector.broadcast %363 : vector<8x1xi32> to vector<8x128xi32>
    %365 = arith.cmpi eq, %9, %364 : vector<8x128xi32>
    %366 = arith.extui %365 : vector<8x128xi1> to vector<8x128xi32>
    %367 = arith.sitofp %366 : vector<8x128xi32> to vector<8x128xf32>
    %368 = arith.truncf %367 : vector<8x128xf32> to vector<8x128xbf16>
    %c0_111 = arith.constant 0 : index
    %c0_112 = arith.constant 0 : index
    %369 = vector.load %arg5[%c0_111, %c0_112] : memref<128x512xbf16, #tpu.memory_space<vmem>>, vector<128x512xbf16>
    %cst_113 = arith.constant dense<0.000000e+00> : vector<8x512xf32>
    %370 = tpu.matmul %368, %369, %cst_113 {dimension_numbers = #tpu.dot_dimension_numbers<[1], [0], [0], [1], [0, 0, 1, 1], [], []>} : vector<8x128xbf16>, vector<128x512xbf16>, vector<8x512xf32> -> vector<8x512xf32>
    %371 = arith.truncf %339 : vector<8x128xf32> to vector<8x128xbf16>
    %c0_114 = arith.constant 0 : index
    %c0_115 = arith.constant 0 : index
    %372 = vector.load %arg6[%c0_114, %c0_115] : memref<128x512xbf16, #tpu.memory_space<vmem>>, vector<128x512xbf16>
    %cst_116 = arith.constant dense<0.000000e+00> : vector<8x512xf32>
    %373 = tpu.matmul %371, %372, %cst_116 {dimension_numbers = #tpu.dot_dimension_numbers<[1], [0], [0], [1], [0, 0, 1, 1], [], []>} : vector<8x128xbf16>, vector<128x512xbf16>, vector<8x512xf32> -> vector<8x512xf32>
    %374 = arith.addf %370, %373 : vector<8x512xf32>
    %375 = arith.addf %374, %5 : vector<8x512xf32>
    %376 = vector.extract_strided_slice %375 {offsets = [0, 0], sizes = [8, 384], strides = [1, 1]} : vector<8x512xf32> to vector<8x384xf32>
    %377 = arith.negf %376 : vector<8x384xf32>
    %378 = math.exp %377 : vector<8x384xf32>
    %cst_117 = arith.constant 1.000000e+00 : f32
    %379 = vector.broadcast %cst_117 : f32 to vector<8x384xf32>
    %380 = arith.addf %379, %378 : vector<8x384xf32>
    %381 = arith.divf %379, %380 : vector<8x384xf32>
    %382 = vector.extract_strided_slice %381 {offsets = [0, 0], sizes = [8, 128], strides = [1, 1]} : vector<8x384xf32> to vector<8x128xf32>
    %383 = vector.extract_strided_slice %381 {offsets = [0, 128], sizes = [8, 128], strides = [1, 1]} : vector<8x384xf32> to vector<8x128xf32>
    %384 = vector.extract_strided_slice %381 {offsets = [0, 256], sizes = [8, 128], strides = [1, 1]} : vector<8x384xf32> to vector<8x128xf32>
    %385 = vector.extract_strided_slice %375 {offsets = [0, 384], sizes = [8, 128], strides = [1, 1]} : vector<8x512xf32> to vector<8x128xf32>
    %386 = math.tanh %385 : vector<8x128xf32>
    %387 = arith.mulf %383, %337 : vector<8x128xf32>
    %388 = arith.mulf %382, %386 : vector<8x128xf32>
    %389 = arith.addf %387, %388 : vector<8x128xf32>
    %390 = math.tanh %389 : vector<8x128xf32>
    %391 = arith.mulf %384, %390 : vector<8x128xf32>
    %392 = arith.truncf %391 : vector<8x128xf32> to vector<8x128xbf16>
    %c0_118 = arith.constant 0 : index
    %c0_119 = arith.constant 0 : index
    %393 = vector.load %arg8[%c0_118, %c0_119] : memref<128x128xbf16, #tpu.memory_space<vmem>>, vector<128x128xbf16>
    %cst_120 = arith.constant dense<0.000000e+00> : vector<8x128xf32>
    %394 = tpu.matmul %392, %393, %cst_120 {dimension_numbers = #tpu.dot_dimension_numbers<[1], [0], [0], [1], [0, 0, 1, 1], [], []>} : vector<8x128xbf16>, vector<128x128xbf16>, vector<8x128xf32> -> vector<8x128xf32>
    %395 = arith.addf %394, %8 : vector<8x128xf32>
    %396 = arith.index_cast %362 : i32 to index
    %c0_121 = arith.constant 0 : index
    %c0_122 = arith.constant 0 : index
    %397 = vector.load %arg10[%396, %c0_121, %c0_122] : memref<8x8x128xf32, #tpu.memory_space<vmem>>, vector<1x8x128xf32>
    %398 = vector.shape_cast %397 : vector<1x8x128xf32> to vector<8x128xf32>
    %399 = vector.shape_cast %395 : vector<8x128xf32> to vector<1x8x128xf32>
    tpu.vector_store %arg10[%396, %c0_121, %c0_122], %399 {strides = array<i32>} : memref<8x8x128xf32, #tpu.memory_space<vmem>>, vector<1x8x128xf32>,
    %cst_123 = arith.constant dense<0xFF800000> : vector<8xf32>
    %400 = vector.multi_reduction <maximumf>, %395, %cst_123 [1] : vector<8x128xf32> to vector<8xf32>
    %401 = vector.shape_cast %400 : vector<8xf32> to vector<8x1xf32>
    %402 = vector.broadcast %401 : vector<8x1xf32> to vector<8x128xf32>
    %403 = arith.cmpf oeq, %395, %402 : vector<8x128xf32>
    %c128_i32_124 = arith.constant 128 : i32
    %404 = vector.broadcast %c128_i32_124 : i32 to vector<8x128xi32>
    %405 = arith.select %403, %9, %404 : vector<8x128xi1>, vector<8x128xi32>
    %cst_125 = arith.constant dense<2147483647> : vector<8xi32>
    %406 = vector.multi_reduction <minsi>, %405, %cst_125 [1] : vector<8x128xi32> to vector<8xi32>
    %407 = arith.index_cast %362 : i32 to index
    %408 = memref.load %arg0[%407] : memref<8xi32, #tpu.memory_space<smem>>
    %c0_i32_126 = arith.constant 0 : i32
    %409 = arith.cmpi sgt, %408, %c0_i32_126 : i32
    %410 = arith.index_cast %362 : i32 to index
    %c0_127 = arith.constant 0 : index
    %411 = vector.load %arg1[%410, %c0_127] : memref<8x8xi32, #tpu.memory_space<vmem>>, vector<1x8xi32>
    %412 = vector.shape_cast %411 : vector<1x8xi32> to vector<8xi32>
    %413 = arith.select %409, %412, %406 : vector<8xi32>
    %c3_i32_128 = arith.constant 3 : i32
    %c1_i32_129 = arith.constant 1 : i32
    %414 = arith.addi %c3_i32_128, %c1_i32_129 : i32
    %415 = vector.shape_cast %413 : vector<8xi32> to vector<8x1xi32>
    %416 = vector.broadcast %415 : vector<8x1xi32> to vector<8x128xi32>
    %417 = arith.cmpi eq, %9, %416 : vector<8x128xi32>
    %418 = arith.extui %417 : vector<8x128xi1> to vector<8x128xi32>
    %419 = arith.sitofp %418 : vector<8x128xi32> to vector<8x128xf32>
    %420 = arith.truncf %419 : vector<8x128xf32> to vector<8x128xbf16>
    %c0_130 = arith.constant 0 : index
    %c0_131 = arith.constant 0 : index
    %421 = vector.load %arg5[%c0_130, %c0_131] : memref<128x512xbf16, #tpu.memory_space<vmem>>, vector<128x512xbf16>
    %cst_132 = arith.constant dense<0.000000e+00> : vector<8x512xf32>
    %422 = tpu.matmul %420, %421, %cst_132 {dimension_numbers = #tpu.dot_dimension_numbers<[1], [0], [0], [1], [0, 0, 1, 1], [], []>} : vector<8x128xbf16>, vector<128x512xbf16>, vector<8x512xf32> -> vector<8x512xf32>
    %423 = arith.truncf %391 : vector<8x128xf32> to vector<8x128xbf16>
    %c0_133 = arith.constant 0 : index
    %c0_134 = arith.constant 0 : index
    %424 = vector.load %arg6[%c0_133, %c0_134] : memref<128x512xbf16, #tpu.memory_space<vmem>>, vector<128x512xbf16>
    %cst_135 = arith.constant dense<0.000000e+00> : vector<8x512xf32>
    %425 = tpu.matmul %423, %424, %cst_135 {dimension_numbers = #tpu.dot_dimension_numbers<[1], [0], [0], [1], [0, 0, 1, 1], [], []>} : vector<8x128xbf16>, vector<128x512xbf16>, vector<8x512xf32> -> vector<8x512xf32>
    %426 = arith.addf %422, %425 : vector<8x512xf32>
    %427 = arith.addf %426, %5 : vector<8x512xf32>
    %428 = vector.extract_strided_slice %427 {offsets = [0, 0], sizes = [8, 384], strides = [1, 1]} : vector<8x512xf32> to vector<8x384xf32>
    %429 = arith.negf %428 : vector<8x384xf32>
    %430 = math.exp %429 : vector<8x384xf32>
    %cst_136 = arith.constant 1.000000e+00 : f32
    %431 = vector.broadcast %cst_136 : f32 to vector<8x384xf32>
    %432 = arith.addf %431, %430 : vector<8x384xf32>
    %433 = arith.divf %431, %432 : vector<8x384xf32>
    %434 = vector.extract_strided_slice %433 {offsets = [0, 0], sizes = [8, 128], strides = [1, 1]} : vector<8x384xf32> to vector<8x128xf32>
    %435 = vector.extract_strided_slice %433 {offsets = [0, 128], sizes = [8, 128], strides = [1, 1]} : vector<8x384xf32> to vector<8x128xf32>
    %436 = vector.extract_strided_slice %433 {offsets = [0, 256], sizes = [8, 128], strides = [1, 1]} : vector<8x384xf32> to vector<8x128xf32>
    %437 = vector.extract_strided_slice %427 {offsets = [0, 384], sizes = [8, 128], strides = [1, 1]} : vector<8x512xf32> to vector<8x128xf32>
    %438 = math.tanh %437 : vector<8x128xf32>
    %439 = arith.mulf %435, %389 : vector<8x128xf32>
    %440 = arith.mulf %434, %438 : vector<8x128xf32>
    %441 = arith.addf %439, %440 : vector<8x128xf32>
    %442 = math.tanh %441 : vector<8x128xf32>
    %443 = arith.mulf %436, %442 : vector<8x128xf32>
    %444 = arith.truncf %443 : vector<8x128xf32> to vector<8x128xbf16>
    %c0_137 = arith.constant 0 : index
    %c0_138 = arith.constant 0 : index
    %445 = vector.load %arg8[%c0_137, %c0_138] : memref<128x128xbf16, #tpu.memory_space<vmem>>, vector<128x128xbf16>
    %cst_139 = arith.constant dense<0.000000e+00> : vector<8x128xf32>
    %446 = tpu.matmul %444, %445, %cst_139 {dimension_numbers = #tpu.dot_dimension_numbers<[1], [0], [0], [1], [0, 0, 1, 1], [], []>} : vector<8x128xbf16>, vector<128x128xbf16>, vector<8x128xf32> -> vector<8x128xf32>
    %447 = arith.addf %446, %8 : vector<8x128xf32>
    %448 = arith.index_cast %414 : i32 to index
    %c0_140 = arith.constant 0 : index
    %c0_141 = arith.constant 0 : index
    %449 = vector.load %arg10[%448, %c0_140, %c0_141] : memref<8x8x128xf32, #tpu.memory_space<vmem>>, vector<1x8x128xf32>
    %450 = vector.shape_cast %449 : vector<1x8x128xf32> to vector<8x128xf32>
    %451 = vector.shape_cast %447 : vector<8x128xf32> to vector<1x8x128xf32>
    tpu.vector_store %arg10[%448, %c0_140, %c0_141], %451 {strides = array<i32>} : memref<8x8x128xf32, #tpu.memory_space<vmem>>, vector<1x8x128xf32>,
    %cst_142 = arith.constant dense<0xFF800000> : vector<8xf32>
    %452 = vector.multi_reduction <maximumf>, %447, %cst_142 [1] : vector<8x128xf32> to vector<8xf32>
    %453 = vector.shape_cast %452 : vector<8xf32> to vector<8x1xf32>
    %454 = vector.broadcast %453 : vector<8x1xf32> to vector<8x128xf32>
    %455 = arith.cmpf oeq, %447, %454 : vector<8x128xf32>
    %c128_i32_143 = arith.constant 128 : i32
    %456 = vector.broadcast %c128_i32_143 : i32 to vector<8x128xi32>
    %457 = arith.select %455, %9, %456 : vector<8x128xi1>, vector<8x128xi32>
    %cst_144 = arith.constant dense<2147483647> : vector<8xi32>
    %458 = vector.multi_reduction <minsi>, %457, %cst_144 [1] : vector<8x128xi32> to vector<8xi32>
    %459 = arith.index_cast %414 : i32 to index
    %460 = memref.load %arg0[%459] : memref<8xi32, #tpu.memory_space<smem>>
    %c0_i32_145 = arith.constant 0 : i32
    %461 = arith.cmpi sgt, %460, %c0_i32_145 : i32
    %462 = arith.index_cast %414 : i32 to index
    %c0_146 = arith.constant 0 : index
    %463 = vector.load %arg1[%462, %c0_146] : memref<8x8xi32, #tpu.memory_space<vmem>>, vector<1x8xi32>
    %464 = vector.shape_cast %463 : vector<1x8xi32> to vector<8xi32>
    %465 = arith.select %461, %464, %458 : vector<8xi32>
    %c4_i32_147 = arith.constant 4 : i32
    %c1_i32_148 = arith.constant 1 : i32
    %466 = arith.addi %c4_i32_147, %c1_i32_148 : i32
    %467 = vector.shape_cast %465 : vector<8xi32> to vector<8x1xi32>
    %468 = vector.broadcast %467 : vector<8x1xi32> to vector<8x128xi32>
    %469 = arith.cmpi eq, %9, %468 : vector<8x128xi32>
    %470 = arith.extui %469 : vector<8x128xi1> to vector<8x128xi32>
    %471 = arith.sitofp %470 : vector<8x128xi32> to vector<8x128xf32>
    %472 = arith.truncf %471 : vector<8x128xf32> to vector<8x128xbf16>
    %c0_149 = arith.constant 0 : index
    %c0_150 = arith.constant 0 : index
    %473 = vector.load %arg5[%c0_149, %c0_150] : memref<128x512xbf16, #tpu.memory_space<vmem>>, vector<128x512xbf16>
    %cst_151 = arith.constant dense<0.000000e+00> : vector<8x512xf32>
    %474 = tpu.matmul %472, %473, %cst_151 {dimension_numbers = #tpu.dot_dimension_numbers<[1], [0], [0], [1], [0, 0, 1, 1], [], []>} : vector<8x128xbf16>, vector<128x512xbf16>, vector<8x512xf32> -> vector<8x512xf32>
    %475 = arith.truncf %443 : vector<8x128xf32> to vector<8x128xbf16>
    %c0_152 = arith.constant 0 : index
    %c0_153 = arith.constant 0 : index
    %476 = vector.load %arg6[%c0_152, %c0_153] : memref<128x512xbf16, #tpu.memory_space<vmem>>, vector<128x512xbf16>
    %cst_154 = arith.constant dense<0.000000e+00> : vector<8x512xf32>
    %477 = tpu.matmul %475, %476, %cst_154 {dimension_numbers = #tpu.dot_dimension_numbers<[1], [0], [0], [1], [0, 0, 1, 1], [], []>} : vector<8x128xbf16>, vector<128x512xbf16>, vector<8x512xf32> -> vector<8x512xf32>
    %478 = arith.addf %474, %477 : vector<8x512xf32>
    %479 = arith.addf %478, %5 : vector<8x512xf32>
    %480 = vector.extract_strided_slice %479 {offsets = [0, 0], sizes = [8, 384], strides = [1, 1]} : vector<8x512xf32> to vector<8x384xf32>
    %481 = arith.negf %480 : vector<8x384xf32>
    %482 = math.exp %481 : vector<8x384xf32>
    %cst_155 = arith.constant 1.000000e+00 : f32
    %483 = vector.broadcast %cst_155 : f32 to vector<8x384xf32>
    %484 = arith.addf %483, %482 : vector<8x384xf32>
    %485 = arith.divf %483, %484 : vector<8x384xf32>
    %486 = vector.extract_strided_slice %485 {offsets = [0, 0], sizes = [8, 128], strides = [1, 1]} : vector<8x384xf32> to vector<8x128xf32>
    %487 = vector.extract_strided_slice %485 {offsets = [0, 128], sizes = [8, 128], strides = [1, 1]} : vector<8x384xf32> to vector<8x128xf32>
    %488 = vector.extract_strided_slice %485 {offsets = [0, 256], sizes = [8, 128], strides = [1, 1]} : vector<8x384xf32> to vector<8x128xf32>
    %489 = vector.extract_strided_slice %479 {offsets = [0, 384], sizes = [8, 128], strides = [1, 1]} : vector<8x512xf32> to vector<8x128xf32>
    %490 = math.tanh %489 : vector<8x128xf32>
    %491 = arith.mulf %487, %441 : vector<8x128xf32>
    %492 = arith.mulf %486, %490 : vector<8x128xf32>
    %493 = arith.addf %491, %492 : vector<8x128xf32>
    %494 = math.tanh %493 : vector<8x128xf32>
    %495 = arith.mulf %488, %494 : vector<8x128xf32>
    %496 = arith.truncf %495 : vector<8x128xf32> to vector<8x128xbf16>
    %c0_156 = arith.constant 0 : index
    %c0_157 = arith.constant 0 : index
    %497 = vector.load %arg8[%c0_156, %c0_157] : memref<128x128xbf16, #tpu.memory_space<vmem>>, vector<128x128xbf16>
    %cst_158 = arith.constant dense<0.000000e+00> : vector<8x128xf32>
    %498 = tpu.matmul %496, %497, %cst_158 {dimension_numbers = #tpu.dot_dimension_numbers<[1], [0], [0], [1], [0, 0, 1, 1], [], []>} : vector<8x128xbf16>, vector<128x128xbf16>, vector<8x128xf32> -> vector<8x128xf32>
    %499 = arith.addf %498, %8 : vector<8x128xf32>
    %500 = arith.index_cast %466 : i32 to index
    %c0_159 = arith.constant 0 : index
    %c0_160 = arith.constant 0 : index
    %501 = vector.load %arg10[%500, %c0_159, %c0_160] : memref<8x8x128xf32, #tpu.memory_space<vmem>>, vector<1x8x128xf32>
    %502 = vector.shape_cast %501 : vector<1x8x128xf32> to vector<8x128xf32>
    %503 = vector.shape_cast %499 : vector<8x128xf32> to vector<1x8x128xf32>
    tpu.vector_store %arg10[%500, %c0_159, %c0_160], %503 {strides = array<i32>} : memref<8x8x128xf32, #tpu.memory_space<vmem>>, vector<1x8x128xf32>,
    %cst_161 = arith.constant dense<0xFF800000> : vector<8xf32>
    %504 = vector.multi_reduction <maximumf>, %499, %cst_161 [1] : vector<8x128xf32> to vector<8xf32>
    %505 = vector.shape_cast %504 : vector<8xf32> to vector<8x1xf32>
    %506 = vector.broadcast %505 : vector<8x1xf32> to vector<8x128xf32>
    %507 = arith.cmpf oeq, %499, %506 : vector<8x128xf32>
    %c128_i32_162 = arith.constant 128 : i32
    %508 = vector.broadcast %c128_i32_162 : i32 to vector<8x128xi32>
    %509 = arith.select %507, %9, %508 : vector<8x128xi1>, vector<8x128xi32>
    %cst_163 = arith.constant dense<2147483647> : vector<8xi32>
    %510 = vector.multi_reduction <minsi>, %509, %cst_163 [1] : vector<8x128xi32> to vector<8xi32>
    %511 = arith.index_cast %466 : i32 to index
    %512 = memref.load %arg0[%511] : memref<8xi32, #tpu.memory_space<smem>>
    %c0_i32_164 = arith.constant 0 : i32
    %513 = arith.cmpi sgt, %512, %c0_i32_164 : i32
    %514 = arith.index_cast %466 : i32 to index
    %c0_165 = arith.constant 0 : index
    %515 = vector.load %arg1[%514, %c0_165] : memref<8x8xi32, #tpu.memory_space<vmem>>, vector<1x8xi32>
    %516 = vector.shape_cast %515 : vector<1x8xi32> to vector<8xi32>
    %517 = arith.select %513, %516, %510 : vector<8xi32>
    %c5_i32_166 = arith.constant 5 : i32
    %c1_i32_167 = arith.constant 1 : i32
    %518 = arith.addi %c5_i32_166, %c1_i32_167 : i32
    %519 = vector.shape_cast %517 : vector<8xi32> to vector<8x1xi32>
    %520 = vector.broadcast %519 : vector<8x1xi32> to vector<8x128xi32>
    %521 = arith.cmpi eq, %9, %520 : vector<8x128xi32>
    %522 = arith.extui %521 : vector<8x128xi1> to vector<8x128xi32>
    %523 = arith.sitofp %522 : vector<8x128xi32> to vector<8x128xf32>
    %524 = arith.truncf %523 : vector<8x128xf32> to vector<8x128xbf16>
    %c0_168 = arith.constant 0 : index
    %c0_169 = arith.constant 0 : index
    %525 = vector.load %arg5[%c0_168, %c0_169] : memref<128x512xbf16, #tpu.memory_space<vmem>>, vector<128x512xbf16>
    %cst_170 = arith.constant dense<0.000000e+00> : vector<8x512xf32>
    %526 = tpu.matmul %524, %525, %cst_170 {dimension_numbers = #tpu.dot_dimension_numbers<[1], [0], [0], [1], [0, 0, 1, 1], [], []>} : vector<8x128xbf16>, vector<128x512xbf16>, vector<8x512xf32> -> vector<8x512xf32>
    %527 = arith.truncf %495 : vector<8x128xf32> to vector<8x128xbf16>
    %c0_171 = arith.constant 0 : index
    %c0_172 = arith.constant 0 : index
    %528 = vector.load %arg6[%c0_171, %c0_172] : memref<128x512xbf16, #tpu.memory_space<vmem>>, vector<128x512xbf16>
    %cst_173 = arith.constant dense<0.000000e+00> : vector<8x512xf32>
    %529 = tpu.matmul %527, %528, %cst_173 {dimension_numbers = #tpu.dot_dimension_numbers<[1], [0], [0], [1], [0, 0, 1, 1], [], []>} : vector<8x128xbf16>, vector<128x512xbf16>, vector<8x512xf32> -> vector<8x512xf32>
    %530 = arith.addf %526, %529 : vector<8x512xf32>
    %531 = arith.addf %530, %5 : vector<8x512xf32>
    %532 = vector.extract_strided_slice %531 {offsets = [0, 0], sizes = [8, 384], strides = [1, 1]} : vector<8x512xf32> to vector<8x384xf32>
    %533 = arith.negf %532 : vector<8x384xf32>
    %534 = math.exp %533 : vector<8x384xf32>
    %cst_174 = arith.constant 1.000000e+00 : f32
    %535 = vector.broadcast %cst_174 : f32 to vector<8x384xf32>
    %536 = arith.addf %535, %534 : vector<8x384xf32>
    %537 = arith.divf %535, %536 : vector<8x384xf32>
    %538 = vector.extract_strided_slice %537 {offsets = [0, 0], sizes = [8, 128], strides = [1, 1]} : vector<8x384xf32> to vector<8x128xf32>
    %539 = vector.extract_strided_slice %537 {offsets = [0, 128], sizes = [8, 128], strides = [1, 1]} : vector<8x384xf32> to vector<8x128xf32>
    %540 = vector.extract_strided_slice %537 {offsets = [0, 256], sizes = [8, 128], strides = [1, 1]} : vector<8x384xf32> to vector<8x128xf32>
    %541 = vector.extract_strided_slice %531 {offsets = [0, 384], sizes = [8, 128], strides = [1, 1]} : vector<8x512xf32> to vector<8x128xf32>
    %542 = math.tanh %541 : vector<8x128xf32>
    %543 = arith.mulf %539, %493 : vector<8x128xf32>
    %544 = arith.mulf %538, %542 : vector<8x128xf32>
    %545 = arith.addf %543, %544 : vector<8x128xf32>
    %546 = math.tanh %545 : vector<8x128xf32>
    %547 = arith.mulf %540, %546 : vector<8x128xf32>
    %548 = arith.truncf %547 : vector<8x128xf32> to vector<8x128xbf16>
    %c0_175 = arith.constant 0 : index
    %c0_176 = arith.constant 0 : index
    %549 = vector.load %arg8[%c0_175, %c0_176] : memref<128x128xbf16, #tpu.memory_space<vmem>>, vector<128x128xbf16>
    %cst_177 = arith.constant dense<0.000000e+00> : vector<8x128xf32>
    %550 = tpu.matmul %548, %549, %cst_177 {dimension_numbers = #tpu.dot_dimension_numbers<[1], [0], [0], [1], [0, 0, 1, 1], [], []>} : vector<8x128xbf16>, vector<128x128xbf16>, vector<8x128xf32> -> vector<8x128xf32>
    %551 = arith.addf %550, %8 : vector<8x128xf32>
    %552 = arith.index_cast %518 : i32 to index
    %c0_178 = arith.constant 0 : index
    %c0_179 = arith.constant 0 : index
    %553 = vector.load %arg10[%552, %c0_178, %c0_179] : memref<8x8x128xf32, #tpu.memory_space<vmem>>, vector<1x8x128xf32>
    %554 = vector.shape_cast %553 : vector<1x8x128xf32> to vector<8x128xf32>
    %555 = vector.shape_cast %551 : vector<8x128xf32> to vector<1x8x128xf32>
    tpu.vector_store %arg10[%552, %c0_178, %c0_179], %555 {strides = array<i32>} : memref<8x8x128xf32, #tpu.memory_space<vmem>>, vector<1x8x128xf32>,
    %cst_180 = arith.constant dense<0xFF800000> : vector<8xf32>
    %556 = vector.multi_reduction <maximumf>, %551, %cst_180 [1] : vector<8x128xf32> to vector<8xf32>
    %557 = vector.shape_cast %556 : vector<8xf32> to vector<8x1xf32>
    %558 = vector.broadcast %557 : vector<8x1xf32> to vector<8x128xf32>
    %559 = arith.cmpf oeq, %551, %558 : vector<8x128xf32>
    %c128_i32_181 = arith.constant 128 : i32
    %560 = vector.broadcast %c128_i32_181 : i32 to vector<8x128xi32>
    %561 = arith.select %559, %9, %560 : vector<8x128xi1>, vector<8x128xi32>
    %cst_182 = arith.constant dense<2147483647> : vector<8xi32>
    %562 = vector.multi_reduction <minsi>, %561, %cst_182 [1] : vector<8x128xi32> to vector<8xi32>
    %563 = arith.index_cast %518 : i32 to index
    %564 = memref.load %arg0[%563] : memref<8xi32, #tpu.memory_space<smem>>
    %c0_i32_183 = arith.constant 0 : i32
    %565 = arith.cmpi sgt, %564, %c0_i32_183 : i32
    %566 = arith.index_cast %518 : i32 to index
    %c0_184 = arith.constant 0 : index
    %567 = vector.load %arg1[%566, %c0_184] : memref<8x8xi32, #tpu.memory_space<vmem>>, vector<1x8xi32>
    %568 = vector.shape_cast %567 : vector<1x8xi32> to vector<8xi32>
    %569 = arith.select %565, %568, %562 : vector<8xi32>
    %c6_i32_185 = arith.constant 6 : i32
    %c1_i32_186 = arith.constant 1 : i32
    %570 = arith.addi %c6_i32_185, %c1_i32_186 : i32
    %571 = vector.shape_cast %569 : vector<8xi32> to vector<8x1xi32>
    %572 = vector.broadcast %571 : vector<8x1xi32> to vector<8x128xi32>
    %573 = arith.cmpi eq, %9, %572 : vector<8x128xi32>
    %574 = arith.extui %573 : vector<8x128xi1> to vector<8x128xi32>
    %575 = arith.sitofp %574 : vector<8x128xi32> to vector<8x128xf32>
    %576 = arith.truncf %575 : vector<8x128xf32> to vector<8x128xbf16>
    %c0_187 = arith.constant 0 : index
    %c0_188 = arith.constant 0 : index
    %577 = vector.load %arg5[%c0_187, %c0_188] : memref<128x512xbf16, #tpu.memory_space<vmem>>, vector<128x512xbf16>
    %cst_189 = arith.constant dense<0.000000e+00> : vector<8x512xf32>
    %578 = tpu.matmul %576, %577, %cst_189 {dimension_numbers = #tpu.dot_dimension_numbers<[1], [0], [0], [1], [0, 0, 1, 1], [], []>} : vector<8x128xbf16>, vector<128x512xbf16>, vector<8x512xf32> -> vector<8x512xf32>
    %579 = arith.truncf %547 : vector<8x128xf32> to vector<8x128xbf16>
    %c0_190 = arith.constant 0 : index
    %c0_191 = arith.constant 0 : index
    %580 = vector.load %arg6[%c0_190, %c0_191] : memref<128x512xbf16, #tpu.memory_space<vmem>>, vector<128x512xbf16>
    %cst_192 = arith.constant dense<0.000000e+00> : vector<8x512xf32>
    %581 = tpu.matmul %579, %580, %cst_192 {dimension_numbers = #tpu.dot_dimension_numbers<[1], [0], [0], [1], [0, 0, 1, 1], [], []>} : vector<8x128xbf16>, vector<128x512xbf16>, vector<8x512xf32> -> vector<8x512xf32>
    %582 = arith.addf %578, %581 : vector<8x512xf32>
    %583 = arith.addf %582, %5 : vector<8x512xf32>
    %584 = vector.extract_strided_slice %583 {offsets = [0, 0], sizes = [8, 384], strides = [1, 1]} : vector<8x512xf32> to vector<8x384xf32>
    %585 = arith.negf %584 : vector<8x384xf32>
    %586 = math.exp %585 : vector<8x384xf32>
    %cst_193 = arith.constant 1.000000e+00 : f32
    %587 = vector.broadcast %cst_193 : f32 to vector<8x384xf32>
    %588 = arith.addf %587, %586 : vector<8x384xf32>
    %589 = arith.divf %587, %588 : vector<8x384xf32>
    %590 = vector.extract_strided_slice %589 {offsets = [0, 0], sizes = [8, 128], strides = [1, 1]} : vector<8x384xf32> to vector<8x128xf32>
    %591 = vector.extract_strided_slice %589 {offsets = [0, 128], sizes = [8, 128], strides = [1, 1]} : vector<8x384xf32> to vector<8x128xf32>
    %592 = vector.extract_strided_slice %589 {offsets = [0, 256], sizes = [8, 128], strides = [1, 1]} : vector<8x384xf32> to vector<8x128xf32>
    %593 = vector.extract_strided_slice %583 {offsets = [0, 384], sizes = [8, 128], strides = [1, 1]} : vector<8x512xf32> to vector<8x128xf32>
    %594 = math.tanh %593 : vector<8x128xf32>
    %595 = arith.mulf %591, %545 : vector<8x128xf32>
    %596 = arith.mulf %590, %594 : vector<8x128xf32>
    %597 = arith.addf %595, %596 : vector<8x128xf32>
    %598 = math.tanh %597 : vector<8x128xf32>
    %599 = arith.mulf %592, %598 : vector<8x128xf32>
    %600 = arith.truncf %599 : vector<8x128xf32> to vector<8x128xbf16>
    %c0_194 = arith.constant 0 : index
    %c0_195 = arith.constant 0 : index
    %601 = vector.load %arg8[%c0_194, %c0_195] : memref<128x128xbf16, #tpu.memory_space<vmem>>, vector<128x128xbf16>
    %cst_196 = arith.constant dense<0.000000e+00> : vector<8x128xf32>
    %602 = tpu.matmul %600, %601, %cst_196 {dimension_numbers = #tpu.dot_dimension_numbers<[1], [0], [0], [1], [0, 0, 1, 1], [], []>} : vector<8x128xbf16>, vector<128x128xbf16>, vector<8x128xf32> -> vector<8x128xf32>
    %603 = arith.addf %602, %8 : vector<8x128xf32>
    %604 = arith.index_cast %570 : i32 to index
    %c0_197 = arith.constant 0 : index
    %c0_198 = arith.constant 0 : index
    %605 = vector.load %arg10[%604, %c0_197, %c0_198] : memref<8x8x128xf32, #tpu.memory_space<vmem>>, vector<1x8x128xf32>
    %606 = vector.shape_cast %605 : vector<1x8x128xf32> to vector<8x128xf32>
    %607 = vector.shape_cast %603 : vector<8x128xf32> to vector<1x8x128xf32>
    tpu.vector_store %arg10[%604, %c0_197, %c0_198], %607 {strides = array<i32>} : memref<8x8x128xf32, #tpu.memory_space<vmem>>, vector<1x8x128xf32>,
    %cst_199 = arith.constant dense<0xFF800000> : vector<8xf32>
    %608 = vector.multi_reduction <maximumf>, %603, %cst_199 [1] : vector<8x128xf32> to vector<8xf32>
    %609 = vector.shape_cast %608 : vector<8xf32> to vector<8x1xf32>
    %610 = vector.broadcast %609 : vector<8x1xf32> to vector<8x128xf32>
    %611 = arith.cmpf oeq, %603, %610 : vector<8x128xf32>
    %c128_i32_200 = arith.constant 128 : i32
    %612 = vector.broadcast %c128_i32_200 : i32 to vector<8x128xi32>
    %613 = arith.select %611, %9, %612 : vector<8x128xi1>, vector<8x128xi32>
    %cst_201 = arith.constant dense<2147483647> : vector<8xi32>
    %614 = vector.multi_reduction <minsi>, %613, %cst_201 [1] : vector<8x128xi32> to vector<8xi32>
    %615 = arith.index_cast %570 : i32 to index
    %616 = memref.load %arg0[%615] : memref<8xi32, #tpu.memory_space<smem>>
    %c0_i32_202 = arith.constant 0 : i32
    %617 = arith.cmpi sgt, %616, %c0_i32_202 : i32
    %618 = arith.index_cast %570 : i32 to index
    %c0_203 = arith.constant 0 : index
    %619 = vector.load %arg1[%618, %c0_203] : memref<8x8xi32, #tpu.memory_space<vmem>>, vector<1x8xi32>
    %620 = vector.shape_cast %619 : vector<1x8xi32> to vector<8xi32>
    %621 = arith.select %617, %620, %614 : vector<8xi32>
    %c7_i32_204 = arith.constant 7 : i32
    return
  }
}

</mosaic_0001>

<bundles_post_ra>
// kernel: seq2seq_forward.1
= control target key start
LH: loop header
LB: loop body
LE: loop exit
PB: predicated region body
PF: predicated region fallthrough
CT: control target
= control target key end

     0   :  { %15 = vsyncpa [#allocation4], 0  ;;  %s11272_s0 = inlined_call_operand.vmem [shape: s32[8], index: 0, kind: input, shape index: {}]   ;;  %s11273_s1 = inlined_call_operand.vmem [shape: s32[8,8], index: 1, kind: input, shape index: {}]   ;;  %s11274_s2 = inlined_call_operand.vmem [shape: f32[10,8,512], index: 2, kind: input, shape index: {}]   ;;  %s11275_s3 = inlined_call_operand.vmem [shape: bf16[128,512], index: 3, kind: input, shape index: {}]   ;;  %s11276_s4 = inlined_call_operand.vmem [shape: f32[1,512], index: 4, kind: input, shape index: {}]   ;;  %s11277_s5 = inlined_call_operand.vmem [shape: bf16[128,512], index: 5, kind: input, shape index: {}]   ;;  %s11278_s6 = inlined_call_operand.vmem [shape: bf16[128,512], index: 6, kind: input, shape index: {}]   ;;  %s11279_s7 = inlined_call_operand.vmem [shape: f32[1,512], index: 7, kind: input, shape index: {}]   ;;  %s11280_s8 = inlined_call_operand.vmem [shape: bf16[128,128], index: 8, kind: input, shape index: {}]   ;;  %s11281_s9 = inlined_call_operand.vmem [shape: f32[1,128], index: 9, kind: input, shape index: {}]   ;;  %s11282_s10 = inlined_call_operand.hbm [shape: f32[8,8,128], index: 10, kind: output, shape index: {}]  }
   0x1   :  { %16 = vsyncpa [#allocation3], 0  ;;  %s23_s15 = sshll.u32 %s11272_s0, 4  ;;  %s24_s15 = int_to_ptr.vmem [resolvable:$true] %s23_s15 }
   0x2   :  { %s8240_s16 = scalar_lea.vmem %s24_s15, 16  ;;  %p8245_p1 = scmp.lt.s32.totalorder %s24_s15, %s24_s15 }
   0x3   :  { %p8241_p0 = scmp.ne.s32.totalorder %s24_s15, %s8240_s16  ;;  %p8246_p2 = scmp.lt.s32.totalorder %s8240_s16, %s8240_s16 }
   0x5   :  { %p8247_p3 = por %p8246_p2, %p8245_p1 }
   0x7   :  { %p8248_p4 = pnand %p8247_p3, %p8241_p0 }
   0x9   :  { %8251 = shalt.err (!%p8248_p4)
}
   0xa   :  { %s8278_s17 = smov [#allocation2]  }
   0xb   :  { %26 = dma.vmem_to_smem %s24_s15, 16, %s8278_s17, [#allocation4]  }
   0xc   :  { %8274 = dma.done.wait [#allocation4], 16  }
   0xd   :  { %8275 = vsyncadd [#allocation4], 4294967280 }
   0xe   :  { %48 = sfence }
   0xf   :  { %v8347_v0 = vld [vmem:[%s11275_s3 + $0x4] ss:$16 sps:$4 sm:$0xff]   ;;  %v8352_v1 = vld [vmem:[%s11275_s3] ss:$16 sps:$4 sm:$0xff]   ;;  %v11286_v2 = vmov 0   ;;  %v11288_v33 = vlaneseq  ;;  %v104_v40 = vld [vmem:[%s11274_s2 + $0x8] sm:$0xff] }
  0x10   :  { %331 = vmatprep.mubr.bf16.mxu0 %v11286_v2  ;;  %372 = vmatprep.mubr.bf16.mxu1 %v11286_v2  ;;  %v8360_v3 = vld [vmem:[%s11275_s3 + $0x24] ss:$16 sps:$4 sm:$0xff]   ;;  %v8366_v4 = vld [vmem:[%s11275_s3 + $0x20] ss:$16 sps:$4 sm:$0xff]   ;;  %v8377_v6 = vld [vmem:[%s11275_s3 + $0xc] ss:$16 sps:$4 sm:$0xff]  }
  0x11   :  { %299 = vmatprep.subr.bf16.mxu0 %v8347_v0  ;;  %v8372_v5 = vld [vmem:[%s11275_s3 + $0x44] ss:$16 sps:$4 sm:$0xff]   ;;  %v7436_v7 = vld [vmem:[%s11275_s3 + $0x8] ss:$16 sps:$4 sm:$0xff]   ;;  %v8386_v8 = vld [vmem:[%s11275_s3 + $0x40] ss:$16 sps:$4 sm:$0xff]   ;;  %340 = vmatprep.subr.bf16.mxu1 %v8377_v6 }
  0x12   :  { %300 = vmatpush1.bf16.msra.mxu0 %v8352_v1  ;;  %v8393_v9 = vld [vmem:[%s11275_s3 + $0x64] ss:$16 sps:$4 sm:$0xff]   ;;  %341 = vmatpush1.bf16.msra.mxu1 %v7436_v7  ;;  %v7439_v10 = vld [vmem:[%s11275_s3 + $0x2c] ss:$16 sps:$4 sm:$0xff]   ;;  %v7442_v11 = vld [vmem:[%s11275_s3 + $0x28] ss:$16 sps:$4 sm:$0xff]  }
  0x13   :  { %301 = vmatprep.subr.bf16.mxu0 %v8360_v3  ;;  %342 = vmatprep.subr.bf16.mxu1 %v7439_v10  ;;  %v7435_v12 = vld [vmem:[%s11275_s3 + $0x60] ss:$16 sps:$4 sm:$0xff]   ;;  %v7437_v13 = vld [vmem:[%s11275_s3 + $0x84] ss:$16 sps:$4 sm:$0xff]   ;;  %v7445_v14 = vld [vmem:[%s11275_s3 + $0x4c] ss:$16 sps:$4 sm:$0xff]  }
  0x14   :  { %v7448_v15 = vld [vmem:[%s11275_s3 + $0x48] ss:$16 sps:$4 sm:$0xff]   ;;  %v7451_v16 = vld [vmem:[%s11275_s3 + $0x6c] ss:$16 sps:$4 sm:$0xff]   ;;  %v7441_v17 = vld [vmem:[%s11275_s3 + $0x80] ss:$16 sps:$4 sm:$0xff]  }
  0x15   :  { %v7443_v18 = vld [vmem:[%s11275_s3 + $0xa4] ss:$16 sps:$4 sm:$0xff]   ;;  %v7454_v19 = vld [vmem:[%s11275_s3 + $0x68] ss:$16 sps:$4 sm:$0xff]   ;;  %v7457_v20 = vld [vmem:[%s11275_s3 + $0x8c] ss:$16 sps:$4 sm:$0xff]  }
  0x16   :  { %302 = vmatpush1.bf16.msra.mxu0 %v8366_v4  ;;  %343 = vmatpush1.bf16.msra.mxu1 %v7442_v11  ;;  %v7447_v21 = vld [vmem:[%s11275_s3 + $0xa0] ss:$16 sps:$4 sm:$0xff]   ;;  %v7449_v22 = vld [vmem:[%s11275_s3 + $0xc4] ss:$16 sps:$4 sm:$0xff]   ;;  %v8439_v23 = vld [vmem:[%s11275_s3 + $0x88] ss:$16 sps:$4 sm:$0xff]  }
  0x17   :  { %303 = vmatprep.subr.bf16.mxu0 %v8372_v5  ;;  %344 = vmatprep.subr.bf16.mxu1 %v7445_v14  ;;  %v7453_v24 = vld [vmem:[%s11275_s3 + $0xc0] ss:$16 sps:$4 sm:$0xff]   ;;  %v8447_v25 = vld [vmem:[%s11275_s3 + $0xac] ss:$16 sps:$4 sm:$0xff]   ;;  %v7455_v26 = vld [vmem:[%s11275_s3 + $0xe4] ss:$16 sps:$4 sm:$0xff]  }
  0x18   :  { %v8455_v27 = vld [vmem:[%s11275_s3 + $0xa8] ss:$16 sps:$4 sm:$0xff]   ;;  %v8460_v28 = vld [vmem:[%s11275_s3 + $0xcc] ss:$16 sps:$4 sm:$0xff]   ;;  %v8466_v29 = vld [vmem:[%s11275_s3 + $0xe0] ss:$16 sps:$4 sm:$0xff]  }
  0x19   :  { %v8472_v30 = vld [vmem:[%s11275_s3 + $0xc8] ss:$16 sps:$4 sm:$0xff]   ;;  %v8477_v31 = vld [vmem:[%s11275_s3 + $0xec] ss:$16 sps:$4 sm:$0xff]   ;;  %v8513_v34 = vshrl.u32 %v11288_v33, 7  ;;  %v103_v38 = vld [vmem:[%s11274_s2] sm:$0xff] }
  0x1a   :  { %304 = vmatpush1.bf16.msra.mxu0 %v8386_v8  ;;  %345 = vmatpush1.bf16.msra.mxu1 %v7448_v15  ;;  %v8484_v32 = vld [vmem:[%s11275_s3 + $0xe8] ss:$16 sps:$4 sm:$0xff]   ;;  %v50_v36 = vld [vmem:[%s11276_s4] sm:$0xf]  ;;  %v105_v50 = vld [vmem:[%s11274_s2 + $0x10] sm:$0xff]  ;;  %vm8282_vm2 = vmmov 0  }
  0x1b   :  { %305 = vmatprep.subr.bf16.mxu0 %v8393_v9  ;;  %346 = vmatprep.subr.bf16.mxu1 %v7451_v16  ;;  %v8516_v35 = vsub.s32 0, %v8513_v34  ;;  %v11285_v37 = vsub.s32 1, %v8513_v34  ;;  %v11284_v45 = vsub.s32 2, %v8513_v34  ;;  %v11283_v57 = vsub.s32 3, %v8513_v34  ;;  %v106_v59 = vld [vmem:[%s11274_s2 + $0x18] sm:$0xff]  ;;  %s6725_s17 = sld [smem:[#allocation2 + $0x1]] }
  0x1c   :  { %v9580_v33 = vld [vmem:[%s11277_s5 + $0xe4] ss:$16 sps:$4 sm:$0xff]   ;;  %s6887_s11 = sld [smem:[#allocation2 + $0x3]]  ;;  %s7049_s27 = sld [smem:[#allocation2 + $0x5]] }
  0x1d   :  { %11362 = vst [vmem:[#allocation8_spill] sm:$0xff] %v8516_v35  ;;  %v8526_v39 = vrot.slane %v50_v36, %v8516_v35  ;;  %v8533_v42 = vrot.slane %v50_v36, %v11285_v37  ;;  %v8543_v53 = vrot.slane %v50_v36, %v11284_v45  ;;  %v8552_v63 = vrot.slane %v50_v36, %v11283_v57  ;;  %v8593_v36 = vld [vmem:[%s11275_s3 + $0x28] ss:$16 sps:$4 sm:$0xff]   ;;  %v9556_v57 = vld [vmem:[%s11277_s5 + $0xc4] ss:$16 sps:$4 sm:$0xff]   ;;  %s7130_s23 = sld [smem:[#allocation2 + $0x6]] }
  0x1e   :  { %306 = vmatpush1.bf16.msra.mxu0 %v7435_v12  ;;  %347 = vmatpush1.bf16.msra.mxu1 %v7454_v19  ;;  %v9561_v45 = vld [vmem:[%s11277_s5 + $0xcc] ss:$16 sps:$4 sm:$0xff]   ;;  %v9568_v37 = vld [vmem:[%s11277_s5 + $0xc0] ss:$16 sps:$4 sm:$0xff]  }
  0x1f   :  { %307 = vmatprep.subr.bf16.mxu0 %v7437_v13  ;;  %348 = vmatprep.subr.bf16.mxu1 %v7457_v20  ;;  %11369 = vst [vmem:[#allocation15_spill] sm:$0xff] %v9561_v45 }
  0x21   :  { %p2209_p5 = scmp.gt.s32.totalorder %s6725_s17, 0 }
  0x22   :  { %308 = vmatpush1.bf16.msra.mxu0 %v7441_v17  ;;  %349 = vmatpush1.bf16.msra.mxu1 %v8439_v23  ;;  %p3655_p7 = scmp.gt.s32.totalorder %s6887_s11, 0  ;;  %s6968_s11 = sld [smem:[#allocation2 + $0x4]] }
  0x23   :  { %309 = vmatprep.subr.bf16.mxu0 %v7443_v18  ;;  %350 = vmatprep.subr.bf16.mxu1 %v8447_v25  ;;  %s2211_s18 = scalar_select %p2209_p5, 1, 0 }
  0x24   :  { %s3657_s12 = scalar_select %p3655_p7, 1, 0 }
  0x25   :  { %p5101_p9 = scmp.gt.s32.totalorder %s7049_s27, 0  ;;  %p5824_p10 = scmp.gt.s32.totalorder %s7130_s23, 0 }
  0x26   :  { %310 = vmatpush1.bf16.msra.mxu0 %v7447_v21  ;;  %351 = vmatpush1.bf16.msra.mxu1 %v8455_v27 }
  0x27   :  { %311 = vmatprep.subr.bf16.mxu0 %v7449_v22  ;;  %352 = vmatprep.subr.bf16.mxu1 %v8460_v28  ;;  %s5103_s28 = scalar_select %p5101_p9, 1, 0 }
  0x28   :  { %p4378_p8 = scmp.gt.s32.totalorder %s6968_s11, 0 }
  0x29   :  { %s5826_s4 = scalar_select %p5824_p10, 1, 0 }
  0x2a   :  { %312 = vmatpush1.bf16.msra.mxu0 %v7453_v24  ;;  %353 = vmatpush1.bf16.msra.mxu1 %v8472_v30 }
  0x2b   :  { %313 = vmatprep.subr.bf16.mxu0 %v7455_v26  ;;  %354 = vmatprep.subr.bf16.mxu1 %v8477_v31 }
  0x2e   :  { %314 = vmatpush1.bf16.msra.mxu0 %v8466_v29  ;;  %355 = vmatpush1.bf16.msra.mxu1 %v8484_v32 }
  0x2f   :  { %419 = vmatprep.subr.bf16.mxu0 %v8347_v0  ;;  %460 = vmatprep.subr.bf16.mxu1 %v8377_v6 }
  0x31   :  { %332 = vmatmul.mubr.bf16.vlgmr.msra.gmra.mrb[0].mxu0 %v11286_v2  ;;  %373 = vmatmul.mubr.bf16.vlgmr.msra.gmra.mrb[0].mxu1 %v11286_v2 }
  0x32   :  { %420 = vmatpush1.bf16.msra.mxu0 %v8352_v1  ;;  %451 = vmatprep.mubr.bf16.mxu0 %v11286_v2 }
  0x33   :  { %421 = vmatprep.subr.bf16.mxu0 %v8360_v3  ;;  %461 = vmatpush1.bf16.msra.mxu1 %v7436_v7 }
  0x34   :  { %462 = vmatprep.subr.bf16.mxu1 %v7439_v10  ;;  %492 = vmatprep.mubr.bf16.mxu1 %v11286_v2 }
  0x36   :  { %422 = vmatpush1.bf16.msra.mxu0 %v8366_v4 }
  0x37   :  { %423 = vmatprep.subr.bf16.mxu0 %v8372_v5  ;;  %463 = vmatpush1.bf16.msra.mxu1 %v7442_v11 }
  0x38   :  { %464 = vmatprep.subr.bf16.mxu1 %v7445_v14 }
  0x3a   :  { %424 = vmatpush1.bf16.msra.mxu0 %v8386_v8 }
  0x3b   :  { %425 = vmatprep.subr.bf16.mxu0 %v8393_v9  ;;  %465 = vmatpush1.bf16.msra.mxu1 %v7448_v15 }
  0x3c   :  { %466 = vmatprep.subr.bf16.mxu1 %v7451_v16 }
  0x3e   :  { %426 = vmatpush1.bf16.msra.mxu0 %v7435_v12 }
  0x3f   :  { %427 = vmatprep.subr.bf16.mxu0 %v7437_v13  ;;  %467 = vmatpush1.bf16.msra.mxu1 %v7454_v19 }
  0x40   :  { %468 = vmatprep.subr.bf16.mxu1 %v7457_v20  ;;  %v8561_v20 = vld [vmem:[%s11275_s3] ss:$16 sps:$4 sm:$0xff]  }
  0x42   :  { %428 = vmatpush1.bf16.msra.mxu0 %v7441_v17 }
  0x43   :  { %429 = vmatprep.subr.bf16.mxu0 %v7443_v18  ;;  %469 = vmatpush1.bf16.msra.mxu1 %v8439_v23 }
  0x44   :  { %470 = vmatprep.subr.bf16.mxu1 %v8447_v25 }
  0x46   :  { %430 = vmatpush1.bf16.msra.mxu0 %v7447_v21  ;;  %v8567_v21 = vld [vmem:[%s11275_s3 + $0x8] ss:$16 sps:$4 sm:$0xff]  }
  0x47   :  { %431 = vmatprep.subr.bf16.mxu0 %v7449_v22  ;;  %471 = vmatpush1.bf16.msra.mxu1 %v8455_v27  ;;  %v8573_v22 = vld [vmem:[%s11275_s3 + $0x24] ss:$16 sps:$4 sm:$0xff]  }
  0x48   :  { %472 = vmatprep.subr.bf16.mxu1 %v8460_v28 }
  0x4a   :  { %432 = vmatpush1.bf16.msra.mxu0 %v7453_v24  ;;  %v8579_v24 = vld [vmem:[%s11275_s3 + $0x2c] ss:$16 sps:$4 sm:$0xff]  }
  0x4b   :  { %433 = vmatprep.subr.bf16.mxu0 %v7455_v26  ;;  %473 = vmatpush1.bf16.msra.mxu1 %v8472_v30  ;;  %v8587_v26 = vld [vmem:[%s11275_s3 + $0x20] ss:$16 sps:$4 sm:$0xff]  }
  0x4c   :  { %474 = vmatprep.subr.bf16.mxu1 %v8477_v31 }
  0x4e   :  { %434 = vmatpush1.bf16.msra.mxu0 %v8466_v29 }
  0x4f   :  { %539 = vmatprep.subr.bf16.mxu0 %v8347_v0  ;;  %475 = vmatpush1.bf16.msra.mxu1 %v8484_v32 }
  0x50   :  { %580 = vmatprep.subr.bf16.mxu1 %v8377_v6 }
 0x104   :  { %v333_v41 = vpop.f32.mrb[0].mxu0  ;;  %v374_v54 = vpop.f32.mrb[0].mxu1 }
 0x105   :  { %v381_v43 = vadd.f32 %v333_v41, %v103_v38  ;;  %v335_v44 = vpop.f32.mrb[1].mxu0  ;;  %v383_v56 = vadd.f32 %v374_v54, %v105_v50  ;;  %v376_v58 = vpop.f32.mrb[1].mxu1  ;;  %v8599_v38 = vld [vmem:[%s11275_s3 + $0x44] ss:$16 sps:$4 sm:$0xff]   ;;  %v8611_v41 = vld [vmem:[%s11275_s3 + $0x40] ss:$16 sps:$4 sm:$0xff]  }
 0x106   :  { %v382_v46 = vadd.f32 %v335_v44, %v104_v40  ;;  %v337_v47 = vpop.f32.mrb[2].mxu0  ;;  %v378_v60 = vpop.f32.mrb[2].mxu1  ;;  %v384_v0 = vadd.f32 %v376_v58, %v106_v59  ;;  %v8605_v40 = vld [vmem:[%s11275_s3 + $0x4c] ss:$16 sps:$4 sm:$0xff]   ;;  %v8623_v44 = vld [vmem:[%s11275_s3 + $0x64] ss:$16 sps:$4 sm:$0xff]  }
 0x107   :  { %v385_v48 = vadd.f32 %v381_v43, %v8526_v39  ;;  %v338_v49 = vpop.f32.mrb[3].mxu0  ;;  %v379_v61 = vpop.f32.mrb[3].mxu1  ;;  %v387_v62 = vadd.f32 %v383_v56, %v8543_v53  ;;  %v8617_v43 = vld [vmem:[%s11275_s3 + $0x48] ss:$16 sps:$4 sm:$0xff]   ;;  %v8635_v47 = vld [vmem:[%s11275_s3 + $0x60] ss:$16 sps:$4 sm:$0xff]  }
 0x108   :  { %v386_v51 = vadd.f32 %v382_v46, %v8533_v42  ;;  %v388_v3 = vadd.f32 %v384_v0, %v8552_v63  ;;  %v8629_v46 = vld [vmem:[%s11275_s3 + $0x6c] ss:$16 sps:$4 sm:$0xff]   ;;  %v8647_v49 = vld [vmem:[%s11275_s3 + $0x84] ss:$16 sps:$4 sm:$0xff]   ;;  %v8673_v54 = vld [vmem:[%s11275_s3 + $0xa0] ss:$16 sps:$4 sm:$0xff]  }
 0x109   :  { %v6578_v52 = vmul.f32 -1.442695, %v385_v48  ;;  %v6580_v1 = vmul.f32 -1.442695, %v387_v62  ;;  %v8641_v48 = vld [vmem:[%s11275_s3 + $0x68] ss:$16 sps:$4 sm:$0xff]  }
 0x10a   :  { %v6579_v55 = vmul.f32 -1.442695, %v386_v51  ;;  %v8653_v50 = vld [vmem:[%s11275_s3 + $0x8c] ss:$16 sps:$4 sm:$0xff]   ;;  %v8659_v51 = vld [vmem:[%s11275_s3 + $0x80] ss:$16 sps:$4 sm:$0xff]  }
 0x10b   :  { %7910 = vpow2.f32 %v6578_v52  ;;  %v8666_v52 = vld [vmem:[%s11275_s3 + $0xa4] ss:$16 sps:$4 sm:$0xff]  }
 0x10c   :  { %7912 = vpow2.f32 %v6579_v55 }
 0x10d   :  { %7914 = vpow2.f32 %v6580_v1 }
 0x10e   :  { %7916 = vtanh.f32 %v388_v3 }
 0x115   :  { %v7911_v4 = vpop.eup %7910 }
 0x116   :  { %v7913_v5 = vpop.eup %7912  ;;  %v398_v6 = vadd.f32 1.0, %v7911_v4  ;;  %v6583_v4 = vld [vmem:[%s11274_s2 + $0x30] sm:$0xff] }
 0x117   :  { %v399_v7 = vadd.f32 1.0, %v7913_v5  ;;  %v7915_v8 = vpop.eup %7914 }
 0x118   :  { %7918 = vrcp.f32 %v398_v6  ;;  %v7917_v9 = vpop.eup %7916  ;;  %v400_v11 = vadd.f32 1.0, %v7915_v8 }
 0x119   :  { %7920 = vrcp.f32 %v399_v7 }
 0x11a   :  { %7922 = vrcp.f32 %v400_v11 }
 0x122   :  { %v7919_v10 = vpop.eup %7918 }
 0x123   :  { %v7921_v12 = vpop.eup %7920  ;;  %v409_v13 = vmul.f32 %v7919_v10, %v7917_v9  ;;  %v6584_v9 = vld [vmem:[%s11274_s2 + $0x38] sm:$0xff] }
 0x124   :  { %v408_v14 = vmul.f32 0.0, %v7921_v12  ;;  %v7923_v16 = vpop.eup %7922 }
 0x126   :  { %v8555_v15 = vadd.f32 %v409_v13, %v408_v14 }
 0x128   :  { %7924 = vtanh.f32 %v8555_v15 }
 0x132   :  { %v7925_v17 = vpop.eup %7924 }
 0x133   :  { %v412_v18 = vmul.f32 %v7925_v17, %v7923_v16 }
 0x135   :  { %v418_v19 = vpack.c.bf16 %v412_v18, %v412_v18 }
 0x137   :  { %452 = vmatmul.mubr.bf16.vlgmr.msra.gmra.mrb[4].mxu0 %v418_v19  ;;  %493 = vmatmul.mubr.bf16.vlgmr.msra.gmra.mrb[4].mxu1 %v418_v19 }
 0x138   :  { %540 = vmatpush1.bf16.msra.mxu0 %v8561_v20  ;;  %581 = vmatpush1.bf16.msra.mxu1 %v8567_v21 }
 0x139   :  { %541 = vmatprep.subr.bf16.mxu0 %v8573_v22  ;;  %582 = vmatprep.subr.bf16.mxu1 %v8579_v24 }
 0x13a   :  { %571 = vmatprep.mubr.bf16.mxu0 %v11286_v2  ;;  %612 = vmatprep.mubr.bf16.mxu1 %v11286_v2 }
 0x13c   :  { %542 = vmatpush1.bf16.msra.mxu0 %v8587_v26  ;;  %583 = vmatpush1.bf16.msra.mxu1 %v8593_v36 }
 0x13d   :  { %543 = vmatprep.subr.bf16.mxu0 %v8599_v38  ;;  %584 = vmatprep.subr.bf16.mxu1 %v8605_v40 }
 0x140   :  { %544 = vmatpush1.bf16.msra.mxu0 %v8611_v41  ;;  %585 = vmatpush1.bf16.msra.mxu1 %v8617_v43 }
 0x141   :  { %545 = vmatprep.subr.bf16.mxu0 %v8623_v44  ;;  %586 = vmatprep.subr.bf16.mxu1 %v8629_v46 }
 0x144   :  { %546 = vmatpush1.bf16.msra.mxu0 %v8635_v47  ;;  %587 = vmatpush1.bf16.msra.mxu1 %v8641_v48 }
 0x145   :  { %547 = vmatprep.subr.bf16.mxu0 %v8647_v49  ;;  %588 = vmatprep.subr.bf16.mxu1 %v8653_v50 }
 0x148   :  { %548 = vmatpush1.bf16.msra.mxu0 %v8659_v51  ;;  %589 = vmatpush1.bf16.msra.mxu1 %v8439_v23  ;;  %v8680_v23 = vld [vmem:[%s11275_s3 + $0xc4] ss:$16 sps:$4 sm:$0xff]  }
 0x149   :  { %549 = vmatprep.subr.bf16.mxu0 %v8666_v52  ;;  %590 = vmatprep.subr.bf16.mxu1 %v8447_v25  ;;  %v8687_v25 = vld [vmem:[%s11275_s3 + $0xc0] ss:$16 sps:$4 sm:$0xff]  }
 0x14c   :  { %550 = vmatpush1.bf16.msra.mxu0 %v8673_v54  ;;  %591 = vmatpush1.bf16.msra.mxu1 %v8455_v27  ;;  %v8694_v27 = vld [vmem:[%s11275_s3 + $0xe4] ss:$16 sps:$4 sm:$0xff]  }
 0x14d   :  { %551 = vmatprep.subr.bf16.mxu0 %v8680_v23  ;;  %592 = vmatprep.subr.bf16.mxu1 %v8460_v28  ;;  %v8703_v28 = vld [vmem:[%s11275_s3 + $0x4] ss:$16 sps:$4 sm:$0xff]  }
 0x150   :  { %552 = vmatpush1.bf16.msra.mxu0 %v8687_v25  ;;  %593 = vmatpush1.bf16.msra.mxu1 %v8472_v30  ;;  %v8709_v30 = vld [vmem:[%s11275_s3 + $0xc] ss:$16 sps:$4 sm:$0xff]  }
 0x151   :  { %553 = vmatprep.subr.bf16.mxu0 %v8694_v27  ;;  %594 = vmatprep.subr.bf16.mxu1 %v8477_v31  ;;  %v6582_v31 = vld [vmem:[%s11274_s2 + $0x28] sm:$0xff] }
 0x154   :  { %554 = vmatpush1.bf16.msra.mxu0 %v8466_v29  ;;  %595 = vmatpush1.bf16.msra.mxu1 %v8484_v32  ;;  %v6581_v29 = vld [vmem:[%s11274_s2 + $0x20] sm:$0xff] }
 0x155   :  { %659 = vmatprep.subr.bf16.mxu0 %v8703_v28  ;;  %700 = vmatprep.subr.bf16.mxu1 %v8709_v30 }
 0x20a   :  { %v453_v32 = vpop.f32.mrb[4].mxu0  ;;  %v494_v55 = vpop.f32.mrb[4].mxu1 }
 0x20b   :  { %v501_v56 = vadd.f32 %v6581_v29, %v453_v32  ;;  %v455_v58 = vpop.f32.mrb[5].mxu0  ;;  %v496_v59 = vpop.f32.mrb[5].mxu1  ;;  %v503_v8 = vadd.f32 %v6583_v4, %v494_v55  ;;  %v8775_v4 = vld [vmem:[%s11275_s3 + $0xcc] ss:$16 sps:$4 sm:$0xff]  }
 0x20c   :  { %v502_v60 = vadd.f32 %v6582_v31, %v455_v58  ;;  %v457_v61 = vpop.f32.mrb[6].mxu0  ;;  %v498_v62 = vpop.f32.mrb[6].mxu1  ;;  %v504_v10 = vadd.f32 %v6584_v9, %v496_v59  ;;  %v6588_v9 = vld [vmem:[%s11274_s2 + $0x40] sm:$0xff] }
 0x20d   :  { %v505_v0 = vadd.f32 %v501_v56, %v8526_v39  ;;  %v458_v1 = vpop.f32.mrb[7].mxu0  ;;  %v499_v3 = vpop.f32.mrb[7].mxu1  ;;  %v507_v11 = vadd.f32 %v503_v8, %v8543_v53  ;;  %v8801_v8 = vld [vmem:[%s11275_s3 + $0xe8] ss:$16 sps:$4 sm:$0xff]  }
 0x20e   :  { %v506_v5 = vadd.f32 %v502_v60, %v8533_v42  ;;  %v508_v12 = vadd.f32 %v504_v10, %v8552_v63  ;;  %v8761_v1 = vld [vmem:[%s11275_s3 + $0xac] ss:$16 sps:$4 sm:$0xff]   ;;  %v8768_v3 = vld [vmem:[%s11275_s3 + $0xa8] ss:$16 sps:$4 sm:$0xff]  }
 0x20f   :  { %v6585_v6 = vmul.f32 -1.442695, %v505_v0  ;;  %v6587_v13 = vmul.f32 -1.442695, %v507_v11  ;;  %v6589_v10 = vld [vmem:[%s11274_s2 + $0x48] sm:$0xff] }
 0x210   :  { %v6586_v7 = vmul.f32 -1.442695, %v506_v5  ;;  %v8782_v5 = vld [vmem:[%s11275_s3 + $0xc8] ss:$16 sps:$4 sm:$0xff]  }
 0x211   :  { %7926 = vpow2.f32 %v6585_v6  ;;  %v8789_v6 = vld [vmem:[%s11275_s3 + $0xec] ss:$16 sps:$4 sm:$0xff]  }
 0x212   :  { %7928 = vpow2.f32 %v6586_v7  ;;  %v8795_v7 = vld [vmem:[%s11275_s3 + $0xe0] ss:$16 sps:$4 sm:$0xff]  }
 0x213   :  { %7930 = vtanh.f32 %v508_v12 }
 0x214   :  { %7932 = vpow2.f32 %v6587_v13 }
 0x21b   :  { %v7927_v14 = vpop.eup %7926 }
 0x21c   :  { %v518_v16 = vadd.f32 1.0, %v7927_v14  ;;  %v7929_v17 = vpop.eup %7928 }
 0x21d   :  { %v519_v18 = vadd.f32 1.0, %v7929_v17  ;;  %v7931_v19 = vpop.eup %7930 }
 0x21e   :  { %7934 = vrcp.f32 %v518_v16  ;;  %v7933_v29 = vpop.eup %7932 }
 0x21f   :  { %7936 = vrcp.f32 %v519_v18  ;;  %v520_v56 = vadd.f32 1.0, %v7933_v29 }
 0x221   :  { %7938 = vrcp.f32 %v520_v56 }
 0x228   :  { %v7935_v31 = vpop.eup %7934 }
 0x229   :  { %v529_v32 = vmul.f32 %v7935_v31, %v7931_v19  ;;  %v7937_v55 = vpop.eup %7936 }
 0x22a   :  { %v528_v58 = vmul.f32 %v7937_v55, %v8555_v15  ;;  %v8754_v15 = vld [vmem:[%s11275_s3 + $0x88] ss:$16 sps:$4 sm:$0xff]   ;;  %v6590_v55 = vld [vmem:[%s11274_s2 + $0x50] sm:$0xff] }
 0x22b   :  { %v7939_v60 = vpop.eup %7938 }
 0x22c   :  { %v8729_v59 = vadd.f32 %v529_v32, %v528_v58 }
 0x22e   :  { %7940 = vtanh.f32 %v8729_v59 }
 0x238   :  { %v7941_v61 = vpop.eup %7940 }
 0x239   :  { %v532_v62 = vmul.f32 %v7941_v61, %v7939_v60 }
 0x23b   :  { %v538_v0 = vpack.c.bf16 %v532_v62, %v532_v62  ;;  %v6591_v62 = vld [vmem:[%s11274_s2 + $0x58] sm:$0xff] }
 0x23d   :  { %572 = vmatmul.mubr.bf16.vlgmr.msra.gmra.mrb[8].mxu0 %v538_v0  ;;  %613 = vmatmul.mubr.bf16.vlgmr.msra.gmra.mrb[8].mxu1 %v538_v0 }
 0x23e   :  { %660 = vmatpush1.bf16.msra.mxu0 %v8561_v20  ;;  %701 = vmatpush1.bf16.msra.mxu1 %v8567_v21 }
 0x23f   :  { %661 = vmatprep.subr.bf16.mxu0 %v8573_v22  ;;  %702 = vmatprep.subr.bf16.mxu1 %v8579_v24 }
 0x240   :  { %691 = vmatprep.mubr.bf16.mxu0 %v11286_v2  ;;  %732 = vmatprep.mubr.bf16.mxu1 %v11286_v2 }
 0x242   :  { %662 = vmatpush1.bf16.msra.mxu0 %v8587_v26  ;;  %703 = vmatpush1.bf16.msra.mxu1 %v8593_v36 }
 0x243   :  { %663 = vmatprep.subr.bf16.mxu0 %v8599_v38  ;;  %704 = vmatprep.subr.bf16.mxu1 %v8605_v40 }
 0x246   :  { %664 = vmatpush1.bf16.msra.mxu0 %v8611_v41  ;;  %705 = vmatpush1.bf16.msra.mxu1 %v8617_v43 }
 0x247   :  { %665 = vmatprep.subr.bf16.mxu0 %v8623_v44  ;;  %706 = vmatprep.subr.bf16.mxu1 %v8629_v46 }
 0x24a   :  { %666 = vmatpush1.bf16.msra.mxu0 %v8635_v47  ;;  %707 = vmatpush1.bf16.msra.mxu1 %v8641_v48 }
 0x24b   :  { %667 = vmatprep.subr.bf16.mxu0 %v8647_v49  ;;  %708 = vmatprep.subr.bf16.mxu1 %v8653_v50 }
 0x24e   :  { %668 = vmatpush1.bf16.msra.mxu0 %v8659_v51  ;;  %709 = vmatpush1.bf16.msra.mxu1 %v8754_v15 }
 0x24f   :  { %669 = vmatprep.subr.bf16.mxu0 %v8666_v52  ;;  %710 = vmatprep.subr.bf16.mxu1 %v8761_v1 }
 0x252   :  { %670 = vmatpush1.bf16.msra.mxu0 %v8673_v54  ;;  %711 = vmatpush1.bf16.msra.mxu1 %v8768_v3 }
 0x253   :  { %671 = vmatprep.subr.bf16.mxu0 %v8680_v23  ;;  %712 = vmatprep.subr.bf16.mxu1 %v8775_v4 }
 0x256   :  { %672 = vmatpush1.bf16.msra.mxu0 %v8687_v25  ;;  %713 = vmatpush1.bf16.msra.mxu1 %v8782_v5 }
 0x257   :  { %673 = vmatprep.subr.bf16.mxu0 %v8694_v27  ;;  %714 = vmatprep.subr.bf16.mxu1 %v8789_v6 }
 0x25a   :  { %674 = vmatpush1.bf16.msra.mxu0 %v8795_v7  ;;  %715 = vmatpush1.bf16.msra.mxu1 %v8801_v8 }
 0x25b   :  { %779 = vmatprep.subr.bf16.mxu0 %v8703_v28  ;;  %820 = vmatprep.subr.bf16.mxu1 %v8709_v30 }
 0x310   :  { %v573_v11 = vpop.f32.mrb[8].mxu0  ;;  %v614_v12 = vpop.f32.mrb[8].mxu1 }
 0x311   :  { %v621_v13 = vadd.f32 %v6588_v9, %v573_v11  ;;  %v575_v14 = vpop.f32.mrb[9].mxu0  ;;  %v616_v16 = vpop.f32.mrb[9].mxu1  ;;  %v623_v61 = vadd.f32 %v6590_v55, %v614_v12 }
 0x312   :  { %v622_v17 = vadd.f32 %v6589_v10, %v575_v14  ;;  %v577_v18 = vpop.f32.mrb[10].mxu0  ;;  %v618_v19 = vpop.f32.mrb[10].mxu1  ;;  %v624_v0 = vadd.f32 %v6591_v62, %v616_v16 }
 0x313   :  { %v625_v29 = vadd.f32 %v621_v13, %v8526_v39  ;;  %v578_v31 = vpop.f32.mrb[11].mxu0  ;;  %v619_v32 = vpop.f32.mrb[11].mxu1  ;;  %v627_v9 = vadd.f32 %v623_v61, %v8543_v53 }
 0x314   :  { %v626_v56 = vadd.f32 %v622_v17, %v8533_v42  ;;  %v628_v10 = vadd.f32 %v624_v0, %v8552_v63  ;;  %v6596_v0 = vld [vmem:[%s11274_s2 + $0x68] sm:$0xff] }
 0x315   :  { %v6592_v58 = vmul.f32 -1.442695, %v625_v29  ;;  %v6594_v11 = vmul.f32 -1.442695, %v627_v9 }
 0x316   :  { %v6593_v60 = vmul.f32 -1.442695, %v626_v56 }
 0x317   :  { %7942 = vpow2.f32 %v6592_v58 }
 0x318   :  { %7944 = vpow2.f32 %v6593_v60 }
 0x319   :  { %7946 = vtanh.f32 %v628_v10 }
 0x31a   :  { %7948 = vpow2.f32 %v6594_v11 }
 0x321   :  { %v7943_v13 = vpop.eup %7942 }
 0x322   :  { %v638_v14 = vadd.f32 1.0, %v7943_v13  ;;  %v7945_v18 = vpop.eup %7944 }
 0x323   :  { %v639_v17 = vadd.f32 1.0, %v7945_v18  ;;  %v7947_v12 = vpop.eup %7946 }
 0x324   :  { %7950 = vrcp.f32 %v638_v14  ;;  %v7949_v19 = vpop.eup %7948 }
 0x325   :  { %7952 = vrcp.f32 %v639_v17  ;;  %v640_v55 = vadd.f32 1.0, %v7949_v19 }
 0x327   :  { %7954 = vrcp.f32 %v640_v55 }
 0x32e   :  { %v7951_v29 = vpop.eup %7950 }
 0x32f   :  { %v649_v31 = vmul.f32 %v7951_v29, %v7947_v12  ;;  %v7953_v32 = vpop.eup %7952 }
 0x330   :  { %v648_v16 = vmul.f32 %v7953_v32, %v8729_v59  ;;  %v6595_v59 = vld [vmem:[%s11274_s2 + $0x60] sm:$0xff]  ;;  %v6597_v32 = vld [vmem:[%s11274_s2 + $0x70] sm:$0xff] }
 0x331   :  { %v7955_v58 = vpop.eup %7954 }
 0x332   :  { %v8823_v56 = vadd.f32 %v649_v31, %v648_v16 }
 0x334   :  { %7956 = vtanh.f32 %v8823_v56 }
 0x33e   :  { %v7957_v60 = vpop.eup %7956 }
 0x33f   :  { %v652_v61 = vmul.f32 %v7957_v60, %v7955_v58 }
 0x341   :  { %v658_v62 = vpack.c.bf16 %v652_v61, %v652_v61  ;;  %v6598_v61 = vld [vmem:[%s11274_s2 + $0x78] sm:$0xff] }
 0x343   :  { %692 = vmatmul.mubr.bf16.vlgmr.msra.gmra.mrb[12].mxu0 %v658_v62  ;;  %733 = vmatmul.mubr.bf16.vlgmr.msra.gmra.mrb[12].mxu1 %v658_v62 }
 0x344   :  { %780 = vmatpush1.bf16.msra.mxu0 %v8561_v20  ;;  %821 = vmatpush1.bf16.msra.mxu1 %v8567_v21 }
 0x345   :  { %781 = vmatprep.subr.bf16.mxu0 %v8573_v22  ;;  %822 = vmatprep.subr.bf16.mxu1 %v8579_v24 }
 0x346   :  { %811 = vmatprep.mubr.bf16.mxu0 %v11286_v2  ;;  %852 = vmatprep.mubr.bf16.mxu1 %v11286_v2 }
 0x348   :  { %782 = vmatpush1.bf16.msra.mxu0 %v8587_v26  ;;  %823 = vmatpush1.bf16.msra.mxu1 %v8593_v36 }
 0x349   :  { %783 = vmatprep.subr.bf16.mxu0 %v8599_v38  ;;  %824 = vmatprep.subr.bf16.mxu1 %v8605_v40 }
 0x34c   :  { %784 = vmatpush1.bf16.msra.mxu0 %v8611_v41  ;;  %825 = vmatpush1.bf16.msra.mxu1 %v8617_v43 }
 0x34d   :  { %785 = vmatprep.subr.bf16.mxu0 %v8623_v44  ;;  %826 = vmatprep.subr.bf16.mxu1 %v8629_v46 }
 0x350   :  { %786 = vmatpush1.bf16.msra.mxu0 %v8635_v47  ;;  %827 = vmatpush1.bf16.msra.mxu1 %v8641_v48 }
 0x351   :  { %787 = vmatprep.subr.bf16.mxu0 %v8647_v49  ;;  %828 = vmatprep.subr.bf16.mxu1 %v8653_v50 }
 0x354   :  { %788 = vmatpush1.bf16.msra.mxu0 %v8659_v51  ;;  %829 = vmatpush1.bf16.msra.mxu1 %v8754_v15 }
 0x355   :  { %789 = vmatprep.subr.bf16.mxu0 %v8666_v52  ;;  %830 = vmatprep.subr.bf16.mxu1 %v8761_v1 }
 0x358   :  { %790 = vmatpush1.bf16.msra.mxu0 %v8673_v54  ;;  %831 = vmatpush1.bf16.msra.mxu1 %v8768_v3 }
 0x359   :  { %791 = vmatprep.subr.bf16.mxu0 %v8680_v23  ;;  %832 = vmatprep.subr.bf16.mxu1 %v8775_v4 }
 0x35c   :  { %792 = vmatpush1.bf16.msra.mxu0 %v8687_v25  ;;  %833 = vmatpush1.bf16.msra.mxu1 %v8782_v5 }
 0x35d   :  { %793 = vmatprep.subr.bf16.mxu0 %v8694_v27  ;;  %834 = vmatprep.subr.bf16.mxu1 %v8789_v6 }
 0x360   :  { %794 = vmatpush1.bf16.msra.mxu0 %v8795_v7  ;;  %835 = vmatpush1.bf16.msra.mxu1 %v8801_v8 }
 0x361   :  { %899 = vmatprep.subr.bf16.mxu0 %v8703_v28  ;;  %940 = vmatprep.subr.bf16.mxu1 %v8709_v30 }
 0x416   :  { %v693_v9 = vpop.f32.mrb[12].mxu0  ;;  %v734_v10 = vpop.f32.mrb[12].mxu1 }
 0x417   :  { %v741_v11 = vadd.f32 %v6595_v59, %v693_v9  ;;  %v695_v13 = vpop.f32.mrb[13].mxu0  ;;  %v736_v14 = vpop.f32.mrb[13].mxu1  ;;  %v743_v60 = vadd.f32 %v6597_v32, %v734_v10 }
 0x418   :  { %v742_v18 = vadd.f32 %v6596_v0, %v695_v13  ;;  %v697_v17 = vpop.f32.mrb[14].mxu0  ;;  %v738_v12 = vpop.f32.mrb[14].mxu1  ;;  %v744_v62 = vadd.f32 %v6598_v61, %v736_v14 }
 0x419   :  { %v745_v19 = vadd.f32 %v741_v11, %v8526_v39  ;;  %v698_v29 = vpop.f32.mrb[15].mxu0  ;;  %v739_v31 = vpop.f32.mrb[15].mxu1  ;;  %v747_v59 = vadd.f32 %v743_v60, %v8543_v53 }
 0x41a   :  { %v746_v55 = vadd.f32 %v742_v18, %v8533_v42  ;;  %v748_v0 = vadd.f32 %v744_v62, %v8552_v63  ;;  %v6603_v62 = vld [vmem:[%s11274_s2 + $0x88] sm:$0xff] }
 0x41b   :  { %v6599_v16 = vmul.f32 -1.442695, %v745_v19  ;;  %v6601_v9 = vmul.f32 -1.442695, %v747_v59 }
 0x41c   :  { %v6600_v58 = vmul.f32 -1.442695, %v746_v55 }
 0x41d   :  { %7958 = vpow2.f32 %v6599_v16 }
 0x41e   :  { %7960 = vpow2.f32 %v6600_v58 }
 0x41f   :  { %7962 = vtanh.f32 %v748_v0 }
 0x420   :  { %7964 = vpow2.f32 %v6601_v9 }
 0x427   :  { %v7959_v11 = vpop.eup %7958 }
 0x428   :  { %v758_v13 = vadd.f32 1.0, %v7959_v11  ;;  %v7961_v17 = vpop.eup %7960 }
 0x429   :  { %v759_v18 = vadd.f32 1.0, %v7961_v17  ;;  %v7963_v10 = vpop.eup %7962 }
 0x42a   :  { %7966 = vrcp.f32 %v758_v13  ;;  %v7965_v12 = vpop.eup %7964 }
 0x42b   :  { %7968 = vrcp.f32 %v759_v18  ;;  %v760_v32 = vadd.f32 1.0, %v7965_v12 }
 0x42d   :  { %7970 = vrcp.f32 %v760_v32 }
 0x434   :  { %v7967_v19 = vpop.eup %7966 }
 0x435   :  { %v769_v29 = vmul.f32 %v7967_v19, %v7963_v10  ;;  %v7969_v31 = vpop.eup %7968 }
 0x436   :  { %v768_v14 = vmul.f32 %v7969_v31, %v8823_v56  ;;  %v6602_v56 = vld [vmem:[%s11274_s2 + $0x80] sm:$0xff]  ;;  %v6604_v31 = vld [vmem:[%s11274_s2 + $0x90] sm:$0xff] }
 0x437   :  { %v7971_v16 = vpop.eup %7970 }
 0x438   :  { %v8877_v55 = vadd.f32 %v769_v29, %v768_v14 }
 0x43a   :  { %7972 = vtanh.f32 %v8877_v55 }
 0x444   :  { %v7973_v58 = vpop.eup %7972 }
 0x445   :  { %v772_v60 = vmul.f32 %v7973_v58, %v7971_v16 }
 0x447   :  { %v778_v61 = vpack.c.bf16 %v772_v60, %v772_v60  ;;  %v6605_v60 = vld [vmem:[%s11274_s2 + $0x98] sm:$0xff] }
 0x449   :  { %812 = vmatmul.mubr.bf16.vlgmr.msra.gmra.mrb[16].mxu0 %v778_v61  ;;  %853 = vmatmul.mubr.bf16.vlgmr.msra.gmra.mrb[16].mxu1 %v778_v61 }
 0x44a   :  { %900 = vmatpush1.bf16.msra.mxu0 %v8561_v20  ;;  %941 = vmatpush1.bf16.msra.mxu1 %v8567_v21 }
 0x44b   :  { %901 = vmatprep.subr.bf16.mxu0 %v8573_v22  ;;  %942 = vmatprep.subr.bf16.mxu1 %v8579_v24 }
 0x44c   :  { %931 = vmatprep.mubr.bf16.mxu0 %v11286_v2  ;;  %972 = vmatprep.mubr.bf16.mxu1 %v11286_v2 }
 0x44e   :  { %902 = vmatpush1.bf16.msra.mxu0 %v8587_v26  ;;  %943 = vmatpush1.bf16.msra.mxu1 %v8593_v36 }
 0x44f   :  { %903 = vmatprep.subr.bf16.mxu0 %v8599_v38  ;;  %944 = vmatprep.subr.bf16.mxu1 %v8605_v40 }
 0x452   :  { %904 = vmatpush1.bf16.msra.mxu0 %v8611_v41  ;;  %945 = vmatpush1.bf16.msra.mxu1 %v8617_v43 }
 0x453   :  { %905 = vmatprep.subr.bf16.mxu0 %v8623_v44  ;;  %946 = vmatprep.subr.bf16.mxu1 %v8629_v46 }
 0x456   :  { %906 = vmatpush1.bf16.msra.mxu0 %v8635_v47  ;;  %947 = vmatpush1.bf16.msra.mxu1 %v8641_v48 }
 0x457   :  { %907 = vmatprep.subr.bf16.mxu0 %v8647_v49  ;;  %948 = vmatprep.subr.bf16.mxu1 %v8653_v50 }
 0x45a   :  { %908 = vmatpush1.bf16.msra.mxu0 %v8659_v51  ;;  %949 = vmatpush1.bf16.msra.mxu1 %v8754_v15 }
 0x45b   :  { %909 = vmatprep.subr.bf16.mxu0 %v8666_v52  ;;  %950 = vmatprep.subr.bf16.mxu1 %v8761_v1 }
 0x45e   :  { %910 = vmatpush1.bf16.msra.mxu0 %v8673_v54  ;;  %951 = vmatpush1.bf16.msra.mxu1 %v8768_v3 }
 0x45f   :  { %911 = vmatprep.subr.bf16.mxu0 %v8680_v23  ;;  %952 = vmatprep.subr.bf16.mxu1 %v8775_v4 }
 0x462   :  { %912 = vmatpush1.bf16.msra.mxu0 %v8687_v25  ;;  %953 = vmatpush1.bf16.msra.mxu1 %v8782_v5 }
 0x463   :  { %913 = vmatprep.subr.bf16.mxu0 %v8694_v27  ;;  %954 = vmatprep.subr.bf16.mxu1 %v8789_v6 }
 0x466   :  { %914 = vmatpush1.bf16.msra.mxu0 %v8795_v7  ;;  %955 = vmatpush1.bf16.msra.mxu1 %v8801_v8 }
 0x467   :  { %1019 = vmatprep.subr.bf16.mxu0 %v8703_v28  ;;  %1060 = vmatprep.subr.bf16.mxu1 %v8709_v30 }
 0x51c   :  { %v813_v59 = vpop.f32.mrb[16].mxu0  ;;  %v854_v0 = vpop.f32.mrb[16].mxu1 }
 0x51d   :  { %v861_v9 = vadd.f32 %v6602_v56, %v813_v59  ;;  %v815_v11 = vpop.f32.mrb[17].mxu0  ;;  %v856_v13 = vpop.f32.mrb[17].mxu1  ;;  %v863_v58 = vadd.f32 %v6604_v31, %v854_v0 }
 0x51e   :  { %v862_v17 = vadd.f32 %v6603_v62, %v815_v11  ;;  %v817_v18 = vpop.f32.mrb[18].mxu0  ;;  %v858_v10 = vpop.f32.mrb[18].mxu1  ;;  %v864_v61 = vadd.f32 %v6605_v60, %v856_v13 }
 0x51f   :  { %v865_v12 = vadd.f32 %v861_v9, %v8526_v39  ;;  %v818_v19 = vpop.f32.mrb[19].mxu0  ;;  %v859_v29 = vpop.f32.mrb[19].mxu1  ;;  %v867_v56 = vadd.f32 %v863_v58, %v8543_v53 }
 0x520   :  { %v866_v32 = vadd.f32 %v862_v17, %v8533_v42  ;;  %v868_v62 = vadd.f32 %v864_v61, %v8552_v63  ;;  %v6610_v61 = vld [vmem:[%s11274_s2 + $0xa8] sm:$0xff] }
 0x521   :  { %v6606_v14 = vmul.f32 -1.442695, %v865_v12  ;;  %v6608_v59 = vmul.f32 -1.442695, %v867_v56 }
 0x522   :  { %v6607_v16 = vmul.f32 -1.442695, %v866_v32 }
 0x523   :  { %7974 = vpow2.f32 %v6606_v14 }
 0x524   :  { %7976 = vpow2.f32 %v6607_v16 }
 0x525   :  { %7978 = vtanh.f32 %v868_v62 }
 0x526   :  { %7980 = vpow2.f32 %v6608_v59 }
 0x52d   :  { %v7975_v9 = vpop.eup %7974 }
 0x52e   :  { %v878_v11 = vadd.f32 1.0, %v7975_v9  ;;  %v7977_v18 = vpop.eup %7976 }
 0x52f   :  { %v879_v17 = vadd.f32 1.0, %v7977_v18  ;;  %v7979_v0 = vpop.eup %7978 }
 0x530   :  { %7982 = vrcp.f32 %v878_v11  ;;  %v7981_v10 = vpop.eup %7980 }
 0x531   :  { %7984 = vrcp.f32 %v879_v17  ;;  %v880_v31 = vadd.f32 1.0, %v7981_v10 }
 0x533   :  { %7986 = vrcp.f32 %v880_v31 }
 0x53a   :  { %v7983_v12 = vpop.eup %7982 }
 0x53b   :  { %v889_v19 = vmul.f32 %v7983_v12, %v7979_v0  ;;  %v7985_v29 = vpop.eup %7984 }
 0x53c   :  { %v888_v13 = vmul.f32 %v7985_v29, %v8877_v55  ;;  %v6609_v55 = vld [vmem:[%s11274_s2 + $0xa0] sm:$0xff]  ;;  %v6611_v29 = vld [vmem:[%s11274_s2 + $0xb0] sm:$0xff] }
 0x53d   :  { %v7987_v14 = vpop.eup %7986 }
 0x53e   :  { %v8931_v32 = vadd.f32 %v889_v19, %v888_v13 }
 0x540   :  { %7988 = vtanh.f32 %v8931_v32 }
 0x54a   :  { %v7989_v16 = vpop.eup %7988 }
 0x54b   :  { %v892_v58 = vmul.f32 %v7989_v16, %v7987_v14 }
 0x54d   :  { %v898_v60 = vpack.c.bf16 %v892_v58, %v892_v58  ;;  %v6612_v58 = vld [vmem:[%s11274_s2 + $0xb8] sm:$0xff] }
 0x54f   :  { %932 = vmatmul.mubr.bf16.vlgmr.msra.gmra.mrb[20].mxu0 %v898_v60  ;;  %973 = vmatmul.mubr.bf16.vlgmr.msra.gmra.mrb[20].mxu1 %v898_v60 }
 0x550   :  { %1020 = vmatpush1.bf16.msra.mxu0 %v8561_v20  ;;  %1061 = vmatpush1.bf16.msra.mxu1 %v8567_v21 }
 0x551   :  { %1021 = vmatprep.subr.bf16.mxu0 %v8573_v22  ;;  %1062 = vmatprep.subr.bf16.mxu1 %v8579_v24 }
 0x552   :  { %1051 = vmatprep.mubr.bf16.mxu0 %v11286_v2  ;;  %1092 = vmatprep.mubr.bf16.mxu1 %v11286_v2 }
 0x554   :  { %1022 = vmatpush1.bf16.msra.mxu0 %v8587_v26  ;;  %1063 = vmatpush1.bf16.msra.mxu1 %v8593_v36 }
 0x555   :  { %1023 = vmatprep.subr.bf16.mxu0 %v8599_v38  ;;  %1064 = vmatprep.subr.bf16.mxu1 %v8605_v40 }
 0x558   :  { %1024 = vmatpush1.bf16.msra.mxu0 %v8611_v41  ;;  %1065 = vmatpush1.bf16.msra.mxu1 %v8617_v43 }
 0x559   :  { %1025 = vmatprep.subr.bf16.mxu0 %v8623_v44  ;;  %1066 = vmatprep.subr.bf16.mxu1 %v8629_v46 }
 0x55c   :  { %1026 = vmatpush1.bf16.msra.mxu0 %v8635_v47  ;;  %1067 = vmatpush1.bf16.msra.mxu1 %v8641_v48 }
 0x55d   :  { %1027 = vmatprep.subr.bf16.mxu0 %v8647_v49  ;;  %1068 = vmatprep.subr.bf16.mxu1 %v8653_v50 }
 0x560   :  { %1028 = vmatpush1.bf16.msra.mxu0 %v8659_v51  ;;  %1069 = vmatpush1.bf16.msra.mxu1 %v8754_v15 }
 0x561   :  { %1029 = vmatprep.subr.bf16.mxu0 %v8666_v52  ;;  %1070 = vmatprep.subr.bf16.mxu1 %v8761_v1 }
 0x564   :  { %1030 = vmatpush1.bf16.msra.mxu0 %v8673_v54  ;;  %1071 = vmatpush1.bf16.msra.mxu1 %v8768_v3 }
 0x565   :  { %1031 = vmatprep.subr.bf16.mxu0 %v8680_v23  ;;  %1072 = vmatprep.subr.bf16.mxu1 %v8775_v4 }
 0x568   :  { %1032 = vmatpush1.bf16.msra.mxu0 %v8687_v25  ;;  %1073 = vmatpush1.bf16.msra.mxu1 %v8782_v5 }
 0x569   :  { %1033 = vmatprep.subr.bf16.mxu0 %v8694_v27  ;;  %1074 = vmatprep.subr.bf16.mxu1 %v8789_v6 }
 0x56c   :  { %1034 = vmatpush1.bf16.msra.mxu0 %v8795_v7  ;;  %1075 = vmatpush1.bf16.msra.mxu1 %v8801_v8 }
 0x56d   :  { %1139 = vmatprep.subr.bf16.mxu0 %v8703_v28  ;;  %1180 = vmatprep.subr.bf16.mxu1 %v8709_v30 }
 0x622   :  { %v933_v56 = vpop.f32.mrb[20].mxu0  ;;  %v974_v62 = vpop.f32.mrb[20].mxu1 }
 0x623   :  { %v981_v59 = vadd.f32 %v6609_v55, %v933_v56  ;;  %v935_v9 = vpop.f32.mrb[21].mxu0  ;;  %v976_v11 = vpop.f32.mrb[21].mxu1  ;;  %v983_v16 = vadd.f32 %v6611_v29, %v974_v62 }
 0x624   :  { %v982_v18 = vadd.f32 %v6610_v61, %v935_v9  ;;  %v937_v17 = vpop.f32.mrb[22].mxu0  ;;  %v978_v0 = vpop.f32.mrb[22].mxu1  ;;  %v984_v60 = vadd.f32 %v6612_v58, %v976_v11 }
 0x625   :  { %v985_v10 = vadd.f32 %v981_v59, %v8526_v39  ;;  %v938_v12 = vpop.f32.mrb[23].mxu0  ;;  %v979_v19 = vpop.f32.mrb[23].mxu1  ;;  %v987_v55 = vadd.f32 %v983_v16, %v8543_v53 }
 0x626   :  { %v986_v31 = vadd.f32 %v982_v18, %v8533_v42  ;;  %v988_v61 = vadd.f32 %v984_v60, %v8552_v63  ;;  %v6617_v60 = vld [vmem:[%s11274_s2 + $0xc8] sm:$0xff] }
 0x627   :  { %v6613_v13 = vmul.f32 -1.442695, %v985_v10  ;;  %v6615_v56 = vmul.f32 -1.442695, %v987_v55 }
 0x628   :  { %v6614_v14 = vmul.f32 -1.442695, %v986_v31 }
 0x629   :  { %7990 = vpow2.f32 %v6613_v13 }
 0x62a   :  { %7992 = vpow2.f32 %v6614_v14 }
 0x62b   :  { %7994 = vtanh.f32 %v988_v61 }
 0x62c   :  { %7996 = vpow2.f32 %v6615_v56 }
 0x633   :  { %v7991_v59 = vpop.eup %7990 }
 0x634   :  { %v998_v9 = vadd.f32 1.0, %v7991_v59  ;;  %v7993_v17 = vpop.eup %7992 }
 0x635   :  { %v999_v18 = vadd.f32 1.0, %v7993_v17  ;;  %v7995_v62 = vpop.eup %7994 }
 0x636   :  { %7998 = vrcp.f32 %v998_v9  ;;  %v7997_v0 = vpop.eup %7996 }
 0x637   :  { %8000 = vrcp.f32 %v999_v18  ;;  %v1000_v29 = vadd.f32 1.0, %v7997_v0 }
 0x639   :  { %8002 = vrcp.f32 %v1000_v29 }
 0x640   :  { %v7999_v10 = vpop.eup %7998 }
 0x641   :  { %v1009_v12 = vmul.f32 %v7999_v10, %v7995_v62  ;;  %v8001_v19 = vpop.eup %8000 }
 0x642   :  { %v1008_v11 = vmul.f32 %v8001_v19, %v8931_v32  ;;  %v6616_v32 = vld [vmem:[%s11274_s2 + $0xc0] sm:$0xff]  ;;  %v6618_v19 = vld [vmem:[%s11274_s2 + $0xd0] sm:$0xff] }
 0x643   :  { %v8003_v13 = vpop.eup %8002 }
 0x644   :  { %v8985_v31 = vadd.f32 %v1009_v12, %v1008_v11 }
 0x646   :  { %8004 = vtanh.f32 %v8985_v31 }
 0x650   :  { %v8005_v14 = vpop.eup %8004 }
 0x651   :  { %v1012_v16 = vmul.f32 %v8005_v14, %v8003_v13 }
 0x653   :  { %v1018_v58 = vpack.c.bf16 %v1012_v16, %v1012_v16  ;;  %v6619_v16 = vld [vmem:[%s11274_s2 + $0xd8] sm:$0xff] }
 0x655   :  { %1052 = vmatmul.mubr.bf16.vlgmr.msra.gmra.mrb[24].mxu0 %v1018_v58  ;;  %1093 = vmatmul.mubr.bf16.vlgmr.msra.gmra.mrb[24].mxu1 %v1018_v58 }
 0x656   :  { %1140 = vmatpush1.bf16.msra.mxu0 %v8561_v20  ;;  %1181 = vmatpush1.bf16.msra.mxu1 %v8567_v21 }
 0x657   :  { %1141 = vmatprep.subr.bf16.mxu0 %v8573_v22  ;;  %1182 = vmatprep.subr.bf16.mxu1 %v8579_v24 }
 0x658   :  { %1171 = vmatprep.mubr.bf16.mxu0 %v11286_v2  ;;  %1212 = vmatprep.mubr.bf16.mxu1 %v11286_v2 }
 0x65a   :  { %1142 = vmatpush1.bf16.msra.mxu0 %v8587_v26  ;;  %1183 = vmatpush1.bf16.msra.mxu1 %v8593_v36 }
 0x65b   :  { %1143 = vmatprep.subr.bf16.mxu0 %v8599_v38  ;;  %1184 = vmatprep.subr.bf16.mxu1 %v8605_v40 }
 0x65e   :  { %1144 = vmatpush1.bf16.msra.mxu0 %v8611_v41  ;;  %1185 = vmatpush1.bf16.msra.mxu1 %v8617_v43 }
 0x65f   :  { %1145 = vmatprep.subr.bf16.mxu0 %v8623_v44  ;;  %1186 = vmatprep.subr.bf16.mxu1 %v8629_v46 }
 0x662   :  { %1146 = vmatpush1.bf16.msra.mxu0 %v8635_v47  ;;  %1187 = vmatpush1.bf16.msra.mxu1 %v8641_v48 }
 0x663   :  { %1147 = vmatprep.subr.bf16.mxu0 %v8647_v49  ;;  %1188 = vmatprep.subr.bf16.mxu1 %v8653_v50 }
 0x666   :  { %1148 = vmatpush1.bf16.msra.mxu0 %v8659_v51  ;;  %1189 = vmatpush1.bf16.msra.mxu1 %v8754_v15 }
 0x667   :  { %1149 = vmatprep.subr.bf16.mxu0 %v8666_v52  ;;  %1190 = vmatprep.subr.bf16.mxu1 %v8761_v1 }
 0x66a   :  { %1150 = vmatpush1.bf16.msra.mxu0 %v8673_v54  ;;  %1191 = vmatpush1.bf16.msra.mxu1 %v8768_v3 }
 0x66b   :  { %1151 = vmatprep.subr.bf16.mxu0 %v8680_v23  ;;  %1192 = vmatprep.subr.bf16.mxu1 %v8775_v4 }
 0x66e   :  { %1152 = vmatpush1.bf16.msra.mxu0 %v8687_v25  ;;  %1193 = vmatpush1.bf16.msra.mxu1 %v8782_v5 }
 0x66f   :  { %1153 = vmatprep.subr.bf16.mxu0 %v8694_v27  ;;  %1194 = vmatprep.subr.bf16.mxu1 %v8789_v6 }
 0x672   :  { %1154 = vmatpush1.bf16.msra.mxu0 %v8795_v7  ;;  %1195 = vmatpush1.bf16.msra.mxu1 %v8801_v8 }
 0x673   :  { %1259 = vmatprep.subr.bf16.mxu0 %v8703_v28  ;;  %1300 = vmatprep.subr.bf16.mxu1 %v8709_v30 }
 0x728   :  { %v1053_v55 = vpop.f32.mrb[24].mxu0  ;;  %v1094_v61 = vpop.f32.mrb[24].mxu1 }
 0x729   :  { %v1101_v56 = vadd.f32 %v6616_v32, %v1053_v55  ;;  %v1055_v59 = vpop.f32.mrb[25].mxu0  ;;  %v1096_v9 = vpop.f32.mrb[25].mxu1  ;;  %v1103_v14 = vadd.f32 %v6618_v19, %v1094_v61 }
 0x72a   :  { %v1102_v17 = vadd.f32 %v6617_v60, %v1055_v59  ;;  %v1057_v18 = vpop.f32.mrb[26].mxu0  ;;  %v1098_v62 = vpop.f32.mrb[26].mxu1  ;;  %v1104_v58 = vadd.f32 %v6619_v16, %v1096_v9 }
 0x72b   :  { %v1105_v0 = vadd.f32 %v1101_v56, %v8526_v39  ;;  %v1058_v10 = vpop.f32.mrb[27].mxu0  ;;  %v1099_v12 = vpop.f32.mrb[27].mxu1  ;;  %v1107_v32 = vadd.f32 %v1103_v14, %v8543_v53 }
 0x72c   :  { %v1106_v29 = vadd.f32 %v1102_v17, %v8533_v42  ;;  %v1108_v60 = vadd.f32 %v1104_v58, %v8552_v63 }
 0x72d   :  { %v6620_v11 = vmul.f32 -1.442695, %v1105_v0  ;;  %v6622_v55 = vmul.f32 -1.442695, %v1107_v32 }
 0x72e   :  { %v6621_v13 = vmul.f32 -1.442695, %v1106_v29 }
 0x72f   :  { %8006 = vpow2.f32 %v6620_v11 }
 0x730   :  { %8008 = vpow2.f32 %v6621_v13 }
 0x731   :  { %8010 = vtanh.f32 %v1108_v60 }
 0x732   :  { %8012 = vpow2.f32 %v6622_v55 }
 0x739   :  { %v8007_v56 = vpop.eup %8006 }
 0x73a   :  { %v1118_v59 = vadd.f32 1.0, %v8007_v56  ;;  %v8009_v18 = vpop.eup %8008 }
 0x73b   :  { %v1119_v17 = vadd.f32 1.0, %v8009_v18  ;;  %v8011_v61 = vpop.eup %8010 }
 0x73c   :  { %8014 = vrcp.f32 %v1118_v59  ;;  %v8013_v62 = vpop.eup %8012 }
 0x73d   :  { %8016 = vrcp.f32 %v1119_v17  ;;  %v1120_v19 = vadd.f32 1.0, %v8013_v62 }
 0x73f   :  { %8018 = vrcp.f32 %v1120_v19 }
 0x746   :  { %v8015_v0 = vpop.eup %8014 }
 0x747   :  { %v1129_v10 = vmul.f32 %v8015_v0, %v8011_v61  ;;  %v8017_v12 = vpop.eup %8016 }
 0x748   :  { %v1128_v9 = vmul.f32 %v8017_v12, %v8985_v31 }
 0x749   :  { %v8019_v11 = vpop.eup %8018 }
 0x74a   :  { %v9039_v29 = vadd.f32 %v1129_v10, %v1128_v9  ;;  %v8214_v9 = vld [vmem:[%s11275_s3] ss:$16 sps:$4 sm:$0xff]  }
 0x74c   :  { %8020 = vtanh.f32 %v9039_v29 }
 0x756   :  { %v8021_v13 = vpop.eup %8020 }
 0x757   :  { %v1132_v14 = vmul.f32 %v8021_v13, %v8019_v11  ;;  %v8216_v11 = vld [vmem:[%s11275_s3 + $0x24] ss:$16 sps:$4 sm:$0xff]   ;;  %v8217_v13 = vld [vmem:[%s11275_s3 + $0x2c] ss:$16 sps:$4 sm:$0xff]  }
 0x759   :  { %v1138_v16 = vpack.c.bf16 %v1132_v14, %v1132_v14  ;;  %v8218_v14 = vld [vmem:[%s11275_s3 + $0x20] ss:$16 sps:$4 sm:$0xff]  }
 0x75b   :  { %1172 = vmatmul.mubr.bf16.vlgmr.msra.gmra.mrb[28].mxu0 %v1138_v16  ;;  %1213 = vmatmul.mubr.bf16.vlgmr.msra.gmra.mrb[28].mxu1 %v1138_v16  ;;  %v8219_v16 = vld [vmem:[%s11275_s3 + $0x28] ss:$16 sps:$4 sm:$0xff]  }
 0x75c   :  { %1260 = vmatpush1.bf16.msra.mxu0 %v8561_v20  ;;  %1301 = vmatpush1.bf16.msra.mxu1 %v8567_v21  ;;  %v6623_v20 = vld [vmem:[%s11274_s2 + $0xe0] sm:$0xff]  ;;  %v6624_v21 = vld [vmem:[%s11274_s2 + $0xe8] sm:$0xff] }
 0x75d   :  { %1261 = vmatprep.subr.bf16.mxu0 %v8573_v22  ;;  %1302 = vmatprep.subr.bf16.mxu1 %v8579_v24 }
 0x75e   :  { %1291 = vmatprep.mubr.bf16.mxu0 %v11286_v2  ;;  %1332 = vmatprep.mubr.bf16.mxu1 %v11286_v2 }
 0x760   :  { %1262 = vmatpush1.bf16.msra.mxu0 %v8587_v26  ;;  %1303 = vmatpush1.bf16.msra.mxu1 %v8593_v36 }
 0x761   :  { %1263 = vmatprep.subr.bf16.mxu0 %v8599_v38  ;;  %1304 = vmatprep.subr.bf16.mxu1 %v8605_v40 }
 0x764   :  { %1264 = vmatpush1.bf16.msra.mxu0 %v8611_v41  ;;  %1305 = vmatpush1.bf16.msra.mxu1 %v8617_v43 }
 0x765   :  { %1265 = vmatprep.subr.bf16.mxu0 %v8623_v44  ;;  %1306 = vmatprep.subr.bf16.mxu1 %v8629_v46 }
 0x768   :  { %1266 = vmatpush1.bf16.msra.mxu0 %v8635_v47  ;;  %1307 = vmatpush1.bf16.msra.mxu1 %v8641_v48  ;;  %v6625_v48 = vld [vmem:[%s11274_s2 + $0xf0] sm:$0xff] }
 0x769   :  { %1267 = vmatprep.subr.bf16.mxu0 %v8647_v49  ;;  %1308 = vmatprep.subr.bf16.mxu1 %v8653_v50 }
 0x76c   :  { %1268 = vmatpush1.bf16.msra.mxu0 %v8659_v51  ;;  %1309 = vmatpush1.bf16.msra.mxu1 %v8754_v15 }
 0x76d   :  { %1269 = vmatprep.subr.bf16.mxu0 %v8666_v52  ;;  %1310 = vmatprep.subr.bf16.mxu1 %v8761_v1 }
 0x770   :  { %1270 = vmatpush1.bf16.msra.mxu0 %v8673_v54  ;;  %1311 = vmatpush1.bf16.msra.mxu1 %v8768_v3  ;;  %v6626_v54 = vld [vmem:[%s11274_s2 + $0xf8] sm:$0xff] }
 0x771   :  { %1271 = vmatprep.subr.bf16.mxu0 %v8680_v23  ;;  %1312 = vmatprep.subr.bf16.mxu1 %v8775_v4 }
 0x774   :  { %1272 = vmatpush1.bf16.msra.mxu0 %v8687_v25  ;;  %1313 = vmatpush1.bf16.msra.mxu1 %v8782_v5 }
 0x775   :  { %1273 = vmatprep.subr.bf16.mxu0 %v8694_v27  ;;  %1314 = vmatprep.subr.bf16.mxu1 %v8789_v6 }
 0x778   :  { %1274 = vmatpush1.bf16.msra.mxu0 %v8795_v7  ;;  %1315 = vmatpush1.bf16.msra.mxu1 %v8801_v8 }
 0x779   :  { %1379 = vmatprep.subr.bf16.mxu0 %v8703_v28  ;;  %1420 = vmatprep.subr.bf16.mxu1 %v8709_v30 }
 0x82e   :  { %v1173_v22 = vpop.f32.mrb[28].mxu0  ;;  %v1214_v24 = vpop.f32.mrb[28].mxu1 }
 0x82f   :  { %v1221_v26 = vadd.f32 %v6623_v20, %v1173_v22  ;;  %v1175_v36 = vpop.f32.mrb[29].mxu0  ;;  %v1216_v38 = vpop.f32.mrb[29].mxu1  ;;  %v1223_v52 = vadd.f32 %v6625_v48, %v1214_v24  ;;  %v8220_v20 = vld [vmem:[%s11275_s3 + $0x44] ss:$16 sps:$4 sm:$0xff]   ;;  %v8222_v22 = vld [vmem:[%s11275_s3 + $0x40] ss:$16 sps:$4 sm:$0xff]  }
 0x830   :  { %v1222_v40 = vadd.f32 %v6624_v21, %v1175_v36  ;;  %v1177_v41 = vpop.f32.mrb[30].mxu0  ;;  %v1218_v43 = vpop.f32.mrb[30].mxu1  ;;  %v1224_v23 = vadd.f32 %v6626_v54, %v1216_v38  ;;  %v8221_v21 = vld [vmem:[%s11275_s3 + $0x4c] ss:$16 sps:$4 sm:$0xff]   ;;  %v8223_v24 = vld [vmem:[%s11275_s3 + $0x48] ss:$16 sps:$4 sm:$0xff]  }
 0x831   :  { %v1225_v44 = vadd.f32 %v1221_v26, %v8526_v39  ;;  %v1178_v46 = vpop.f32.mrb[31].mxu0  ;;  %v1219_v47 = vpop.f32.mrb[31].mxu1  ;;  %v1227_v25 = vadd.f32 %v1223_v52, %v8543_v53  ;;  %v8224_v26 = vld [vmem:[%s11275_s3 + $0x64] ss:$16 sps:$4 sm:$0xff]   ;;  %v8225_v36 = vld [vmem:[%s11275_s3 + $0x6c] ss:$16 sps:$4 sm:$0xff]  }
 0x832   :  { %v1226_v49 = vadd.f32 %v1222_v40, %v8533_v42  ;;  %v1228_v27 = vadd.f32 %v1224_v23, %v8552_v63  ;;  %v8226_v38 = vld [vmem:[%s11275_s3 + $0x60] ss:$16 sps:$4 sm:$0xff]   ;;  %v8227_v40 = vld [vmem:[%s11275_s3 + $0x68] ss:$16 sps:$4 sm:$0xff]   ;;  %v8228_v41 = vld [vmem:[%s11275_s3 + $0x84] ss:$16 sps:$4 sm:$0xff]  }
 0x833   :  { %v6627_v50 = vmul.f32 -1.442695, %v1225_v44  ;;  %v6629_v28 = vmul.f32 -1.442695, %v1227_v25  ;;  %v8229_v43 = vld [vmem:[%s11275_s3 + $0x8c] ss:$16 sps:$4 sm:$0xff]  }
 0x834   :  { %v6628_v51 = vmul.f32 -1.442695, %v1226_v49  ;;  %v8230_v44 = vld [vmem:[%s11275_s3 + $0x80] ss:$16 sps:$4 sm:$0xff]   ;;  %v8231_v46 = vld [vmem:[%s11275_s3 + $0xa4] ss:$16 sps:$4 sm:$0xff]  }
 0x835   :  { %8022 = vpow2.f32 %v6627_v50  ;;  %v8232_v47 = vld [vmem:[%s11275_s3 + $0xa0] ss:$16 sps:$4 sm:$0xff]   ;;  %v8233_v48 = vld [vmem:[%s11275_s3 + $0xc4] ss:$16 sps:$4 sm:$0xff]  }
 0x836   :  { %8024 = vpow2.f32 %v6628_v51 }
 0x837   :  { %8026 = vtanh.f32 %v1228_v27 }
 0x838   :  { %8028 = vpow2.f32 %v6629_v28  ;;  %v6632_v28 = vld [vmem:[%s11274_s2 + $0x110] sm:$0xff] }
 0x83f   :  { %v8023_v30 = vpop.eup %8022 }
 0x840   :  { %v1238_v31 = vadd.f32 1.0, %v8023_v30  ;;  %v8025_v58 = vpop.eup %8024 }
 0x841   :  { %v1239_v32 = vadd.f32 1.0, %v8025_v58  ;;  %v8027_v60 = vpop.eup %8026 }
 0x842   :  { %8030 = vrcp.f32 %v1238_v31  ;;  %v8029_v55 = vpop.eup %8028 }
 0x843   :  { %8032 = vrcp.f32 %v1239_v32  ;;  %v1240_v17 = vadd.f32 1.0, %v8029_v55 }
 0x845   :  { %8034 = vrcp.f32 %v1240_v17 }
 0x84c   :  { %v8031_v56 = vpop.eup %8030 }
 0x84d   :  { %v1249_v59 = vmul.f32 %v8031_v56, %v8027_v60  ;;  %v8033_v18 = vpop.eup %8032  ;;  %v6633_v60 = vld [vmem:[%s11274_s2 + $0x118] sm:$0xff] }
 0x84e   :  { %v1248_v61 = vmul.f32 %v8033_v18, %v9039_v29  ;;  %v8215_v29 = vld [vmem:[%s11275_s3 + $0x8] ss:$16 sps:$4 sm:$0xff]  }
 0x84f   :  { %v8035_v0 = vpop.eup %8034 }
 0x850   :  { %v9093_v62 = vadd.f32 %v1249_v59, %v1248_v61 }
 0x852   :  { %8036 = vtanh.f32 %v9093_v62 }
 0x85c   :  { %v8037_v10 = vpop.eup %8036 }
 0x85d   :  { %v1252_v12 = vmul.f32 %v8037_v10, %v8035_v0 }
 0x85f   :  { %v1258_v19 = vpack.c.bf16 %v1252_v12, %v1252_v12 }
 0x861   :  { %1292 = vmatmul.mubr.bf16.vlgmr.msra.gmra.mrb[32].mxu0 %v1258_v19  ;;  %1333 = vmatmul.mubr.bf16.vlgmr.msra.gmra.mrb[32].mxu1 %v1258_v19 }
 0x862   :  { %1380 = vmatpush1.bf16.msra.mxu0 %v8214_v9  ;;  %1421 = vmatpush1.bf16.msra.mxu1 %v8215_v29 }
 0x863   :  { %1381 = vmatprep.subr.bf16.mxu0 %v8216_v11  ;;  %1422 = vmatprep.subr.bf16.mxu1 %v8217_v13 }
 0x864   :  { %1411 = vmatprep.mubr.bf16.mxu0 %v11286_v2  ;;  %1452 = vmatprep.mubr.bf16.mxu1 %v11286_v2 }
 0x866   :  { %1382 = vmatpush1.bf16.msra.mxu0 %v8218_v14  ;;  %1423 = vmatpush1.bf16.msra.mxu1 %v8219_v16 }
 0x867   :  { %1383 = vmatprep.subr.bf16.mxu0 %v8220_v20  ;;  %1424 = vmatprep.subr.bf16.mxu1 %v8221_v21 }
 0x86a   :  { %1384 = vmatpush1.bf16.msra.mxu0 %v8222_v22  ;;  %1425 = vmatpush1.bf16.msra.mxu1 %v8223_v24 }
 0x86b   :  { %1385 = vmatprep.subr.bf16.mxu0 %v8224_v26  ;;  %1426 = vmatprep.subr.bf16.mxu1 %v8225_v36  ;;  %v9200_v26 = vld [vmem:[%s11278_s6 + $0x4] ss:$16 sps:$4 sm:$0xff]   ;;  %v9210_v36 = vld [vmem:[%s11278_s6] ss:$16 sps:$4 sm:$0xff]  }
 0x86e   :  { %1386 = vmatpush1.bf16.msra.mxu0 %v8226_v38  ;;  %1427 = vmatpush1.bf16.msra.mxu1 %v8227_v40  ;;  %v9215_v38 = vld [vmem:[%s11278_s6 + $0x8] ss:$16 sps:$4 sm:$0xff]   ;;  %v9224_v40 = vld [vmem:[%s11278_s6 + $0x24] ss:$16 sps:$4 sm:$0xff]  }
 0x86f   :  { %1387 = vmatprep.subr.bf16.mxu0 %v8228_v41  ;;  %1428 = vmatprep.subr.bf16.mxu1 %v8229_v43  ;;  %v9229_v41 = vld [vmem:[%s11278_s6 + $0x2c] ss:$16 sps:$4 sm:$0xff]   ;;  %v9234_v43 = vld [vmem:[%s11278_s6 + $0x20] ss:$16 sps:$4 sm:$0xff]  }
 0x872   :  { %1388 = vmatpush1.bf16.msra.mxu0 %v8230_v44  ;;  %1429 = vmatpush1.bf16.msra.mxu1 %v8754_v15  ;;  %v8234_v15 = vld [vmem:[%s11275_s3 + $0xc0] ss:$16 sps:$4 sm:$0xff]   ;;  %v9239_v44 = vld [vmem:[%s11278_s6 + $0x28] ss:$16 sps:$4 sm:$0xff]  }
 0x873   :  { %1389 = vmatprep.subr.bf16.mxu0 %v8231_v46  ;;  %1430 = vmatprep.subr.bf16.mxu1 %v8761_v1  ;;  %v8235_v1 = vld [vmem:[%s11275_s3 + $0xe4] ss:$16 sps:$4 sm:$0xff]  }
 0x874   :  { %v9248_v46 = vld [vmem:[%s11278_s6 + $0x44] ss:$16 sps:$4 sm:$0xff]  }
 0x876   :  { %1390 = vmatpush1.bf16.msra.mxu0 %v8232_v47  ;;  %1431 = vmatpush1.bf16.msra.mxu1 %v8768_v3  ;;  %v6644_v3 = vld [vmem:[%s11273_s1] ss:$0 sm:$0xff]  ;;  %v9253_v47 = vld [vmem:[%s11278_s6 + $0x4c] ss:$16 sps:$4 sm:$0xff]  }
 0x877   :  { %1391 = vmatprep.subr.bf16.mxu0 %v8233_v48  ;;  %1432 = vmatprep.subr.bf16.mxu1 %v8775_v4  ;;  %v6630_v4 = vld [vmem:[%s11274_s2 + $0x100] sm:$0xff] }
 0x878   :  { %1500 = vbcast.lane.b32.xlu0 %v6644_v3, 256  ;;  %v9258_v48 = vld [vmem:[%s11278_s6 + $0x40] ss:$16 sps:$4 sm:$0xff]   ;;  %v9277_v3 = vld [vmem:[%s11278_s6 + $0x6c] ss:$16 sps:$4 sm:$0xff]  }
 0x87a   :  { %1392 = vmatpush1.bf16.msra.mxu0 %v8234_v15  ;;  %1433 = vmatpush1.bf16.msra.mxu1 %v8782_v5  ;;  %v6631_v5 = vld [vmem:[%s11274_s2 + $0x108] sm:$0xff] }
 0x87b   :  { %1393 = vmatprep.subr.bf16.mxu0 %v8235_v1  ;;  %1434 = vmatprep.subr.bf16.mxu1 %v8789_v6  ;;  %v9263_v15 = vld [vmem:[%s11278_s6 + $0x48] ss:$16 sps:$4 sm:$0xff]   ;;  %v9272_v1 = vld [vmem:[%s11278_s6 + $0x64] ss:$16 sps:$4 sm:$0xff]  }
 0x87e   :  { %1394 = vmatpush1.bf16.msra.mxu0 %v8795_v7  ;;  %1435 = vmatpush1.bf16.msra.mxu1 %v8801_v8 }
 0x87f   :  { %1731 = vmatprep.subr.bf16.mxu0 %v9200_v26 }
 0x934   :  { %v1293_v49 = vpop.f32.mrb[32].mxu0  ;;  %v1334_v50 = vpop.f32.mrb[32].mxu1 }
 0x935   :  { %v1341_v6 = vadd.f32 %v6630_v4, %v1293_v49  ;;  %v1295_v51 = vpop.f32.mrb[33].mxu0  ;;  %v1336_v7 = vpop.f32.mrb[33].mxu1  ;;  %v1343_v32 = vadd.f32 %v6632_v28, %v1334_v50  ;;  %v9282_v4 = vld [vmem:[%s11278_s6 + $0x60] ss:$16 sps:$4 sm:$0xff]   ;;  %v9296_v49 = vld [vmem:[%s11278_s6 + $0x84] ss:$16 sps:$4 sm:$0xff]  }
 0x936   :  { %v1342_v52 = vadd.f32 %v6631_v5, %v1295_v51  ;;  %v1297_v8 = vpop.f32.mrb[34].mxu0  ;;  %v1338_v54 = vpop.f32.mrb[34].mxu1  ;;  %v1344_v55 = vadd.f32 %v6633_v60, %v1336_v7  ;;  %v9287_v5 = vld [vmem:[%s11278_s6 + $0x68] ss:$16 sps:$4 sm:$0xff]   ;;  %v9301_v50 = vld [vmem:[%s11278_s6 + $0x8c] ss:$16 sps:$4 sm:$0xff]  }
 0x937   :  { %v1345_v23 = vadd.f32 %v1341_v6, %v8526_v39  ;;  %v1298_v25 = vpop.f32.mrb[35].mxu0  ;;  %v1339_v27 = vpop.f32.mrb[35].mxu1  ;;  %v1347_v56 = vadd.f32 %v1343_v32, %v8543_v53  ;;  %v9306_v6 = vld [vmem:[%s11278_s6 + $0x80] ss:$16 sps:$4 sm:$0xff]   ;;  %v9311_v51 = vld [vmem:[%s11278_s6 + $0x88] ss:$16 sps:$4 sm:$0xff]  }
 0x938   :  { %v1346_v30 = vadd.f32 %v1342_v52, %v8533_v42  ;;  %v1348_v59 = vadd.f32 %v1344_v55, %v8552_v63  ;;  %v9320_v7 = vld [vmem:[%s11278_s6 + $0xa0] ss:$16 sps:$4 sm:$0xff]   ;;  %v9325_v52 = vld [vmem:[%s11278_s6 + $0xa4] ss:$16 sps:$4 sm:$0xff]   ;;  %v9330_v8 = vld [vmem:[%s11278_s6 + $0xa8] ss:$16 sps:$4 sm:$0xff]  }
 0x939   :  { %v6634_v31 = vmul.f32 -1.442695, %v1345_v23  ;;  %v6636_v18 = vmul.f32 -1.442695, %v1347_v56  ;;  %v9335_v54 = vld [vmem:[%s11278_s6 + $0xac] ss:$16 sps:$4 sm:$0xff]  }
 0x93a   :  { %v6635_v58 = vmul.f32 -1.442695, %v1346_v30  ;;  %v9340_v23 = vld [vmem:[%s11278_s6 + $0xc4] ss:$16 sps:$4 sm:$0xff]   ;;  %v9346_v25 = vld [vmem:[%s11278_s6 + $0xcc] ss:$16 sps:$4 sm:$0xff]  }
 0x93b   :  { %8038 = vpow2.f32 %v6634_v31  ;;  %v9353_v27 = vld [vmem:[%s11278_s6 + $0xc0] ss:$16 sps:$4 sm:$0xff]   ;;  %v9360_v28 = vld [vmem:[%s11278_s6 + $0xc8] ss:$16 sps:$4 sm:$0xff]   ;;  %v9365_v30 = vld [vmem:[%s11278_s6 + $0xe4] ss:$16 sps:$4 sm:$0xff]  }
 0x93c   :  { %8040 = vpow2.f32 %v6635_v58  ;;  %v9371_v31 = vld [vmem:[%s11278_s6 + $0xec] ss:$16 sps:$4 sm:$0xff]   ;;  %v9377_v58 = vld [vmem:[%s11278_s6 + $0xe0] ss:$16 sps:$4 sm:$0xff]   ;;  %v9384_v32 = vld [vmem:[%s11278_s6 + $0xe8] ss:$16 sps:$4 sm:$0xff]  }
 0x93d   :  { %8042 = vtanh.f32 %v1348_v59  ;;  %v9389_v60 = vld [vmem:[%s11277_s5 + $0x4] ss:$16 sps:$4 sm:$0xff]   ;;  %v9395_v55 = vld [vmem:[%s11277_s5 + $0xc] ss:$16 sps:$4 sm:$0xff]  }
 0x93e   :  { %8044 = vpow2.f32 %v6636_v18  ;;  %v6637_v56 = vld [vmem:[%s11274_s2 + $0x120] sm:$0xff]  ;;  %v6638_v59 = vld [vmem:[%s11274_s2 + $0x128] sm:$0xff] }
 0x945   :  { %v8039_v17 = vpop.eup %8038 }
 0x946   :  { %v1358_v61 = vadd.f32 1.0, %v8039_v17  ;;  %v8041_v0 = vpop.eup %8040 }
 0x947   :  { %v1359_v10 = vadd.f32 1.0, %v8041_v0  ;;  %v8043_v12 = vpop.eup %8042 }
 0x948   :  { %8046 = vrcp.f32 %v1358_v61  ;;  %v8045_v19 = vpop.eup %8044 }
 0x949   :  { %8048 = vrcp.f32 %v1359_v10  ;;  %v1360_v13 = vadd.f32 1.0, %v8045_v19 }
 0x94b   :  { %8050 = vrcp.f32 %v1360_v13 }
 0x952   :  { %v8047_v9 = vpop.eup %8046 }
 0x953   :  { %v1369_v29 = vmul.f32 %v8047_v9, %v8043_v12  ;;  %v8049_v11 = vpop.eup %8048 }
 0x954   :  { %v1368_v14 = vmul.f32 %v8049_v11, %v9093_v62  ;;  %v9205_v62 = vld [vmem:[%s11278_s6 + $0xc] ss:$16 sps:$4 sm:$0xff]  }
 0x955   :  { %v8051_v20 = vpop.eup %8050  ;;  %1772 = vmatprep.subr.bf16.mxu1 %v9205_v62 }
 0x956   :  { %v9192_v16 = vadd.f32 %v1369_v29, %v1368_v14  ;;  %v6639_v14 = vld [vmem:[%s11274_s2 + $0x130] sm:$0xff] }
 0x958   :  { %8052 = vtanh.f32 %v9192_v16 }
 0x962   :  { %v8053_v21 = vpop.eup %8052 }
 0x963   :  { %v1372_v22 = vmul.f32 %v8053_v21, %v8051_v20 }
 0x965   :  { %v1378_v24 = vpack.c.bf16 %v1372_v22, %v1372_v22 }
 0x967   :  { %1412 = vmatmul.mubr.bf16.vlgmr.msra.gmra.mrb[36].mxu0 %v1378_v24  ;;  %1453 = vmatmul.mubr.bf16.vlgmr.msra.gmra.mrb[36].mxu1 %v1378_v24 }
 0x968   :  { %1763 = vmatprep.mubr.bf16.mxu0 %v11286_v2  ;;  %1804 = vmatprep.mubr.bf16.mxu1 %v11286_v2 }
 0x969   :  { %1732 = vmatpush1.bf16.msra.mxu0 %v9210_v36  ;;  %1773 = vmatpush1.bf16.msra.mxu1 %v9215_v38 }
 0x96a   :  { %1733 = vmatprep.subr.bf16.mxu0 %v9224_v40  ;;  %1774 = vmatprep.subr.bf16.mxu1 %v9229_v41 }
 0x96d   :  { %1734 = vmatpush1.bf16.msra.mxu0 %v9234_v43  ;;  %1775 = vmatpush1.bf16.msra.mxu1 %v9239_v44 }
 0x96e   :  { %1735 = vmatprep.subr.bf16.mxu0 %v9248_v46  ;;  %1776 = vmatprep.subr.bf16.mxu1 %v9253_v47 }
 0x971   :  { %1736 = vmatpush1.bf16.msra.mxu0 %v9258_v48  ;;  %1777 = vmatpush1.bf16.msra.mxu1 %v9263_v15 }
 0x972   :  { %1737 = vmatprep.subr.bf16.mxu0 %v9272_v1  ;;  %1778 = vmatprep.subr.bf16.mxu1 %v9277_v3 }
 0x975   :  { %1738 = vmatpush1.bf16.msra.mxu0 %v9282_v4  ;;  %1779 = vmatpush1.bf16.msra.mxu1 %v9287_v5 }
 0x976   :  { %1739 = vmatprep.subr.bf16.mxu0 %v9296_v49  ;;  %1780 = vmatprep.subr.bf16.mxu1 %v9301_v50 }
 0x979   :  { %1740 = vmatpush1.bf16.msra.mxu0 %v9306_v6  ;;  %1781 = vmatpush1.bf16.msra.mxu1 %v9311_v51 }
 0x97a   :  { %1741 = vmatprep.subr.bf16.mxu0 %v9325_v52  ;;  %1782 = vmatprep.subr.bf16.mxu1 %v9335_v54 }
 0x97d   :  { %1742 = vmatpush1.bf16.msra.mxu0 %v9320_v7  ;;  %1783 = vmatpush1.bf16.msra.mxu1 %v9330_v8 }
 0x97e   :  { %1743 = vmatprep.subr.bf16.mxu0 %v9340_v23  ;;  %1784 = vmatprep.subr.bf16.mxu1 %v9346_v25 }
 0x981   :  { %1744 = vmatpush1.bf16.msra.mxu0 %v9353_v27  ;;  %1785 = vmatpush1.bf16.msra.mxu1 %v9360_v28 }
 0x982   :  { %1745 = vmatprep.subr.bf16.mxu0 %v9365_v30  ;;  %1786 = vmatprep.subr.bf16.mxu1 %v9371_v31 }
 0x985   :  { %1746 = vmatpush1.bf16.msra.mxu0 %v9377_v58  ;;  %1787 = vmatpush1.bf16.msra.mxu1 %v9384_v32 }
 0x986   :  { %1973 = vmatprep.subr.bf16.mxu0 %v9389_v60  ;;  %2014 = vmatprep.subr.bf16.mxu1 %v9395_v55 }
 0xa3a   :  { %v1413_v18 = vpop.f32.mrb[36].mxu0  ;;  %v1454_v17 = vpop.f32.mrb[36].mxu1 }
 0xa3b   :  { %v1461_v61 = vadd.f32 %v6637_v56, %v1413_v18  ;;  %v1415_v0 = vpop.f32.mrb[37].mxu0  ;;  %v1456_v10 = vpop.f32.mrb[37].mxu1  ;;  %v1463_v24 = vadd.f32 %v6639_v14, %v1454_v17  ;;  %v6640_v56 = vld [vmem:[%s11274_s2 + $0x138] sm:$0xff] }
 0xa3c   :  { %v1462_v12 = vadd.f32 %v6638_v59, %v1415_v0  ;;  %v1417_v19 = vpop.f32.mrb[38].mxu0  ;;  %v1458_v9 = vpop.f32.mrb[38].mxu1  ;;  %v1464_v59 = vadd.f32 %v6640_v56, %v1456_v10 }
 0xa3d   :  { %v1465_v29 = vadd.f32 %v1461_v61, %v8526_v39  ;;  %v1418_v11 = vpop.f32.mrb[39].mxu0  ;;  %v1459_v13 = vpop.f32.mrb[39].mxu1  ;;  %v1467_v39 = vadd.f32 %v1463_v24, %v8543_v53  ;;  %v9429_v24 = vld [vmem:[%s11277_s5 + $0x8] ss:$16 sps:$4 sm:$0xff]  }
 0xa3e   :  { %v1466_v20 = vadd.f32 %v1462_v12, %v8533_v42  ;;  %v1468_v18 = vadd.f32 %v1464_v59, %v8552_v63  ;;  %v9439_v59 = vld [vmem:[%s11277_s5 + $0x2c] ss:$16 sps:$4 sm:$0xff]  }
 0xa3f   :  { %v6641_v21 = vmul.f32 -1.442695, %v1465_v29  ;;  %v6643_v61 = vmul.f32 -1.442695, %v1467_v39  ;;  %v9446_v39 = vld [vmem:[%s11277_s5 + $0x20] ss:$16 sps:$4 sm:$0xff]  }
 0xa40   :  { %v6642_v22 = vmul.f32 -1.442695, %v1466_v20 }
 0xa41   :  { %8054 = vpow2.f32 %v6641_v21 }
 0xa42   :  { %8056 = vpow2.f32 %v6642_v22  ;;  %v9424_v22 = vld [vmem:[%s11277_s5] ss:$16 sps:$4 sm:$0xff]  }
 0xa43   :  { %8058 = vtanh.f32 %v1468_v18  ;;  %v9451_v18 = vld [vmem:[%s11277_s5 + $0x28] ss:$16 sps:$4 sm:$0xff]  }
 0xa44   :  { %8060 = vpow2.f32 %v6643_v61  ;;  %v9458_v61 = vld [vmem:[%s11277_s5 + $0x44] ss:$16 sps:$4 sm:$0xff]  }
 0xa4b   :  { %v8055_v0 = vpop.eup %8054 }
 0xa4c   :  { %v1478_v19 = vadd.f32 1.0, %v8055_v0  ;;  %v8057_v9 = vpop.eup %8056  ;;  %v9463_v0 = vld [vmem:[%s11277_s5 + $0x4c] ss:$16 sps:$4 sm:$0xff]  }
 0xa4d   :  { %v1479_v42 = vadd.f32 1.0, %v8057_v9  ;;  %v8059_v17 = vpop.eup %8058  ;;  %v9477_v9 = vld [vmem:[%s11277_s5 + $0x48] ss:$16 sps:$4 sm:$0xff]  }
 0xa4e   :  { %8062 = vrcp.f32 %v1478_v19  ;;  %v8061_v12 = vpop.eup %8060  ;;  %v9472_v19 = vld [vmem:[%s11277_s5 + $0x40] ss:$16 sps:$4 sm:$0xff]  }
 0xa4f   :  { %8064 = vrcp.f32 %v1479_v42  ;;  %v1480_v14 = vadd.f32 1.0, %v8061_v12  ;;  %v9484_v42 = vld [vmem:[%s11277_s5 + $0x64] ss:$16 sps:$4 sm:$0xff]   ;;  %v9496_v12 = vld [vmem:[%s11277_s5 + $0x60] ss:$16 sps:$4 sm:$0xff]  }
 0xa51   :  { %8066 = vrcp.f32 %v1480_v14  ;;  %v9520_v14 = vld [vmem:[%s11277_s5 + $0x80] ss:$16 sps:$4 sm:$0xff]  }
 0xa58   :  { %v8063_v29 = vpop.eup %8062 }
 0xa59   :  { %v1489_v11 = vmul.f32 %v8063_v29, %v8059_v17  ;;  %v8065_v13 = vpop.eup %8064  ;;  %v9489_v17 = vld [vmem:[%s11277_s5 + $0x6c] ss:$16 sps:$4 sm:$0xff]   ;;  %v9501_v29 = vld [vmem:[%s11277_s5 + $0x68] ss:$16 sps:$4 sm:$0xff]  }
 0xa5a   :  { %v1488_v10 = vmul.f32 %v8065_v13, %v9192_v16  ;;  %v9434_v16 = vld [vmem:[%s11277_s5 + $0x24] ss:$16 sps:$4 sm:$0xff]   ;;  %11363 = vst [vmem:[#allocation9_spill] sm:$0xff] %v9489_v17  ;;  %11364 = vst [vmem:[#allocation10_spill] sm:$0xff] %v9501_v29  ;;  %v9513_v13 = vld [vmem:[%s11277_s5 + $0x8c] ss:$16 sps:$4 sm:$0xff]  }
 0xa5b   :  { %v8067_v63 = vpop.eup %8066  ;;  %11365 = vst [vmem:[#allocation11_spill] sm:$0xff] %v9513_v13 }
 0xa5c   :  { %v9418_v53 = vadd.f32 %v1489_v11, %v1488_v10  ;;  %v9508_v11 = vld [vmem:[%s11277_s5 + $0x84] ss:$16 sps:$4 sm:$0xff]   ;;  %v9525_v10 = vld [vmem:[%s11277_s5 + $0x88] ss:$16 sps:$4 sm:$0xff]  }
 0xa5d   :  { %11366 = vst [vmem:[#allocation12_spill] sm:$0xff] %v9525_v10 }
 0xa5e   :  { %8068 = vtanh.f32 %v9418_v53 }
 0xa68   :  { %v8069_v20 = vpop.eup %8068 }
 0xa69   :  { %v1492_v21 = vmul.f32 %v8069_v20, %v8067_v63  ;;  %v9532_v63 = vld [vmem:[%s11277_s5 + $0xa4] ss:$16 sps:$4 sm:$0xff]   ;;  %v9537_v20 = vld [vmem:[%s11277_s5 + $0xac] ss:$16 sps:$4 sm:$0xff]  }
 0xa6a   :  { %11367 = vst [vmem:[#allocation13_spill] sm:$0xff] %v9537_v20 }
 0xa6b   :  { %v1538_v56 = vpack.c.bf16 %v1492_v21, %v1492_v21  ;;  %v9544_v21 = vld [vmem:[%s11277_s5 + $0xa0] ss:$16 sps:$4 sm:$0xff]  }
 0xa6d   :  { %1764 = vmatmul.mubr.bf16.vlgmr.msra.gmra.mrb[40].mxu0 %v1538_v56  ;;  %1805 = vmatmul.mubr.bf16.vlgmr.msra.gmra.mrb[40].mxu1 %v1538_v56  ;;  %v9549_v56 = vld [vmem:[%s11277_s5 + $0xa8] ss:$16 sps:$4 sm:$0xff]  }
 0xa6e   :  { %1974 = vmatpush1.bf16.msra.mxu0 %v9424_v22  ;;  %2015 = vmatpush1.bf16.msra.mxu1 %v9429_v24  ;;  %11368 = vst [vmem:[#allocation14_spill] sm:$0xff] %v9549_v56 }
 0xa6f   :  { %1975 = vmatprep.subr.bf16.mxu0 %v9434_v16  ;;  %2016 = vmatprep.subr.bf16.mxu1 %v9439_v59 }
 0xa70   :  { %2005 = vmatprep.mubr.bf16.mxu0 %v11286_v2  ;;  %2046 = vmatprep.mubr.bf16.mxu1 %v11286_v2  ;;  %v9573_v2 = vld [vmem:[%s11277_s5 + $0xc8] ss:$16 sps:$4 sm:$0xff]  }
 0xa71   :  { %11370 = vst [vmem:[#allocation16_spill] sm:$0xff] %v9573_v2 }
 0xa72   :  { %1976 = vmatpush1.bf16.msra.mxu0 %v9446_v39  ;;  %2017 = vmatpush1.bf16.msra.mxu1 %v9451_v18 }
 0xa73   :  { %1977 = vmatprep.subr.bf16.mxu0 %v9458_v61  ;;  %2018 = vmatprep.subr.bf16.mxu1 %v9463_v0 }
 0xa76   :  { %1978 = vmatpush1.bf16.msra.mxu0 %v9472_v19  ;;  %2019 = vmatpush1.bf16.msra.mxu1 %v9477_v9 }
 0xa77   :  { %1979 = vmatprep.subr.bf16.mxu0 %v9484_v42  ;;  %2020 = vmatprep.subr.bf16.mxu1 %v9489_v17 }
 0xa7a   :  { %1980 = vmatpush1.bf16.msra.mxu0 %v9496_v12  ;;  %2021 = vmatpush1.bf16.msra.mxu1 %v9501_v29  ;;  %v9600_v29 = vld [vmem:[%s11277_s5 + $0xe8] ss:$16 sps:$4 sm:$0xff]  }
 0xa7b   :  { %1981 = vmatprep.subr.bf16.mxu0 %v9508_v11  ;;  %2022 = vmatprep.subr.bf16.mxu1 %v9513_v13  ;;  %v1501_v13 = vpop.permute.xlu0 %1500  ;;  %11374 = vst [vmem:[#allocation19_spill] sm:$0xff] %v9600_v29 }
 0xa7e   :  { %1982 = vmatpush1.bf16.msra.mxu0 %v9520_v14  ;;  %2023 = vmatpush1.bf16.msra.mxu1 %v9525_v10 }
 0xa7f   :  { %1983 = vmatprep.subr.bf16.mxu0 %v9532_v63  ;;  %2024 = vmatprep.subr.bf16.mxu1 %v9537_v20  ;;  %v11372_v20 = vlaneseq }
 0xa81   :  { %v9588_v10 = vand.u32 127, %v11372_v20  ;;  %v11296_v20 = vmov 1.0|1.0  }
 0xa82   :  { %1984 = vmatpush1.bf16.msra.mxu0 %v9544_v21  ;;  %2025 = vmatpush1.bf16.msra.mxu1 %v9549_v56  ;;  %v9585_v56 = vld [vmem:[%s11277_s5 + $0xec] ss:$16 sps:$4 sm:$0xff]  }
 0xa83   :  { %1985 = vmatprep.subr.bf16.mxu0 %v9556_v57  ;;  %2026 = vmatprep.subr.bf16.mxu1 %v9561_v45  ;;  %11371 = vst [vmem:[#allocation17_spill] sm:$0xff] %v9585_v56  ;;  %11373 = vst [vmem:[#allocation18_spill] sm:$0xff] %v9588_v10  ;;  %v9595_v45 = vld [vmem:[%s11277_s5 + $0xe0] ss:$16 sps:$4 sm:$0xff]   ;;  %vm1502_vm0 = vcmp.eq.s32.totalorder %v9588_v10, %v1501_v13 }
 0xa84   :  { %vm6710_vm1 = vmpackc.low %vm1502_vm0, %vm1502_vm0  ;;  %v72_v13 = vld [vmem:[%s11279_s7] sm:$0xf]  ;;  %s6806_s7 = sld [smem:[#allocation2 + $0x2]] }
 0xa86   :  { %1986 = vmatpush1.bf16.msra.mxu0 %v9568_v37  ;;  %2027 = vmatpush1.bf16.msra.mxu1 %v9573_v2  ;;  %v11375_v2 = vmov 0  }
 0xa87   :  { %1987 = vmatprep.subr.bf16.mxu0 %v9580_v33  ;;  %2028 = vmatprep.subr.bf16.mxu1 %v9585_v56 }
 0xa8a   :  { %1988 = vmatpush1.bf16.msra.mxu0 %v9595_v45  ;;  %2029 = vmatpush1.bf16.msra.mxu1 %v9600_v29  ;;  %p2932_p6 = scmp.gt.s32.totalorder %s6806_s7, 0 }
 0xa8b   :  { %2454 = vmatprep.subr.bf16.mxu1 %v9200_v26  ;;  %v7566_v26 = vld [vmem:[%s11280_s8] sm:$0xff]  }
 0xa8c   :  { %s2934_s16 = scalar_select %p2932_p6, 1, 0 }
 0xa8d   :  { %6711 = vmatmul.mubr.msk.bf16.vlgmr.msra.gmra.mrb[44].mxu0 %vm6710_vm1, %v11296_v20  ;;  %6713 = vmatmul.mubr.msk.bf16.vlgmr.msra.gmra.mrb[44].mxu1 %vm6710_vm1, %v11296_v20 }
 0xa8e   :  { %2455 = vmatpush1.bf16.msra.mxu1 %v9210_v36  ;;  %2486 = vmatprep.mubr.bf16.mxu1 %v11375_v2  ;;  %v11298_v36 = vmov 0.0  }
 0xa8f   :  { %2456 = vmatprep.subr.bf16.mxu1 %v9224_v40  ;;  %7274 = vmatprep.subr.bf16.mxu0 %v11298_v36  ;;  %1493 = vst [vmem:[#allocation5] sm:$0xff] %v11298_v36  ;;  %v7567_v40 = vld [vmem:[%s11280_s8 + $0x8] sm:$0xff]  }
 0xa90   :  { %7275 = vmatpush3.bf16.msra.mxu0 %v7566_v26  ;;  %7290 = vmatprep.mubr.msk.bf16.mxu0 %vm8282_vm2, %v11298_v36  ;;  %v9667_v26 = vrot.slane %v72_v13, %v8516_v35 }
 0xa91   :  { %7276 = vmatprep.subr.bf16.mxu0 %v11298_v36 }
 0xa92   :  { %2457 = vmatpush1.bf16.msra.mxu1 %v9234_v43  ;;  %v7568_v43 = vld [vmem:[%s11280_s8 + $0x10] sm:$0xff]  }
 0xa93   :  { %2458 = vmatprep.subr.bf16.mxu1 %v9248_v46  ;;  %v7569_v46 = vld [vmem:[%s11280_s8 + $0x18] sm:$0xff]  }
 0xa94   :  { %7277 = vmatpush3.bf16.msra.mxu0 %v7567_v40 }
 0xa95   :  { %7278 = vmatprep.subr.bf16.mxu0 %v11298_v36 }
 0xa96   :  { %2459 = vmatpush1.bf16.msra.mxu1 %v9258_v48  ;;  %v7570_v48 = vld [vmem:[%s11280_s8 + $0x20] sm:$0xff]  }
 0xa97   :  { %2460 = vmatprep.subr.bf16.mxu1 %v9272_v1  ;;  %v7571_v1 = vld [vmem:[%s11280_s8 + $0x28] sm:$0xff]  }
 0xa98   :  { %7279 = vmatpush3.bf16.msra.mxu0 %v7568_v43 }
 0xa99   :  { %7280 = vmatprep.subr.bf16.mxu0 %v11298_v36 }
 0xa9a   :  { %2461 = vmatpush1.bf16.msra.mxu1 %v9282_v4  ;;  %v7572_v4 = vld [vmem:[%s11280_s8 + $0x30] sm:$0xff]  }
 0xa9b   :  { %2462 = vmatprep.subr.bf16.mxu1 %v9296_v49  ;;  %v7573_v49 = vld [vmem:[%s11280_s8 + $0x38] sm:$0xff]  }
 0xa9c   :  { %7281 = vmatpush3.bf16.msra.mxu0 %v7569_v46  ;;  %v11376_v46 = vsub.s32 1, %v8513_v34 }
 0xa9d   :  { %7282 = vmatprep.subr.bf16.mxu0 %v11298_v36 }
 0xa9e   :  { %2463 = vmatpush1.bf16.msra.mxu1 %v9306_v6 }
 0xa9f   :  { %2464 = vmatprep.subr.bf16.mxu1 %v9325_v52 }
 0xaa0   :  { %7283 = vmatpush3.bf16.msra.mxu0 %v7570_v48 }
 0xaa1   :  { %7284 = vmatprep.subr.bf16.mxu0 %v11298_v36 }
 0xaa2   :  { %2465 = vmatpush1.bf16.msra.mxu1 %v9320_v7 }
 0xaa3   :  { %2466 = vmatprep.subr.bf16.mxu1 %v9340_v23 }
 0xaa4   :  { %7285 = vmatpush3.bf16.msra.mxu0 %v7571_v1 }
 0xaa5   :  { %7286 = vmatprep.subr.bf16.mxu0 %v11298_v36 }
 0xaa6   :  { %2467 = vmatpush1.bf16.msra.mxu1 %v9353_v27 }
 0xaa7   :  { %2468 = vmatprep.subr.bf16.mxu1 %v9365_v30 }
 0xaa8   :  { %7287 = vmatpush3.bf16.msra.mxu0 %v7572_v4 }
 0xaa9   :  { %7288 = vmatprep.subr.bf16.mxu0 %v11298_v36 }
 0xaaa   :  { %2469 = vmatpush1.bf16.msra.mxu1 %v9377_v58 }
 0xaab   :  { %2696 = vmatprep.subr.bf16.mxu1 %v9389_v60 }
 0xaac   :  { %7289 = vmatpush3.bf16.msra.mxu0 %v7573_v49 }
 0xaad   :  { %2495 = vmatprep.subr.bf16.mxu0 %v9205_v62  ;;  %v9671_v62 = vrot.slane %v72_v13, %v11376_v46  ;;  %v11377_v46 = vsub.s32 2, %v8513_v34 }
 0xaaf   :  { %v9677_v17 = vrot.slane %v72_v13, %v11377_v46 }
 0xb40   :  { %v1765_v6 = vpop.f32.mrb[40].mxu0  ;;  %v1806_v7 = vpop.f32.mrb[40].mxu1 }
 0xb41   :  { %v1767_v52 = vpop.f32.mrb[41].mxu0  ;;  %v1808_v23 = vpop.f32.mrb[41].mxu1 }
 0xb42   :  { %v1769_v27 = vpop.f32.mrb[42].mxu0  ;;  %v1810_v30 = vpop.f32.mrb[42].mxu1 }
 0xb43   :  { %v1770_v58 = vpop.f32.mrb[43].mxu0  ;;  %v1811_v60 = vpop.f32.mrb[43].mxu1 }
 0xb60   :  { %v2007_v40 = vpop.f32.mrb[44].mxu0  ;;  %v2048_v43 = vpop.f32.mrb[44].mxu1 }
 0xb61   :  { %v2008_v48 = vadd.f32 %v2007_v40, %v1765_v6  ;;  %v2049_v1 = vadd.f32 %v2048_v43, %v1806_v7  ;;  %v2009_v4 = vpop.f32.mrb[45].mxu0  ;;  %v2050_v49 = vpop.f32.mrb[45].mxu1  ;;  %v11378_v6 = vsub.s32 3, %v8513_v34 }
 0xb62   :  { %v2010_v27 = vadd.f32 %v2009_v4, %v1767_v52  ;;  %v2051_v30 = vadd.f32 %v2050_v49, %v1808_v23  ;;  %v2011_v58 = vpop.f32.mrb[46].mxu0  ;;  %v2052_v60 = vpop.f32.mrb[46].mxu1 }
 0xb63   :  { %v2055_v20 = vadd.f32 %v2008_v48, %v9667_v26  ;;  %v2012_v36 = vpop.f32.mrb[47].mxu0  ;;  %v2053_v10 = vpop.f32.mrb[47].mxu1  ;;  %v9681_v7 = vrot.slane %v72_v13, %v11378_v6  ;;  %v2057_v52 = vadd.f32 %v2049_v1, %v9677_v17 }
 0xb64   :  { %v2056_v35 = vadd.f32 %v2010_v27, %v9671_v62 }
 0xb65   :  { %v6714_v29 = vmul.f32 -1.442695, %v2055_v20  ;;  %v2058_v23 = vadd.f32 %v2051_v30, %v9681_v7  ;;  %v6716_v36 = vmul.f32 -1.442695, %v2057_v52  ;;  %v2212_v52 = vstv %s2211_s18 }
 0xb66   :  { %v6715_v56 = vmul.f32 -1.442695, %v2056_v35  ;;  %vm2213_vm5 = vcmp.eq.s32.totalorder %v2212_v52, 1 }
 0xb67   :  { %8070 = vpow2.f32 %v6714_v29 }
 0xb68   :  { %8072 = vpow2.f32 %v6715_v56 }
 0xb69   :  { %8074 = vtanh.f32 %v2058_v23 }
 0xb6a   :  { %8076 = vpow2.f32 %v6716_v36  ;;  %v2210_v36 = vld [vmem:[%s11273_s1 + $0x1] sm:$0x1] }
 0xb71   :  { %v8071_v10 = vpop.eup %8070 }
 0xb72   :  { %v2068_v40 = vadd.f32 1.0, %v8071_v10  ;;  %v8073_v20 = vpop.eup %8072 }
 0xb73   :  { %v2069_v35 = vadd.f32 1.0, %v8073_v20  ;;  %v8075_v29 = vpop.eup %8074  ;;  %v11392_v20 = vld [vmem:[#allocation8_spill] sm:$0xff] }
 0xb74   :  { %8078 = vrcp.f32 %v2068_v40  ;;  %v8077_v43 = vpop.eup %8076 }
 0xb75   :  { %8080 = vrcp.f32 %v2069_v35  ;;  %v2070_v13 = vadd.f32 1.0, %v8077_v43  ;;  %v7574_v43 = vld [vmem:[%s11280_s8] sm:$0xff]  }
 0xb77   :  { %8082 = vrcp.f32 %v2070_v13  ;;  %v9791_v13 = vld [vmem:[%s11278_s6 + $0x24] ss:$16 sps:$4 sm:$0xff]  }
 0xb7e   :  { %v8079_v56 = vpop.eup %8078 }
 0xb7f   :  { %v2079_v48 = vmul.f32 %v8079_v56, %v8075_v29  ;;  %v8081_v4 = vpop.eup %8080  ;;  %v9775_v56 = vld [vmem:[%s11278_s6 + $0x4] ss:$16 sps:$4 sm:$0xff]  }
 0xb80   :  { %v2078_v49 = vmul.f32 %v8081_v4, %v9418_v53  ;;  %v7578_v4 = vld [vmem:[%s11280_s8 + $0x8] sm:$0xff]  }
 0xb81   :  { %v8083_v27 = vpop.eup %8082 }
 0xb82   :  { %v9686_v1 = vadd.f32 %v2079_v48, %v2078_v49  ;;  %v9780_v48 = vld [vmem:[%s11278_s6] ss:$16 sps:$4 sm:$0xff]  }
 0xb83   :  { %v9796_v49 = vld [vmem:[%s11278_s6 + $0x20] ss:$16 sps:$4 sm:$0xff]  }
 0xb84   :  { %8084 = vtanh.f32 %v9686_v1 }
 0xb8e   :  { %v8085_v30 = vpop.eup %8084 }
 0xb8f   :  { %v2082_v58 = vmul.f32 %v8085_v30, %v8083_v27  ;;  %v7582_v27 = vld [vmem:[%s11280_s8 + $0x10] sm:$0xff]  }
 0xb90   :  { %v9807_v30 = vld [vmem:[%s11278_s6 + $0x44] ss:$16 sps:$4 sm:$0xff]  }
 0xb91   :  { %v2083_v60 = vpack.c.bf16 %v2082_v58, %v2082_v58  ;;  %v9812_v58 = vld [vmem:[%s11278_s6 + $0x40] ss:$16 sps:$4 sm:$0xff]  }
 0xb93   :  { %7291 = vmatmul.mubr.bf16.vlgmr.msra.gmra.mrb[48].mxu0 %v2083_v60  ;;  %2487 = vmatmul.mubr.bf16.vlgmr.msra.gmra.mrb[48].mxu1 %v2083_v60 }
 0xb94   :  { %2496 = vmatpush1.bf16.msra.mxu0 %v9215_v38  ;;  %2527 = vmatprep.mubr.bf16.mxu0 %v11375_v2  ;;  %v11379_v38 = vmov 0.0  }
 0xb95   :  { %2497 = vmatprep.subr.bf16.mxu0 %v9229_v41  ;;  %2697 = vmatpush1.bf16.msra.mxu1 %v9424_v22  ;;  %v11384_v41 = vld [vmem:[#allocation13_spill] sm:$0xff] }
 0xb96   :  { %2698 = vmatprep.subr.bf16.mxu1 %v9434_v16  ;;  %2728 = vmatprep.mubr.bf16.mxu1 %v11375_v2 }
 0xb98   :  { %2498 = vmatpush1.bf16.msra.mxu0 %v9239_v44  ;;  %v11385_v44 = vld [vmem:[#allocation14_spill] sm:$0xff] }
 0xb99   :  { %2499 = vmatprep.subr.bf16.mxu0 %v9253_v47  ;;  %2699 = vmatpush1.bf16.msra.mxu1 %v9446_v39  ;;  %v11386_v47 = vld [vmem:[#allocation15_spill] sm:$0xff] }
 0xb9a   :  { %2700 = vmatprep.subr.bf16.mxu1 %v9458_v61 }
 0xb9c   :  { %2500 = vmatpush1.bf16.msra.mxu0 %v9263_v15  ;;  %v11387_v15 = vld [vmem:[#allocation16_spill] sm:$0xff] }
 0xb9d   :  { %2501 = vmatprep.subr.bf16.mxu0 %v9277_v3  ;;  %2701 = vmatpush1.bf16.msra.mxu1 %v9472_v19  ;;  %v11388_v3 = vld [vmem:[#allocation17_spill] sm:$0xff] }
 0xb9e   :  { %2702 = vmatprep.subr.bf16.mxu1 %v9484_v42 }
 0xba0   :  { %2502 = vmatpush1.bf16.msra.mxu0 %v9287_v5  ;;  %v11389_v5 = vld [vmem:[#allocation19_spill] sm:$0xff] }
 0xba1   :  { %2503 = vmatprep.subr.bf16.mxu0 %v9301_v50  ;;  %2703 = vmatpush1.bf16.msra.mxu1 %v9496_v12  ;;  %v9742_v50 = vld [vmem:[%s11281_s9] ss:$0 sm:$0xff] }
 0xba2   :  { %2704 = vmatprep.subr.bf16.mxu1 %v9508_v11 }
 0xba4   :  { %2504 = vmatpush1.bf16.msra.mxu0 %v9311_v51 }
 0xba5   :  { %2505 = vmatprep.subr.bf16.mxu0 %v9335_v54  ;;  %2705 = vmatpush1.bf16.msra.mxu1 %v9520_v14 }
 0xba6   :  { %2706 = vmatprep.subr.bf16.mxu1 %v9532_v63 }
 0xba8   :  { %2506 = vmatpush1.bf16.msra.mxu0 %v9330_v8 }
 0xba9   :  { %2507 = vmatprep.subr.bf16.mxu0 %v9346_v25  ;;  %2707 = vmatpush1.bf16.msra.mxu1 %v9544_v21 }
 0xbaa   :  { %2708 = vmatprep.subr.bf16.mxu1 %v9556_v57  ;;  %v11383_v57 = vld [vmem:[#allocation12_spill] sm:$0xff] }
 0xbac   :  { %2508 = vmatpush1.bf16.msra.mxu0 %v9360_v28 }
 0xbad   :  { %2509 = vmatprep.subr.bf16.mxu0 %v9371_v31  ;;  %2709 = vmatpush1.bf16.msra.mxu1 %v9568_v37  ;;  %v11381_v37 = vld [vmem:[#allocation10_spill] sm:$0xff] }
 0xbae   :  { %2710 = vmatprep.subr.bf16.mxu1 %v9580_v33  ;;  %v11380_v33 = vld [vmem:[#allocation9_spill] sm:$0xff] }
 0xbaf   :  { %11390 = vst [vmem:[#allocation9_spill] sm:$0xff] %v9742_v50 }
 0xbb0   :  { %2510 = vmatpush1.bf16.msra.mxu0 %v9384_v32 }
 0xbb1   :  { %2737 = vmatprep.subr.bf16.mxu0 %v9395_v55  ;;  %2711 = vmatpush1.bf16.msra.mxu1 %v9595_v45  ;;  %v11382_v45 = vld [vmem:[#allocation11_spill] sm:$0xff] }
 0xbb2   :  { %7294 = vmatprep.subr.bf16.mxu1 %v11379_v38 }
 0xbb3   :  { %2528 = vmatmul.mubr.bf16.vlgmr.msra.gmra.mrb[52].mxu0 %v2083_v60  ;;  %v7586_v60 = vld [vmem:[%s11280_s8 + $0x18] sm:$0xff]  }
 0xbb4   :  { %2738 = vmatpush1.bf16.msra.mxu0 %v9429_v24  ;;  %2769 = vmatprep.mubr.bf16.mxu0 %v11375_v2 }
 0xbb5   :  { %2739 = vmatprep.subr.bf16.mxu0 %v9439_v59 }
 0xbb8   :  { %2740 = vmatpush1.bf16.msra.mxu0 %v9451_v18  ;;  %v11391_v18 = vld [vmem:[#allocation18_spill] sm:$0xff] }
 0xbb9   :  { %2741 = vmatprep.subr.bf16.mxu0 %v9463_v0  ;;  %v9756_v46 = vsub.s32 %v11391_v18, %v8513_v34  ;;  %v11393_v34 = vmov 1.0|1.0  }
 0xbbc   :  { %2742 = vmatpush1.bf16.msra.mxu0 %v9477_v9 }
 0xbbd   :  { %2743 = vmatprep.subr.bf16.mxu0 %v11380_v33  ;;  %v9823_v33 = vld [vmem:[%s11278_s6 + $0x64] ss:$16 sps:$4 sm:$0xff]  }
 0xbc0   :  { %2744 = vmatpush1.bf16.msra.mxu0 %v11381_v37  ;;  %v9828_v37 = vld [vmem:[%s11278_s6 + $0x60] ss:$16 sps:$4 sm:$0xff]  }
 0xbc1   :  { %2745 = vmatprep.subr.bf16.mxu0 %v11382_v45  ;;  %v7590_v45 = vld [vmem:[%s11280_s8 + $0x20] sm:$0xff]  }
 0xbc4   :  { %2746 = vmatpush1.bf16.msra.mxu0 %v11383_v57  ;;  %v9839_v57 = vld [vmem:[%s11278_s6 + $0x84] ss:$16 sps:$4 sm:$0xff]  }
 0xbc5   :  { %2747 = vmatprep.subr.bf16.mxu0 %v11384_v41  ;;  %v9844_v41 = vld [vmem:[%s11278_s6 + $0x80] ss:$16 sps:$4 sm:$0xff]  }
 0xbc8   :  { %2748 = vmatpush1.bf16.msra.mxu0 %v11385_v44  ;;  %v7594_v44 = vld [vmem:[%s11280_s8 + $0x28] sm:$0xff]  }
 0xbc9   :  { %2749 = vmatprep.subr.bf16.mxu0 %v11386_v47  ;;  %v9855_v47 = vld [vmem:[%s11278_s6 + $0xa0] ss:$16 sps:$4 sm:$0xff]  }
 0xbcc   :  { %2750 = vmatpush1.bf16.msra.mxu0 %v11387_v15  ;;  %v9860_v15 = vld [vmem:[%s11278_s6 + $0xa4] ss:$16 sps:$4 sm:$0xff]  }
 0xbcd   :  { %2751 = vmatprep.subr.bf16.mxu0 %v11388_v3  ;;  %v9865_v3 = vld [vmem:[%s11278_s6 + $0xc4] ss:$16 sps:$4 sm:$0xff]  }
 0xbd0   :  { %2752 = vmatpush1.bf16.msra.mxu0 %v11389_v5  ;;  %v7598_v5 = vld [vmem:[%s11280_s8 + $0x30] sm:$0xff]  }
 0xbd1   :  { %3177 = vmatprep.subr.bf16.mxu0 %v9775_v56 }
 0xc66   :  { %v2182_v51 = vpop.f32.mrb[48].mxu0  ;;  %v9744_v8 = vpop.f32.mrb[48].mxu1 }
 0xc67   :  { %v2183_v54 = vadd.f32 %v9742_v50, %v2182_v51  ;;  %v7292_v25 = vpop.f32.mrb[49].mxu0  ;;  %v9747_v28 = vpop.f32.mrb[49].mxu1  ;;  %v9876_v51 = vld [vmem:[%s11278_s6 + $0xc0] ss:$16 sps:$4 sm:$0xff]  }
 0xc68   :  { %v2185_v31 = vpop.f32.mrb[50].mxu0  ;;  %v2492_v32 = vpop.f32.mrb[50].mxu1  ;;  %v7602_v25 = vld [vmem:[%s11280_s8 + $0x38] sm:$0xff]  }
 0xc69   :  { %2189 = vst [vmem:[#allocation5 + $0x8] sm:$0xff] %v2183_v54  ;;  %v2493_v55 = vpop.f32.mrb[51].mxu1  ;;  %2190 = vmax.xlane.f32.xlu0 %v2183_v54  ;;  %v7293_v53 = vpop.f32.mrb[51].mxu0  ;;  %v9892_v31 = vld [vmem:[%s11278_s6 + $0xe0] ss:$16 sps:$4 sm:$0xff]  }
 0xc6a   :  { %v9897_v32 = vld [vmem:[%s11278_s6 + $0xc] ss:$16 sps:$4 sm:$0xff]  }
 0xc86   :  { %v9749_v22 = vpop.f32.mrb[52].mxu0 }
 0xc87   :  { %v9751_v24 = vpop.f32.mrb[53].mxu0 }
 0xc88   :  { %v2533_v16 = vpop.f32.mrb[54].mxu0 }
 0xc89   :  { %v2534_v59 = vpop.f32.mrb[55].mxu0 }
 0xcf6   :  { %v2191_v39 = vpop.xlane.xlu0 %2190 }
 0xcf7   :  { %vm2192_vm3 = vcmp.eq.f32.partialorder %v2183_v54, %v2191_v39  ;;  %v9882_v54 = vld [vmem:[%s11278_s6 + $0xe4] ss:$16 sps:$4 sm:$0xff]  }
 0xcf8   :  { %v2193_v61 = vsel %vm2192_vm3, %v11391_v18, 128 }
 0xcf9   :  { %v2195_v0 = vshra.s32 %v2193_v61, 16  ;;  %v2194_v9 = vand.u32 65535, %v2193_v61 }
 0xcfb   :  { %v2197_v19 = vcvt.s32.f32 %v2195_v0  ;;  %v2196_v12 = vcvt.s32.f32 %v2194_v9 }
 0xcfd   :  { %2198 = vmin.xlane.f32.xlu1 %v2197_v19 }
 0xd8a   :  { %v2199_v42 = vpop.xlane.xlu1 %2198 }
 0xd8b   :  { %vm2200_vm4 = vcmp.eq.f32.partialorder %v2197_v19, %v2199_v42  ;;  %v2205_v14 = vcvt.f32.s32 %v2199_v42 }
 0xd8c   :  { %v2201_v11 = vsel %vm2200_vm4, %v2196_v12, inf }
 0xd8d   :  { %2202 = vmin.xlane.f32.xlu1 %v2201_v11  ;;  %v2206_v21 = vshll.u32 %v2205_v14, 16 }
 0xe1a   :  { %v2203_v63 = vpop.xlane.xlu1 %2202 }
 0xe1b   :  { %v2204_v6 = vcvt.f32.s32 %v2203_v63 }
 0xe1d   :  { %v2207_v23 = vadd.s32 %v2206_v21, %v2204_v6 }
 0xe1f   :  { %v2217_v10 = vrot.slane %v2207_v23, %v9756_v46 }
 0xe21   :  { %v2218_v40 = vsel %vm2213_vm5, %v2210_v36, %v2217_v10 }
 0xe22   :  { %v2222_v35 = vrot.slane %v2218_v40, %v11392_v20 }
 0xe24   :  { %2224 = vbcast.lane.b32.xlu1 %v2222_v35, 256 }
 0xe96   :  { %v2225_v29 = vpop.permute.xlu1 %2224 }
 0xe97   :  { %vm2226_vm6 = vcmp.eq.s32.totalorder %v11391_v18, %v2225_v29 }
 0xe98   :  { %vm6791_vm7 = vmpackc.low %vm2226_vm6, %vm2226_vm6 }
 0xe99   :  { %6792 = vmatmul.mubr.msk.bf16.vlgmr.msra.gmra.mrb[52].mxu1 %vm6791_vm7, %v11393_v34  ;;  %6794 = vmatmul.mubr.msk.bf16.vlgmr.msra.gmra.mrb[56].mxu0 %vm6791_vm7, %v11393_v34 }
 0xe9a   :  { %7310 = vmatprep.mubr.msk.bf16.mxu1 %vm8282_vm2, %v11379_v38  ;;  %3209 = vmatprep.mubr.bf16.mxu0 %v11375_v2 }
 0xe9b   :  { %7295 = vmatpush3.bf16.msra.mxu1 %v7574_v43  ;;  %3178 = vmatpush1.bf16.msra.mxu0 %v9780_v48 }
 0xe9c   :  { %7296 = vmatprep.subr.bf16.mxu1 %v11379_v38  ;;  %3179 = vmatprep.subr.bf16.mxu0 %v9791_v13 }
 0xe9f   :  { %7297 = vmatpush3.bf16.msra.mxu1 %v7578_v4  ;;  %3180 = vmatpush1.bf16.msra.mxu0 %v9796_v49 }
 0xea0   :  { %7298 = vmatprep.subr.bf16.mxu1 %v11379_v38  ;;  %3181 = vmatprep.subr.bf16.mxu0 %v9807_v30 }
 0xea3   :  { %7299 = vmatpush3.bf16.msra.mxu1 %v7582_v27  ;;  %3182 = vmatpush1.bf16.msra.mxu0 %v9812_v58 }
 0xea4   :  { %7300 = vmatprep.subr.bf16.mxu1 %v11379_v38  ;;  %3183 = vmatprep.subr.bf16.mxu0 %v9823_v33 }
 0xea7   :  { %7301 = vmatpush3.bf16.msra.mxu1 %v7586_v60  ;;  %3184 = vmatpush1.bf16.msra.mxu0 %v9828_v37 }
 0xea8   :  { %7302 = vmatprep.subr.bf16.mxu1 %v11379_v38  ;;  %3185 = vmatprep.subr.bf16.mxu0 %v9839_v57 }
 0xeab   :  { %7303 = vmatpush3.bf16.msra.mxu1 %v7590_v45  ;;  %3186 = vmatpush1.bf16.msra.mxu0 %v9844_v41 }
 0xeac   :  { %7304 = vmatprep.subr.bf16.mxu1 %v11379_v38  ;;  %3187 = vmatprep.subr.bf16.mxu0 %v9860_v15 }
 0xeaf   :  { %7305 = vmatpush3.bf16.msra.mxu1 %v7594_v44  ;;  %3188 = vmatpush1.bf16.msra.mxu0 %v9855_v47 }
 0xeb0   :  { %7306 = vmatprep.subr.bf16.mxu1 %v11379_v38  ;;  %3189 = vmatprep.subr.bf16.mxu0 %v9865_v3 }
 0xeb3   :  { %7307 = vmatpush3.bf16.msra.mxu1 %v7598_v5  ;;  %3190 = vmatpush1.bf16.msra.mxu0 %v9876_v51 }
 0xeb4   :  { %7308 = vmatprep.subr.bf16.mxu1 %v11379_v38  ;;  %3191 = vmatprep.subr.bf16.mxu0 %v9882_v54 }
 0xeb7   :  { %7309 = vmatpush3.bf16.msra.mxu1 %v7602_v25  ;;  %3192 = vmatpush1.bf16.msra.mxu0 %v9892_v31  ;;  %v9917_v25 = vld [vmem:[%s11278_s6 + $0x8] ss:$16 sps:$4 sm:$0xff]  }
 0xeb8   :  { %3218 = vmatprep.subr.bf16.mxu1 %v9897_v32 }
 0xf6c   :  { %v2730_v55 = vpop.f32.mrb[52].mxu1  ;;  %v2771_v53 = vpop.f32.mrb[56].mxu0 }
 0xf6d   :  { %v2731_v16 = vadd.f32 %v2730_v55, %v9744_v8  ;;  %v2772_v59 = vadd.f32 %v2771_v53, %v9749_v22  ;;  %v2732_v39 = vpop.f32.mrb[53].mxu1  ;;  %v2773_v61 = vpop.f32.mrb[57].mxu0  ;;  %v9922_v53 = vld [vmem:[%s11278_s6 + $0x2c] ss:$16 sps:$4 sm:$0xff]  }
 0xf6e   :  { %v2733_v0 = vadd.f32 %v2732_v39, %v9747_v28  ;;  %v2774_v19 = vadd.f32 %v2773_v61, %v9751_v24  ;;  %v2734_v9 = vpop.f32.mrb[54].mxu1  ;;  %v2775_v42 = vpop.f32.mrb[58].mxu0  ;;  %v9948_v39 = vld [vmem:[%s11278_s6 + $0x6c] ss:$16 sps:$4 sm:$0xff]   ;;  %v9954_v61 = vld [vmem:[%s11278_s6 + $0x68] ss:$16 sps:$4 sm:$0xff]  }
 0xf6f   :  { %v2778_v12 = vadd.f32 %v2731_v16, %v9667_v26  ;;  %v2735_v11 = vpop.f32.mrb[55].mxu1  ;;  %v2776_v14 = vpop.f32.mrb[59].mxu0  ;;  %v2780_v8 = vadd.f32 %v2772_v59, %v9677_v17  ;;  %v9935_v16 = vld [vmem:[%s11278_s6 + $0x4c] ss:$16 sps:$4 sm:$0xff]   ;;  %v9942_v59 = vld [vmem:[%s11278_s6 + $0x48] ss:$16 sps:$4 sm:$0xff]  }
 0xf70   :  { %v2779_v63 = vadd.f32 %v2733_v0, %v9671_v62  ;;  %v2781_v22 = vadd.f32 %v2774_v19, %v9681_v7  ;;  %v9960_v0 = vld [vmem:[%s11278_s6 + $0x8c] ss:$16 sps:$4 sm:$0xff]   ;;  %v9966_v19 = vld [vmem:[%s11278_s6 + $0x88] ss:$16 sps:$4 sm:$0xff]  }
 0xf71   :  { %v6795_v21 = vmul.f32 -1.442695, %v2778_v12  ;;  %v6797_v52 = vmul.f32 -1.442695, %v2780_v8  ;;  %v9972_v9 = vld [vmem:[%s11278_s6 + $0xac] ss:$16 sps:$4 sm:$0xff]  }
 0xf72   :  { %v6796_v6 = vmul.f32 -1.442695, %v2779_v63  ;;  %v9978_v42 = vld [vmem:[%s11278_s6 + $0xa8] ss:$16 sps:$4 sm:$0xff]   ;;  %v9984_v12 = vld [vmem:[%s11278_s6 + $0xcc] ss:$16 sps:$4 sm:$0xff]  }
 0xf73   :  { %8086 = vpow2.f32 %v6795_v21  ;;  %11394 = vst [vmem:[#allocation10_spill] sm:$0xff] %v9978_v42  ;;  %11395 = vst [vmem:[#allocation11_spill] sm:$0xff] %v9984_v12  ;;  %v9990_v11 = vld [vmem:[%s11278_s6 + $0xc8] ss:$16 sps:$4 sm:$0xff]   ;;  %v9996_v14 = vld [vmem:[%s11278_s6 + $0xec] ss:$16 sps:$4 sm:$0xff]  }
 0xf74   :  { %8088 = vpow2.f32 %v6796_v6  ;;  %11396 = vst [vmem:[#allocation12_spill] sm:$0xff] %v9990_v11  ;;  %11397 = vst [vmem:[#allocation13_spill] sm:$0xff] %v9996_v14  ;;  %v10002_v63 = vld [vmem:[%s11278_s6 + $0xe8] ss:$16 sps:$4 sm:$0xff]  }
 0xf75   :  { %8090 = vtanh.f32 %v2781_v22  ;;  %11398 = vst [vmem:[#allocation14_spill] sm:$0xff] %v10002_v63 }
 0xf76   :  { %8092 = vpow2.f32 %v6797_v52 }
 0xf7d   :  { %v8087_v28 = vpop.eup %8086 }
 0xf7e   :  { %v2791_v23 = vadd.f32 1.0, %v8087_v28  ;;  %v8089_v24 = vpop.eup %8088 }
 0xf7f   :  { %v2792_v36 = vadd.f32 1.0, %v8089_v24  ;;  %v8091_v10 = vpop.eup %8090 }
 0xf80   :  { %8094 = vrcp.f32 %v2791_v23  ;;  %v8093_v40 = vpop.eup %8092 }
 0xf81   :  { %8096 = vrcp.f32 %v2792_v36  ;;  %v2793_v4 = vadd.f32 1.0, %v8093_v40 }
 0xf83   :  { %8098 = vrcp.f32 %v2793_v4 }
 0xf8a   :  { %v8095_v35 = vpop.eup %8094 }
 0xf8b   :  { %v2802_v29 = vmul.f32 %v8095_v35, %v8091_v10  ;;  %v8097_v43 = vpop.eup %8096 }
 0xf8c   :  { %v2801_v27 = vmul.f32 %v8097_v43, %v9686_v1  ;;  %v9928_v1 = vld [vmem:[%s11278_s6 + $0x28] ss:$16 sps:$4 sm:$0xff]  }
 0xf8d   :  { %v8099_v45 = vpop.eup %8098 }
 0xf8e   :  { %v9911_v60 = vadd.f32 %v2802_v29, %v2801_v27 }
 0xf90   :  { %8100 = vtanh.f32 %v9911_v60 }
 0xf9a   :  { %v8101_v44 = vpop.eup %8100 }
 0xf9b   :  { %v2805_v5 = vmul.f32 %v8101_v44, %v8099_v45 }
 0xf9d   :  { %v2806_v55 = vpack.c.bf16 %v2805_v5, %v2805_v5 }
 0xf9f   :  { %7311 = vmatmul.mubr.bf16.vlgmr.msra.gmra.mrb[56].mxu1 %v2806_v55  ;;  %3210 = vmatmul.mubr.bf16.vlgmr.msra.gmra.mrb[60].mxu0 %v2806_v55 }
 0xfa0   :  { %3219 = vmatpush1.bf16.msra.mxu1 %v9917_v25  ;;  %3250 = vmatprep.mubr.bf16.mxu1 %v11375_v2 }
 0xfa1   :  { %3220 = vmatprep.subr.bf16.mxu1 %v9922_v53  ;;  %3451 = vmatprep.mubr.bf16.mxu0 %v11375_v2 }
 0xfa4   :  { %3221 = vmatpush1.bf16.msra.mxu1 %v9928_v1 }
 0xfa5   :  { %3222 = vmatprep.subr.bf16.mxu1 %v9935_v16 }
 0xfa8   :  { %3223 = vmatpush1.bf16.msra.mxu1 %v9942_v59 }
 0xfa9   :  { %3224 = vmatprep.subr.bf16.mxu1 %v9948_v39 }
 0xfac   :  { %3225 = vmatpush1.bf16.msra.mxu1 %v9954_v61 }
 0xfad   :  { %3226 = vmatprep.subr.bf16.mxu1 %v9960_v0 }
 0xfb0   :  { %3227 = vmatpush1.bf16.msra.mxu1 %v9966_v19 }
 0xfb1   :  { %3228 = vmatprep.subr.bf16.mxu1 %v9972_v9 }
 0xfb4   :  { %3229 = vmatpush1.bf16.msra.mxu1 %v9978_v42 }
 0xfb5   :  { %3230 = vmatprep.subr.bf16.mxu1 %v9984_v12 }
 0xfb8   :  { %3231 = vmatpush1.bf16.msra.mxu1 %v9990_v11  ;;  %v10194_v11 = vld [vmem:[%s11277_s5 + $0xec] ss:$16 sps:$4 sm:$0xff]  }
 0xfb9   :  { %3232 = vmatprep.subr.bf16.mxu1 %v9996_v14  ;;  %v10188_v14 = vld [vmem:[%s11277_s5 + $0xe4] ss:$16 sps:$4 sm:$0xff]   ;;  %11417 = vst [vmem:[#allocation32_spill] sm:$0xff] %v10194_v11 }
 0xfba   :  { %11416 = vst [vmem:[#allocation31_spill] sm:$0xff] %v10188_v14 }
 0xfbc   :  { %3233 = vmatpush1.bf16.msra.mxu1 %v10002_v63  ;;  %v10170_v63 = vld [vmem:[%s11277_s5 + $0xcc] ss:$16 sps:$4 sm:$0xff]  }
 0xfbd   :  { %11413 = vst [vmem:[#allocation28_spill] sm:$0xff] %v10170_v63 }
 0xfbf   :  { %3251 = vmatmul.mubr.bf16.vlgmr.msra.gmra.mrb[60].mxu1 %v2806_v55 }
 0xfc0   :  { %3492 = vmatprep.mubr.bf16.mxu1 %v11375_v2 }
0x1072   :  { %v2905_v21 = vpop.f32.mrb[56].mxu1  ;;  %v10007_v6 = vpop.f32.mrb[60].mxu0 }
0x1073   :  { %v2906_v8 = vadd.f32 %v9742_v50, %v2905_v21  ;;  %v7312_v22 = vpop.f32.mrb[57].mxu1  ;;  %v10010_v52 = vpop.f32.mrb[61].mxu0  ;;  %v10111_v50 = vld [vmem:[%s11277_s5 + $0x68] ss:$16 sps:$4 sm:$0xff]  }
0x1074   :  { %v2908_v28 = vpop.f32.mrb[58].mxu1  ;;  %v3215_v23 = vpop.f32.mrb[62].mxu0  ;;  %v10023_v22 = vld [vmem:[%s11277_s5] ss:$16 sps:$4 sm:$0xff]   ;;  %11406 = vst [vmem:[#allocation21_spill] sm:$0xff] %v10111_v50 }
0x1075   :  { %2912 = vst [vmem:[#allocation5 + $0x10] sm:$0xff] %v2906_v8  ;;  %v3216_v24 = vpop.f32.mrb[63].mxu0  ;;  %2913 = vmax.xlane.f32.xlu1 %v2906_v8  ;;  %v7313_v36 = vpop.f32.mrb[59].mxu1  ;;  %v10033_v28 = vld [vmem:[%s11277_s5 + $0x8] ss:$16 sps:$4 sm:$0xff]  }
0x1076   :  { %11399 = vst [vmem:[#allocation15_spill] sm:$0xff] %v10033_v28  ;;  %v10038_v23 = vld [vmem:[%s11277_s5 + $0xc] ss:$16 sps:$4 sm:$0xff]   ;;  %v10043_v24 = vld [vmem:[%s11277_s5 + $0x24] ss:$16 sps:$4 sm:$0xff]  }
0x1077   :  { %11400 = vst [vmem:[#allocation16_spill] sm:$0xff] %v10038_v23  ;;  %v10049_v36 = vld [vmem:[%s11277_s5 + $0x2c] ss:$16 sps:$4 sm:$0xff]   ;;  %3460 = vmatprep.subr.bf16.mxu1 %v10038_v23  ;;  %v10164_v23 = vld [vmem:[%s11277_s5 + $0xc4] ss:$16 sps:$4 sm:$0xff]  }
0x1078   :  { %11401 = vst [vmem:[#allocation17_spill] sm:$0xff] %v10049_v36  ;;  %3461 = vmatpush1.bf16.msra.mxu1 %v10033_v28  ;;  %v10146_v28 = vld [vmem:[%s11277_s5 + $0xac] ss:$16 sps:$4 sm:$0xff]   ;;  %11412 = vst [vmem:[#allocation27_spill] sm:$0xff] %v10164_v23 }
0x1079   :  { %3462 = vmatprep.subr.bf16.mxu1 %v10049_v36  ;;  %v10140_v36 = vld [vmem:[%s11277_s5 + $0xa4] ss:$16 sps:$4 sm:$0xff]   ;;  %11409 = vst [vmem:[#allocation24_spill] sm:$0xff] %v10146_v28 }
0x1092   :  { %v10012_v10 = vpop.f32.mrb[60].mxu1 }
0x1093   :  { %v10014_v40 = vpop.f32.mrb[61].mxu1 }
0x1094   :  { %v3256_v35 = vpop.f32.mrb[62].mxu1 }
0x1095   :  { %v3257_v29 = vpop.f32.mrb[63].mxu1  ;;  %v10056_v35 = vld [vmem:[%s11277_s5 + $0x20] ss:$16 sps:$4 sm:$0xff]  }
0x1096   :  { %v10063_v29 = vld [vmem:[%s11277_s5 + $0x28] ss:$16 sps:$4 sm:$0xff]  }
0x1097   :  { %11402 = vst [vmem:[#allocation19_spill] sm:$0xff] %v10063_v29  ;;  %3463 = vmatpush1.bf16.msra.mxu1 %v10063_v29  ;;  %v10122_v29 = vld [vmem:[%s11277_s5 + $0x8c] ss:$16 sps:$4 sm:$0xff]  }
0x1098   :  { %11407 = vst [vmem:[#allocation22_spill] sm:$0xff] %v10122_v29 }
0x1102   :  { %v2914_v43 = vpop.xlane.xlu1 %2913 }
0x1103   :  { %vm2915_vm8 = vcmp.eq.f32.partialorder %v2906_v8, %v2914_v43  ;;  %v10028_v8 = vld [vmem:[%s11277_s5 + $0x4] ss:$16 sps:$4 sm:$0xff]  }
0x1104   :  { %v2916_v4 = vsel %vm2915_vm8, %v11391_v18, 128  ;;  %3419 = vmatprep.subr.bf16.mxu0 %v10028_v8  ;;  %v10068_v43 = vld [vmem:[%s11277_s5 + $0x44] ss:$16 sps:$4 sm:$0xff]  }
0x1105   :  { %v2918_v27 = vshra.s32 %v2916_v4, 16  ;;  %v2917_v44 = vand.u32 65535, %v2916_v4  ;;  %3420 = vmatpush1.bf16.msra.mxu0 %v10023_v22  ;;  %v10074_v4 = vld [vmem:[%s11277_s5 + $0x4c] ss:$16 sps:$4 sm:$0xff]  }
0x1106   :  { %3421 = vmatprep.subr.bf16.mxu0 %v10043_v24  ;;  %11403 = vst [vmem:[#allocation18_spill] sm:$0xff] %v10074_v4  ;;  %3464 = vmatprep.subr.bf16.mxu1 %v10074_v4  ;;  %v10116_v4 = vld [vmem:[%s11277_s5 + $0x84] ss:$16 sps:$4 sm:$0xff]  }
0x1107   :  { %v2920_v45 = vcvt.s32.f32 %v2918_v27  ;;  %v2919_v55 = vcvt.s32.f32 %v2917_v44  ;;  %v10080_v27 = vld [vmem:[%s11277_s5 + $0x40] ss:$16 sps:$4 sm:$0xff]   ;;  %v10092_v44 = vld [vmem:[%s11277_s5 + $0x64] ss:$16 sps:$4 sm:$0xff]  }
0x1109   :  { %2921 = vmin.xlane.f32.xlu0 %v2920_v45  ;;  %3422 = vmatpush1.bf16.msra.mxu0 %v10056_v35 }
0x110a   :  { %3423 = vmatprep.subr.bf16.mxu0 %v10068_v43 }
0x110d   :  { %3424 = vmatpush1.bf16.msra.mxu0 %v10080_v27 }
0x110e   :  { %3425 = vmatprep.subr.bf16.mxu0 %v10092_v44 }
0x1196   :  { %v10017_v5 = vpop.xlane.xlu0 %2921 }
0x1197   :  { %vm2923_vm9 = vcmp.eq.f32.partialorder %v2920_v45, %v10017_v5  ;;  %v10087_v45 = vld [vmem:[%s11277_s5 + $0x48] ss:$16 sps:$4 sm:$0xff]  }
0x1198   :  { %v2924_v21 = vsel %vm2923_vm9, %v2919_v55, inf  ;;  %11404 = vst [vmem:[#allocation8_spill] sm:$0xff] %v10087_v45  ;;  %v10098_v55 = vld [vmem:[%s11277_s5 + $0x6c] ss:$16 sps:$4 sm:$0xff]   ;;  %3465 = vmatpush1.bf16.msra.mxu1 %v10087_v45  ;;  %v10128_v45 = vld [vmem:[%s11277_s5 + $0x80] ss:$16 sps:$4 sm:$0xff]  }
0x1199   :  { %2925 = vmin.xlane.f32.xlu0 %v2924_v21  ;;  %11405 = vst [vmem:[#allocation20_spill] sm:$0xff] %v10098_v55  ;;  %v10104_v21 = vld [vmem:[%s11277_s5 + $0x60] ss:$16 sps:$4 sm:$0xff]   ;;  %3466 = vmatprep.subr.bf16.mxu1 %v10098_v55  ;;  %v10135_v55 = vld [vmem:[%s11277_s5 + $0x88] ss:$16 sps:$4 sm:$0xff]  }
0x119a   :  { %3426 = vmatpush1.bf16.msra.mxu0 %v10104_v21  ;;  %11408 = vst [vmem:[#allocation23_spill] sm:$0xff] %v10135_v55 }
0x119b   :  { %3427 = vmatprep.subr.bf16.mxu0 %v10116_v4 }
0x119c   :  { %3467 = vmatpush1.bf16.msra.mxu1 %v10111_v50  ;;  %v10152_v50 = vld [vmem:[%s11277_s5 + $0xa0] ss:$16 sps:$4 sm:$0xff]  }
0x119d   :  { %3468 = vmatprep.subr.bf16.mxu1 %v10122_v29  ;;  %11410 = vst [vmem:[#allocation25_spill] sm:$0xff] %v10152_v50  ;;  %v10159_v29 = vld [vmem:[%s11277_s5 + $0xa8] ss:$16 sps:$4 sm:$0xff]  }
0x119e   :  { %3428 = vmatpush1.bf16.msra.mxu0 %v10128_v45  ;;  %11411 = vst [vmem:[#allocation26_spill] sm:$0xff] %v10159_v29 }
0x119f   :  { %3429 = vmatprep.subr.bf16.mxu0 %v10140_v36 }
0x11a0   :  { %3469 = vmatpush1.bf16.msra.mxu1 %v10135_v55  ;;  %v10176_v55 = vld [vmem:[%s11277_s5 + $0xc0] ss:$16 sps:$4 sm:$0xff]  }
0x11a1   :  { %3470 = vmatprep.subr.bf16.mxu1 %v10146_v28  ;;  %11414 = vst [vmem:[#allocation29_spill] sm:$0xff] %v10176_v55  ;;  %v10183_v28 = vld [vmem:[%s11277_s5 + $0xc8] ss:$16 sps:$4 sm:$0xff]  }
0x11a2   :  { %3430 = vmatpush1.bf16.msra.mxu0 %v10152_v50  ;;  %11415 = vst [vmem:[#allocation30_spill] sm:$0xff] %v10183_v28  ;;  %v2935_v50 = vstv %s2934_s16 }
0x11a3   :  { %3431 = vmatprep.subr.bf16.mxu0 %v10164_v23  ;;  %vm2936_vm10 = vcmp.eq.s32.totalorder %v2935_v50, 1  ;;  %v7678_v50 = vld [vmem:[%s11280_s8] sm:$0xff]  }
0x11a4   :  { %3471 = vmatpush1.bf16.msra.mxu1 %v10159_v29  ;;  %v10200_v29 = vld [vmem:[%s11277_s5 + $0xe0] ss:$16 sps:$4 sm:$0xff]  }
0x11a5   :  { %3472 = vmatprep.subr.bf16.mxu1 %v10170_v63  ;;  %11418 = vst [vmem:[#allocation33_spill] sm:$0xff] %v10200_v29  ;;  %v10207_v63 = vld [vmem:[%s11277_s5 + $0xe8] ss:$16 sps:$4 sm:$0xff]  }
0x11a6   :  { %3432 = vmatpush1.bf16.msra.mxu0 %v10176_v55  ;;  %11419 = vst [vmem:[#allocation34_spill] sm:$0xff] %v10207_v63 }
0x11a7   :  { %3433 = vmatprep.subr.bf16.mxu0 %v10188_v14 }
0x11a8   :  { %3473 = vmatpush1.bf16.msra.mxu1 %v10183_v28  ;;  %v2928_v28 = vcvt.f32.s32 %v10017_v5 }
0x11a9   :  { %3474 = vmatprep.subr.bf16.mxu1 %v10194_v11  ;;  %v2933_v11 = vld [vmem:[%s11273_s1 + $0x2] sm:$0x1] }
0x11aa   :  { %3434 = vmatpush1.bf16.msra.mxu0 %v10200_v29  ;;  %v2929_v55 = vshll.u32 %v2928_v28, 16 }
0x11ab   :  { %7314 = vmatprep.subr.bf16.mxu0 %v11379_v38 }
0x11ac   :  { %3475 = vmatpush1.bf16.msra.mxu1 %v10207_v63 }
0x11ad   :  { %3900 = vmatprep.subr.bf16.mxu1 %v9775_v56 }
0x1226   :  { %v2926_v14 = vpop.xlane.xlu0 %2925 }
0x1227   :  { %v2927_v23 = vcvt.f32.s32 %v2926_v14 }
0x1229   :  { %v2930_v12 = vadd.s32 %v2929_v55, %v2927_v23 }
0x122b   :  { %v2940_v63 = vrot.slane %v2930_v12, %v9756_v46 }
0x122d   :  { %v2941_v29 = vsel %vm2936_vm10, %v2933_v11, %v2940_v63 }
0x122e   :  { %v2945_v56 = vrot.slane %v2941_v29, %v11392_v20 }
0x1230   :  { %2947 = vbcast.lane.b32.xlu0 %v2945_v56, 256 }
0x12a2   :  { %v2948_v42 = vpop.permute.xlu0 %2947 }
0x12a3   :  { %vm2949_vm11 = vcmp.eq.s32.totalorder %v11391_v18, %v2948_v42 }
0x12a4   :  { %vm6872_vm12 = vmpackc.low %vm2949_vm11, %vm2949_vm11 }
0x12a5   :  { %6873 = vmatmul.mubr.msk.bf16.vlgmr.msra.gmra.mrb[64].mxu0 %vm6872_vm12, %v11393_v34  ;;  %6875 = vmatmul.mubr.msk.bf16.vlgmr.msra.gmra.mrb[64].mxu1 %vm6872_vm12, %v11393_v34 }
0x12a6   :  { %3901 = vmatpush1.bf16.msra.mxu1 %v9780_v48  ;;  %7330 = vmatprep.mubr.msk.bf16.mxu0 %vm8282_vm2, %v11379_v38  ;;  %v7679_v48 = vld [vmem:[%s11280_s8 + $0x8] sm:$0xff]  }
0x12a7   :  { %3902 = vmatprep.subr.bf16.mxu1 %v9791_v13  ;;  %3932 = vmatprep.mubr.bf16.mxu1 %v11375_v2  ;;  %v7680_v13 = vld [vmem:[%s11280_s8 + $0x10] sm:$0xff]  }
0x12a8   :  { %7315 = vmatpush3.bf16.msra.mxu0 %v7678_v50 }
0x12a9   :  { %7316 = vmatprep.subr.bf16.mxu0 %v11379_v38 }
0x12aa   :  { %3903 = vmatpush1.bf16.msra.mxu1 %v9796_v49  ;;  %v7681_v49 = vld [vmem:[%s11280_s8 + $0x18] sm:$0xff]  }
0x12ab   :  { %3904 = vmatprep.subr.bf16.mxu1 %v9807_v30  ;;  %v7682_v30 = vld [vmem:[%s11280_s8 + $0x20] sm:$0xff]  }
0x12ac   :  { %7317 = vmatpush3.bf16.msra.mxu0 %v7679_v48 }
0x12ad   :  { %7318 = vmatprep.subr.bf16.mxu0 %v11379_v38 }
0x12ae   :  { %3905 = vmatpush1.bf16.msra.mxu1 %v9812_v58  ;;  %v7683_v58 = vld [vmem:[%s11280_s8 + $0x28] sm:$0xff]  }
0x12af   :  { %3906 = vmatprep.subr.bf16.mxu1 %v9823_v33  ;;  %v7684_v33 = vld [vmem:[%s11280_s8 + $0x30] sm:$0xff]  }
0x12b0   :  { %7319 = vmatpush3.bf16.msra.mxu0 %v7680_v13 }
0x12b1   :  { %7320 = vmatprep.subr.bf16.mxu0 %v11379_v38 }
0x12b2   :  { %3907 = vmatpush1.bf16.msra.mxu1 %v9828_v37  ;;  %v7685_v37 = vld [vmem:[%s11280_s8 + $0x38] sm:$0xff]  }
0x12b3   :  { %3908 = vmatprep.subr.bf16.mxu1 %v9839_v57 }
0x12b4   :  { %7321 = vmatpush3.bf16.msra.mxu0 %v7681_v49 }
0x12b5   :  { %7322 = vmatprep.subr.bf16.mxu0 %v11379_v38 }
0x12b6   :  { %3909 = vmatpush1.bf16.msra.mxu1 %v9844_v41 }
0x12b7   :  { %3910 = vmatprep.subr.bf16.mxu1 %v9860_v15 }
0x12b8   :  { %7323 = vmatpush3.bf16.msra.mxu0 %v7682_v30 }
0x12b9   :  { %7324 = vmatprep.subr.bf16.mxu0 %v11379_v38 }
0x12ba   :  { %3911 = vmatpush1.bf16.msra.mxu1 %v9855_v47 }
0x12bb   :  { %3912 = vmatprep.subr.bf16.mxu1 %v9865_v3 }
0x12bc   :  { %7325 = vmatpush3.bf16.msra.mxu0 %v7683_v58 }
0x12bd   :  { %7326 = vmatprep.subr.bf16.mxu0 %v11379_v38 }
0x12be   :  { %3913 = vmatpush1.bf16.msra.mxu1 %v9876_v51 }
0x12bf   :  { %3914 = vmatprep.subr.bf16.mxu1 %v9882_v54 }
0x12c0   :  { %7327 = vmatpush3.bf16.msra.mxu0 %v7684_v33 }
0x12c1   :  { %7328 = vmatprep.subr.bf16.mxu0 %v11379_v38 }
0x12c2   :  { %3915 = vmatpush1.bf16.msra.mxu1 %v9892_v31 }
0x12c3   :  { %4142 = vmatprep.subr.bf16.mxu1 %v10028_v8 }
0x12c4   :  { %7329 = vmatpush3.bf16.msra.mxu0 %v7685_v37 }
0x12c5   :  { %3941 = vmatprep.subr.bf16.mxu0 %v9897_v32 }
0x1378   :  { %v3453_v57 = vpop.f32.mrb[64].mxu0  ;;  %v3494_v41 = vpop.f32.mrb[64].mxu1 }
0x1379   :  { %v3454_v47 = vadd.f32 %v3453_v57, %v10007_v6  ;;  %v3495_v15 = vadd.f32 %v3494_v41, %v10012_v10  ;;  %v3455_v3 = vpop.f32.mrb[65].mxu0  ;;  %v3496_v51 = vpop.f32.mrb[65].mxu1  ;;  %v11440_v41 = vld [vmem:[#allocation24_spill] sm:$0xff] }
0x137a   :  { %v3456_v54 = vadd.f32 %v3455_v3, %v10010_v52  ;;  %v3497_v31 = vadd.f32 %v3496_v51, %v10014_v40  ;;  %v3457_v42 = vpop.f32.mrb[66].mxu0  ;;  %v3498_v12 = vpop.f32.mrb[66].mxu1  ;;  %v11443_v3 = vld [vmem:[#allocation30_spill] sm:$0xff]  ;;  %v11444_v51 = vld [vmem:[#allocation32_spill] sm:$0xff] }
0x137b   :  { %v3501_v11 = vadd.f32 %v3454_v47, %v9667_v26  ;;  %v3458_v38 = vpop.f32.mrb[67].mxu0  ;;  %v3499_v14 = vpop.f32.mrb[67].mxu1  ;;  %v3503_v6 = vadd.f32 %v3495_v15, %v9677_v17  ;;  %v11441_v47 = vld [vmem:[#allocation26_spill] sm:$0xff]  ;;  %v11442_v15 = vld [vmem:[#allocation28_spill] sm:$0xff]  ;;  %v11446_v12 = vld [vmem:[#allocation9_spill] sm:$0xff] }
0x137c   :  { %v3502_v32 = vadd.f32 %v3456_v54, %v9671_v62  ;;  %v3504_v10 = vadd.f32 %v3497_v31, %v9681_v7  ;;  %v11445_v54 = vld [vmem:[#allocation34_spill] sm:$0xff] }
0x137d   :  { %v6876_v63 = vmul.f32 -1.442695, %v3501_v11  ;;  %v6878_v8 = vmul.f32 -1.442695, %v3503_v6 }
0x137e   :  { %v6877_v5 = vmul.f32 -1.442695, %v3502_v32 }
0x137f   :  { %8102 = vpow2.f32 %v6876_v63 }
0x1380   :  { %8104 = vpow2.f32 %v6877_v5 }
0x1381   :  { %8106 = vtanh.f32 %v3504_v10 }
0x1382   :  { %8108 = vpow2.f32 %v6878_v8 }
0x1389   :  { %v8103_v52 = vpop.eup %8102 }
0x138a   :  { %v3514_v28 = vadd.f32 1.0, %v8103_v52  ;;  %v8105_v40 = vpop.eup %8104 }
0x138b   :  { %v3515_v23 = vadd.f32 1.0, %v8105_v40  ;;  %v8107_v29 = vpop.eup %8106 }
0x138c   :  { %8110 = vrcp.f32 %v3514_v28  ;;  %v8109_v55 = vpop.eup %8108 }
0x138d   :  { %8112 = vrcp.f32 %v3515_v23  ;;  %v3516_v13 = vadd.f32 1.0, %v8109_v55 }
0x138f   :  { %8114 = vrcp.f32 %v3516_v13 }
0x1396   :  { %v8111_v56 = vpop.eup %8110 }
0x1397   :  { %v3525_v50 = vmul.f32 %v8111_v56, %v8107_v29  ;;  %v8113_v48 = vpop.eup %8112 }
0x1398   :  { %v3524_v49 = vmul.f32 %v8113_v48, %v9911_v60  ;;  %v11420_v60 = vld [vmem:[#allocation10_spill] sm:$0xff] }
0x1399   :  { %v8115_v58 = vpop.eup %8114 }
0x139a   :  { %v10283_v30 = vadd.f32 %v3525_v50, %v3524_v49 }
0x139c   :  { %8116 = vtanh.f32 %v10283_v30 }
0x13a6   :  { %v8117_v33 = vpop.eup %8116 }
0x13a7   :  { %v3528_v37 = vmul.f32 %v8117_v33, %v8115_v58 }
0x13a9   :  { %v3529_v57 = vpack.c.bf16 %v3528_v37, %v3528_v37 }
0x13ab   :  { %7331 = vmatmul.mubr.bf16.vlgmr.msra.gmra.mrb[68].mxu0 %v3529_v57  ;;  %3933 = vmatmul.mubr.bf16.vlgmr.msra.gmra.mrb[68].mxu1 %v3529_v57 }
0x13ac   :  { %3942 = vmatpush1.bf16.msra.mxu0 %v9917_v25  ;;  %3973 = vmatprep.mubr.bf16.mxu0 %v11375_v2  ;;  %v11421_v25 = vld [vmem:[#allocation11_spill] sm:$0xff] }
0x13ad   :  { %3943 = vmatprep.subr.bf16.mxu0 %v9922_v53  ;;  %4143 = vmatpush1.bf16.msra.mxu1 %v10023_v22  ;;  %v11422_v53 = vld [vmem:[#allocation25_spill] sm:$0xff]  ;;  %v10319_v22 = vld [vmem:[#allocation5] sm:$0xff] }
0x13ae   :  { %4144 = vmatprep.subr.bf16.mxu1 %v10043_v24  ;;  %4174 = vmatprep.mubr.bf16.mxu1 %v11375_v2  ;;  %v11431_v24 = vld [vmem:[#allocation15_spill] sm:$0xff] }
0x13b0   :  { %3944 = vmatpush1.bf16.msra.mxu0 %v9928_v1  ;;  %v11423_v1 = vld [vmem:[#allocation27_spill] sm:$0xff] }
0x13b1   :  { %3945 = vmatprep.subr.bf16.mxu0 %v9935_v16  ;;  %4145 = vmatpush1.bf16.msra.mxu1 %v10056_v35  ;;  %v11424_v16 = vld [vmem:[#allocation12_spill] sm:$0xff]  ;;  %v11433_v35 = vld [vmem:[#allocation19_spill] sm:$0xff] }
0x13b2   :  { %4146 = vmatprep.subr.bf16.mxu1 %v10068_v43  ;;  %v11434_v43 = vld [vmem:[#allocation18_spill] sm:$0xff] }
0x13b4   :  { %3946 = vmatpush1.bf16.msra.mxu0 %v9942_v59  ;;  %v11425_v59 = vld [vmem:[#allocation13_spill] sm:$0xff] }
0x13b5   :  { %3947 = vmatprep.subr.bf16.mxu0 %v9948_v39  ;;  %4147 = vmatpush1.bf16.msra.mxu1 %v10080_v27  ;;  %v11426_v39 = vld [vmem:[#allocation29_spill] sm:$0xff]  ;;  %v11436_v27 = vld [vmem:[#allocation20_spill] sm:$0xff] }
0x13b6   :  { %4148 = vmatprep.subr.bf16.mxu1 %v10092_v44  ;;  %v11438_v44 = vld [vmem:[#allocation22_spill] sm:$0xff] }
0x13b8   :  { %3948 = vmatpush1.bf16.msra.mxu0 %v9954_v61  ;;  %v11427_v61 = vld [vmem:[#allocation31_spill] sm:$0xff] }
0x13b9   :  { %3949 = vmatprep.subr.bf16.mxu0 %v9960_v0  ;;  %4149 = vmatpush1.bf16.msra.mxu1 %v10104_v21  ;;  %v11428_v0 = vld [vmem:[#allocation14_spill] sm:$0xff]  ;;  %v11439_v21 = vld [vmem:[#allocation23_spill] sm:$0xff] }
0x13ba   :  { %4150 = vmatprep.subr.bf16.mxu1 %v10116_v4  ;;  %v11435_v4 = vld [vmem:[#allocation8_spill] sm:$0xff] }
0x13bc   :  { %3950 = vmatpush1.bf16.msra.mxu0 %v9966_v19  ;;  %v11429_v19 = vld [vmem:[#allocation16_spill] sm:$0xff] }
0x13bd   :  { %3951 = vmatprep.subr.bf16.mxu0 %v9972_v9  ;;  %4151 = vmatpush1.bf16.msra.mxu1 %v10128_v45  ;;  %v11430_v9 = vld [vmem:[#allocation33_spill] sm:$0xff] }
0x13be   :  { %4152 = vmatprep.subr.bf16.mxu1 %v10140_v36  ;;  %v11432_v36 = vld [vmem:[#allocation17_spill] sm:$0xff] }
0x13bf   :  { %v11437_v45 = vld [vmem:[#allocation21_spill] sm:$0xff] }
0x13c0   :  { %3952 = vmatpush1.bf16.msra.mxu0 %v11420_v60 }
0x13c1   :  { %3953 = vmatprep.subr.bf16.mxu0 %v11421_v25  ;;  %4153 = vmatpush1.bf16.msra.mxu1 %v11422_v53  ;;  %v3656_v25 = vld [vmem:[%s11273_s1 + $0x3] sm:$0x1] }
0x13c2   :  { %4154 = vmatprep.subr.bf16.mxu1 %v11423_v1 }
0x13c4   :  { %3954 = vmatpush1.bf16.msra.mxu0 %v11424_v16 }
0x13c5   :  { %3955 = vmatprep.subr.bf16.mxu0 %v11425_v59  ;;  %4155 = vmatpush1.bf16.msra.mxu1 %v11426_v39  ;;  %v7686_v39 = vld [vmem:[%s11280_s8] sm:$0xff]  }
0x13c6   :  { %4156 = vmatprep.subr.bf16.mxu1 %v11427_v61  ;;  %v10365_v61 = vld [vmem:[%s11278_s6 + $0x4] ss:$16 sps:$4 sm:$0xff]  }
0x13c8   :  { %3956 = vmatpush1.bf16.msra.mxu0 %v11428_v0  ;;  %v10370_v0 = vld [vmem:[%s11278_s6] ss:$16 sps:$4 sm:$0xff]  }
0x13c9   :  { %4183 = vmatprep.subr.bf16.mxu0 %v11429_v19  ;;  %4157 = vmatpush1.bf16.msra.mxu1 %v11430_v9  ;;  %v7690_v19 = vld [vmem:[%s11280_s8 + $0x8] sm:$0xff]   ;;  %v10381_v9 = vld [vmem:[%s11278_s6 + $0x24] ss:$16 sps:$4 sm:$0xff]  }
0x13ca   :  { %7334 = vmatprep.subr.bf16.mxu1 %v10319_v22 }
0x13cb   :  { %3974 = vmatmul.mubr.bf16.vlgmr.msra.gmra.mrb[72].mxu0 %v3529_v57  ;;  %v3658_v57 = vstv %s3657_s12  ;;  %s4380_s12 = scalar_select %p4378_p8, 1, 0 }
0x13cc   :  { %4184 = vmatpush1.bf16.msra.mxu0 %v11431_v24  ;;  %4215 = vmatprep.mubr.bf16.mxu0 %v11375_v2  ;;  %vm3659_vm15 = vcmp.eq.s32.totalorder %v3658_v57, 1  ;;  %v10386_v24 = vld [vmem:[%s11278_s6 + $0x20] ss:$16 sps:$4 sm:$0xff]  }
0x13cd   :  { %4185 = vmatprep.subr.bf16.mxu0 %v11432_v36  ;;  %v7694_v36 = vld [vmem:[%s11280_s8 + $0x10] sm:$0xff]  }
0x13d0   :  { %4186 = vmatpush1.bf16.msra.mxu0 %v11433_v35  ;;  %v10397_v35 = vld [vmem:[%s11278_s6 + $0x44] ss:$16 sps:$4 sm:$0xff]  }
0x13d1   :  { %4187 = vmatprep.subr.bf16.mxu0 %v11434_v43  ;;  %v10402_v43 = vld [vmem:[%s11278_s6 + $0x40] ss:$16 sps:$4 sm:$0xff]  }
0x13d4   :  { %4188 = vmatpush1.bf16.msra.mxu0 %v11435_v4  ;;  %v7698_v4 = vld [vmem:[%s11280_s8 + $0x18] sm:$0xff]  }
0x13d5   :  { %4189 = vmatprep.subr.bf16.mxu0 %v11436_v27  ;;  %v10413_v27 = vld [vmem:[%s11278_s6 + $0x64] ss:$16 sps:$4 sm:$0xff]  }
0x13d8   :  { %4190 = vmatpush1.bf16.msra.mxu0 %v11437_v45  ;;  %v10418_v45 = vld [vmem:[%s11278_s6 + $0x60] ss:$16 sps:$4 sm:$0xff]  }
0x13d9   :  { %4191 = vmatprep.subr.bf16.mxu0 %v11438_v44  ;;  %v7702_v44 = vld [vmem:[%s11280_s8 + $0x20] sm:$0xff]  }
0x13dc   :  { %4192 = vmatpush1.bf16.msra.mxu0 %v11439_v21  ;;  %v10429_v21 = vld [vmem:[%s11278_s6 + $0x84] ss:$16 sps:$4 sm:$0xff]  }
0x13dd   :  { %4193 = vmatprep.subr.bf16.mxu0 %v11440_v41  ;;  %v10434_v41 = vld [vmem:[%s11278_s6 + $0x80] ss:$16 sps:$4 sm:$0xff]  }
0x13e0   :  { %4194 = vmatpush1.bf16.msra.mxu0 %v11441_v47  ;;  %v7706_v47 = vld [vmem:[%s11280_s8 + $0x28] sm:$0xff]  }
0x13e1   :  { %4195 = vmatprep.subr.bf16.mxu0 %v11442_v15  ;;  %v10445_v15 = vld [vmem:[%s11278_s6 + $0xa0] ss:$16 sps:$4 sm:$0xff]  }
0x13e4   :  { %4196 = vmatpush1.bf16.msra.mxu0 %v11443_v3  ;;  %v10450_v3 = vld [vmem:[%s11278_s6 + $0xa4] ss:$16 sps:$4 sm:$0xff]  }
0x13e5   :  { %4197 = vmatprep.subr.bf16.mxu0 %v11444_v51  ;;  %v10455_v51 = vld [vmem:[%s11278_s6 + $0xc4] ss:$16 sps:$4 sm:$0xff]  }
0x13e8   :  { %4198 = vmatpush1.bf16.msra.mxu0 %v11445_v54  ;;  %v7710_v54 = vld [vmem:[%s11280_s8 + $0x30] sm:$0xff]  }
0x13e9   :  { %4623 = vmatprep.subr.bf16.mxu0 %v10365_v61 }
0x147e   :  { %v3628_v31 = vpop.f32.mrb[68].mxu0  ;;  %v10338_v42 = vpop.f32.mrb[68].mxu1 }
0x147f   :  { %v3629_v11 = vadd.f32 %v11446_v12, %v3628_v31  ;;  %v7332_v38 = vpop.f32.mrb[69].mxu0  ;;  %v10341_v14 = vpop.f32.mrb[69].mxu1  ;;  %v10466_v31 = vld [vmem:[%s11278_s6 + $0xc0] ss:$16 sps:$4 sm:$0xff]   ;;  %v10472_v12 = vld [vmem:[%s11278_s6 + $0xe4] ss:$16 sps:$4 sm:$0xff]  }
0x1480   :  { %v3631_v32 = vpop.f32.mrb[70].mxu0  ;;  %v3938_v63 = vpop.f32.mrb[70].mxu1  ;;  %v10482_v38 = vld [vmem:[%s11278_s6 + $0xe0] ss:$16 sps:$4 sm:$0xff]  }
0x1481   :  { %3635 = vst [vmem:[#allocation5 + $0x18] sm:$0xff] %v3629_v11  ;;  %v3939_v5 = vpop.f32.mrb[71].mxu1  ;;  %3636 = vmax.xlane.f32.xlu1 %v3629_v11  ;;  %v7333_v6 = vpop.f32.mrb[71].mxu0  ;;  %v10487_v32 = vld [vmem:[%s11278_s6 + $0xc] ss:$16 sps:$4 sm:$0xff]  }
0x149e   :  { %v10343_v10 = vpop.f32.mrb[72].mxu0 }
0x149f   :  { %v10345_v8 = vpop.f32.mrb[73].mxu0 }
0x14a0   :  { %v3979_v52 = vpop.f32.mrb[74].mxu0 }
0x14a1   :  { %v3980_v28 = vpop.f32.mrb[75].mxu0 }
0x150e   :  { %v3637_v40 = vpop.xlane.xlu1 %3636 }
0x150f   :  { %vm3638_vm13 = vcmp.eq.f32.partialorder %v3629_v11, %v3637_v40  ;;  %v7714_v11 = vld [vmem:[%s11280_s8 + $0x38] sm:$0xff]  }
0x1510   :  { %v3639_v23 = vsel %vm3638_vm13, %v11391_v18, 128 }
0x1511   :  { %v3641_v29 = vshra.s32 %v3639_v23, 16  ;;  %v3640_v56 = vand.u32 65535, %v3639_v23 }
0x1513   :  { %v3643_v55 = vcvt.s32.f32 %v3641_v29  ;;  %v3642_v48 = vcvt.s32.f32 %v3640_v56 }
0x1515   :  { %3644 = vmin.xlane.f32.xlu0 %v3643_v55 }
0x15a2   :  { %v3645_v50 = vpop.xlane.xlu0 %3644 }
0x15a3   :  { %vm3646_vm14 = vcmp.eq.f32.partialorder %v3643_v55, %v3645_v50  ;;  %v3651_v49 = vcvt.f32.s32 %v3645_v50 }
0x15a4   :  { %v3647_v13 = vsel %vm3646_vm14, %v3642_v48, inf }
0x15a5   :  { %3648 = vmin.xlane.f32.xlu1 %v3647_v13  ;;  %v3652_v33 = vshll.u32 %v3651_v49, 16 }
0x1632   :  { %v3649_v58 = vpop.xlane.xlu1 %3648 }
0x1633   :  { %v3650_v37 = vcvt.f32.s32 %v3649_v58 }
0x1635   :  { %v3653_v60 = vadd.s32 %v3652_v33, %v3650_v37 }
0x1637   :  { %v3663_v53 = vrot.slane %v3653_v60, %v9756_v46 }
0x1639   :  { %v3664_v1 = vsel %vm3659_vm15, %v3656_v25, %v3663_v53 }
0x163a   :  { %v3668_v16 = vrot.slane %v3664_v1, %v11392_v20 }
0x163c   :  { %3670 = vbcast.lane.b32.xlu1 %v3668_v16, 256 }
0x16ae   :  { %v3671_v59 = vpop.permute.xlu1 %3670 }
0x16af   :  { %vm3672_vm0 = vcmp.eq.s32.totalorder %v11391_v18, %v3671_v59 }
0x16b0   :  { %vm6953_vm1 = vmpackc.low %vm3672_vm0, %vm3672_vm0 }
0x16b1   :  { %6954 = vmatmul.mubr.msk.bf16.vlgmr.msra.gmra.mrb[72].mxu1 %vm6953_vm1, %v11393_v34  ;;  %6956 = vmatmul.mubr.msk.bf16.vlgmr.msra.gmra.mrb[76].mxu0 %vm6953_vm1, %v11393_v34 }
0x16b2   :  { %7350 = vmatprep.mubr.msk.bf16.mxu1 %vm8282_vm2, %v10319_v22  ;;  %4655 = vmatprep.mubr.bf16.mxu0 %v11375_v2 }
0x16b3   :  { %7335 = vmatpush3.bf16.msra.mxu1 %v7686_v39  ;;  %4624 = vmatpush1.bf16.msra.mxu0 %v10370_v0 }
0x16b4   :  { %7336 = vmatprep.subr.bf16.mxu1 %v10319_v22  ;;  %4625 = vmatprep.subr.bf16.mxu0 %v10381_v9 }
0x16b7   :  { %7337 = vmatpush3.bf16.msra.mxu1 %v7690_v19  ;;  %4626 = vmatpush1.bf16.msra.mxu0 %v10386_v24 }
0x16b8   :  { %7338 = vmatprep.subr.bf16.mxu1 %v10319_v22  ;;  %4627 = vmatprep.subr.bf16.mxu0 %v10397_v35 }
0x16bb   :  { %7339 = vmatpush3.bf16.msra.mxu1 %v7694_v36  ;;  %4628 = vmatpush1.bf16.msra.mxu0 %v10402_v43 }
0x16bc   :  { %7340 = vmatprep.subr.bf16.mxu1 %v10319_v22  ;;  %4629 = vmatprep.subr.bf16.mxu0 %v10413_v27 }
0x16bf   :  { %7341 = vmatpush3.bf16.msra.mxu1 %v7698_v4  ;;  %4630 = vmatpush1.bf16.msra.mxu0 %v10418_v45 }
0x16c0   :  { %7342 = vmatprep.subr.bf16.mxu1 %v10319_v22  ;;  %4631 = vmatprep.subr.bf16.mxu0 %v10429_v21 }
0x16c3   :  { %7343 = vmatpush3.bf16.msra.mxu1 %v7702_v44  ;;  %4632 = vmatpush1.bf16.msra.mxu0 %v10434_v41 }
0x16c4   :  { %7344 = vmatprep.subr.bf16.mxu1 %v10319_v22  ;;  %4633 = vmatprep.subr.bf16.mxu0 %v10450_v3 }
0x16c7   :  { %7345 = vmatpush3.bf16.msra.mxu1 %v7706_v47  ;;  %4634 = vmatpush1.bf16.msra.mxu0 %v10445_v15 }
0x16c8   :  { %7346 = vmatprep.subr.bf16.mxu1 %v10319_v22  ;;  %4635 = vmatprep.subr.bf16.mxu0 %v10455_v51 }
0x16cb   :  { %7347 = vmatpush3.bf16.msra.mxu1 %v7710_v54  ;;  %4636 = vmatpush1.bf16.msra.mxu0 %v10466_v31  ;;  %v10507_v54 = vld [vmem:[%s11278_s6 + $0x8] ss:$16 sps:$4 sm:$0xff]  }
0x16cc   :  { %7348 = vmatprep.subr.bf16.mxu1 %v10319_v22  ;;  %4637 = vmatprep.subr.bf16.mxu0 %v10472_v12 }
0x16cf   :  { %7349 = vmatpush3.bf16.msra.mxu1 %v7714_v11  ;;  %4638 = vmatpush1.bf16.msra.mxu0 %v10482_v38 }
0x16d0   :  { %4664 = vmatprep.subr.bf16.mxu1 %v10487_v32 }
0x1784   :  { %v4176_v63 = vpop.f32.mrb[72].mxu1  ;;  %v4217_v5 = vpop.f32.mrb[76].mxu0 }
0x1785   :  { %v4177_v6 = vadd.f32 %v4176_v63, %v10338_v42  ;;  %v4218_v52 = vadd.f32 %v4217_v5, %v10343_v10  ;;  %v4178_v28 = vpop.f32.mrb[73].mxu1  ;;  %v4219_v40 = vpop.f32.mrb[77].mxu0  ;;  %v10512_v63 = vld [vmem:[%s11278_s6 + $0x2c] ss:$16 sps:$4 sm:$0xff]  }
0x1786   :  { %v4179_v23 = vadd.f32 %v4178_v28, %v10341_v14  ;;  %v4220_v29 = vadd.f32 %v4219_v40, %v10345_v8  ;;  %v4180_v55 = vpop.f32.mrb[74].mxu1  ;;  %v4221_v56 = vpop.f32.mrb[78].mxu0  ;;  %v10525_v5 = vld [vmem:[%s11278_s6 + $0x4c] ss:$16 sps:$4 sm:$0xff]   ;;  %v10544_v28 = vld [vmem:[%s11278_s6 + $0x68] ss:$16 sps:$4 sm:$0xff]  }
0x1787   :  { %v4224_v50 = vadd.f32 %v4177_v6, %v9667_v26  ;;  %v4181_v48 = vpop.f32.mrb[75].mxu1  ;;  %v4222_v13 = vpop.f32.mrb[79].mxu0  ;;  %v4226_v42 = vadd.f32 %v4218_v52, %v9677_v17  ;;  %v10532_v6 = vld [vmem:[%s11278_s6 + $0x48] ss:$16 sps:$4 sm:$0xff]   ;;  %v10538_v52 = vld [vmem:[%s11278_s6 + $0x6c] ss:$16 sps:$4 sm:$0xff]  }
0x1788   :  { %v4225_v49 = vadd.f32 %v4179_v23, %v9671_v62  ;;  %v4227_v10 = vadd.f32 %v4220_v29, %v9681_v7  ;;  %v10550_v40 = vld [vmem:[%s11278_s6 + $0x8c] ss:$16 sps:$4 sm:$0xff]   ;;  %v10556_v23 = vld [vmem:[%s11278_s6 + $0x88] ss:$16 sps:$4 sm:$0xff]  }
0x1789   :  { %v6957_v58 = vmul.f32 -1.442695, %v4224_v50  ;;  %v6959_v37 = vmul.f32 -1.442695, %v4226_v42  ;;  %v10562_v29 = vld [vmem:[%s11278_s6 + $0xac] ss:$16 sps:$4 sm:$0xff]  }
0x178a   :  { %v6958_v33 = vmul.f32 -1.442695, %v4225_v49  ;;  %v10568_v55 = vld [vmem:[%s11278_s6 + $0xa8] ss:$16 sps:$4 sm:$0xff]   ;;  %v10574_v56 = vld [vmem:[%s11278_s6 + $0xcc] ss:$16 sps:$4 sm:$0xff]  }
0x178b   :  { %8118 = vpow2.f32 %v6957_v58  ;;  %11447 = vst [vmem:[#allocation10_spill] sm:$0xff] %v10568_v55  ;;  %11448 = vst [vmem:[#allocation11_spill] sm:$0xff] %v10574_v56  ;;  %v10580_v50 = vld [vmem:[%s11278_s6 + $0xc8] ss:$16 sps:$4 sm:$0xff]   ;;  %v10586_v48 = vld [vmem:[%s11278_s6 + $0xec] ss:$16 sps:$4 sm:$0xff]  }
0x178c   :  { %8120 = vpow2.f32 %v6958_v33  ;;  %11449 = vst [vmem:[#allocation25_spill] sm:$0xff] %v10580_v50  ;;  %11450 = vst [vmem:[#allocation27_spill] sm:$0xff] %v10586_v48  ;;  %v10592_v13 = vld [vmem:[%s11278_s6 + $0xe8] ss:$16 sps:$4 sm:$0xff]   ;;  %v10602_v33 = vld [vmem:[%s11281_s9] ss:$0 sm:$0xff] }
0x178d   :  { %8122 = vtanh.f32 %v4227_v10  ;;  %11451 = vst [vmem:[#allocation12_spill] sm:$0xff] %v10592_v13  ;;  %11452 = vst [vmem:[#allocation13_spill] sm:$0xff] %v10602_v33 }
0x178e   :  { %8124 = vpow2.f32 %v6959_v37 }
0x1795   :  { %v8119_v14 = vpop.eup %8118 }
0x1796   :  { %v4237_v57 = vadd.f32 1.0, %v8119_v14  ;;  %v8121_v8 = vpop.eup %8120 }
0x1797   :  { %v4238_v60 = vadd.f32 1.0, %v8121_v8  ;;  %v8123_v25 = vpop.eup %8122 }
0x1798   :  { %8126 = vrcp.f32 %v4237_v57  ;;  %v8125_v53 = vpop.eup %8124 }
0x1799   :  { %8128 = vrcp.f32 %v4238_v60  ;;  %v4239_v39 = vadd.f32 1.0, %v8125_v53 }
0x179b   :  { %8130 = vrcp.f32 %v4239_v39 }
0x17a2   :  { %v8127_v1 = vpop.eup %8126 }
0x17a3   :  { %v4248_v16 = vmul.f32 %v8127_v1, %v8123_v25  ;;  %v8129_v59 = vpop.eup %8128 }
0x17a4   :  { %v4247_v19 = vmul.f32 %v8129_v59, %v10283_v30  ;;  %v10518_v30 = vld [vmem:[%s11278_s6 + $0x28] ss:$16 sps:$4 sm:$0xff]  }
0x17a5   :  { %v8131_v4 = vpop.eup %8130 }
0x17a6   :  { %v10501_v36 = vadd.f32 %v4248_v16, %v4247_v19 }
0x17a8   :  { %8132 = vtanh.f32 %v10501_v36 }
0x17b2   :  { %v8133_v44 = vpop.eup %8132 }
0x17b3   :  { %v4251_v47 = vmul.f32 %v8133_v44, %v8131_v4 }
0x17b5   :  { %v4252_v11 = vpack.c.bf16 %v4251_v47, %v4251_v47 }
0x17b7   :  { %7351 = vmatmul.mubr.bf16.vlgmr.msra.gmra.mrb[76].mxu1 %v4252_v11  ;;  %4656 = vmatmul.mubr.bf16.vlgmr.msra.gmra.mrb[80].mxu0 %v4252_v11 }
0x17b8   :  { %4665 = vmatpush1.bf16.msra.mxu1 %v10507_v54  ;;  %4696 = vmatprep.mubr.bf16.mxu1 %v11375_v2 }
0x17b9   :  { %4666 = vmatprep.subr.bf16.mxu1 %v10512_v63  ;;  %4897 = vmatprep.mubr.bf16.mxu0 %v11375_v2 }
0x17bc   :  { %4667 = vmatpush1.bf16.msra.mxu1 %v10518_v30 }
0x17bd   :  { %4668 = vmatprep.subr.bf16.mxu1 %v10525_v5 }
0x17c0   :  { %4669 = vmatpush1.bf16.msra.mxu1 %v10532_v6 }
0x17c1   :  { %4670 = vmatprep.subr.bf16.mxu1 %v10538_v52 }
0x17c4   :  { %4671 = vmatpush1.bf16.msra.mxu1 %v10544_v28 }
0x17c5   :  { %4672 = vmatprep.subr.bf16.mxu1 %v10550_v40 }
0x17c8   :  { %4673 = vmatpush1.bf16.msra.mxu1 %v10556_v23 }
0x17c9   :  { %4674 = vmatprep.subr.bf16.mxu1 %v10562_v29 }
0x17cc   :  { %4675 = vmatpush1.bf16.msra.mxu1 %v10568_v55 }
0x17cd   :  { %4676 = vmatprep.subr.bf16.mxu1 %v10574_v56 }
0x17d0   :  { %4677 = vmatpush1.bf16.msra.mxu1 %v10580_v50  ;;  %v10789_v50 = vld [vmem:[%s11277_s5 + $0xec] ss:$16 sps:$4 sm:$0xff]  }
0x17d1   :  { %4678 = vmatprep.subr.bf16.mxu1 %v10586_v48  ;;  %v10783_v48 = vld [vmem:[%s11277_s5 + $0xe4] ss:$16 sps:$4 sm:$0xff]   ;;  %11471 = vst [vmem:[#allocation32_spill] sm:$0xff] %v10789_v50 }
0x17d2   :  { %11470 = vst [vmem:[#allocation30_spill] sm:$0xff] %v10783_v48 }
0x17d4   :  { %4679 = vmatpush1.bf16.msra.mxu1 %v10592_v13  ;;  %v10765_v13 = vld [vmem:[%s11277_s5 + $0xcc] ss:$16 sps:$4 sm:$0xff]  }
0x17d5   :  { %11467 = vst [vmem:[#allocation24_spill] sm:$0xff] %v10765_v13 }
0x17d7   :  { %4697 = vmatmul.mubr.bf16.vlgmr.msra.gmra.mrb[80].mxu1 %v4252_v11 }
0x17d8   :  { %4938 = vmatprep.mubr.bf16.mxu1 %v11375_v2 }
0x188a   :  { %v4351_v49 = vpop.f32.mrb[76].mxu1  ;;  %v10597_v58 = vpop.f32.mrb[80].mxu0 }
0x188b   :  { %v4352_v42 = vadd.f32 %v10602_v33, %v4351_v49  ;;  %v7352_v10 = vpop.f32.mrb[77].mxu1  ;;  %v10605_v37 = vpop.f32.mrb[81].mxu0  ;;  %v10706_v33 = vld [vmem:[%s11277_s5 + $0x68] ss:$16 sps:$4 sm:$0xff]  }
0x188c   :  { %v4354_v14 = vpop.f32.mrb[78].mxu1  ;;  %v4661_v57 = vpop.f32.mrb[82].mxu0  ;;  %v10618_v10 = vld [vmem:[%s11277_s5] ss:$16 sps:$4 sm:$0xff]   ;;  %11460 = vst [vmem:[#allocation19_spill] sm:$0xff] %v10706_v33 }
0x188d   :  { %4358 = vst [vmem:[#allocation5 + $0x20] sm:$0xff] %v4352_v42  ;;  %v4662_v8 = vpop.f32.mrb[83].mxu0  ;;  %4359 = vmax.xlane.f32.xlu1 %v4352_v42  ;;  %v7353_v60 = vpop.f32.mrb[79].mxu1  ;;  %v10628_v14 = vld [vmem:[%s11277_s5 + $0x8] ss:$16 sps:$4 sm:$0xff]  }
0x188e   :  { %11453 = vst [vmem:[#allocation29_spill] sm:$0xff] %v10628_v14  ;;  %v10633_v57 = vld [vmem:[%s11277_s5 + $0xc] ss:$16 sps:$4 sm:$0xff]   ;;  %v10638_v8 = vld [vmem:[%s11277_s5 + $0x24] ss:$16 sps:$4 sm:$0xff]  }
0x188f   :  { %11454 = vst [vmem:[#allocation31_spill] sm:$0xff] %v10633_v57  ;;  %v10644_v60 = vld [vmem:[%s11277_s5 + $0x2c] ss:$16 sps:$4 sm:$0xff]   ;;  %4906 = vmatprep.subr.bf16.mxu1 %v10633_v57  ;;  %v10759_v57 = vld [vmem:[%s11277_s5 + $0xc4] ss:$16 sps:$4 sm:$0xff]  }
0x1890   :  { %11455 = vst [vmem:[#allocation14_spill] sm:$0xff] %v10644_v60  ;;  %4907 = vmatpush1.bf16.msra.mxu1 %v10628_v14  ;;  %v10741_v14 = vld [vmem:[%s11277_s5 + $0xac] ss:$16 sps:$4 sm:$0xff]   ;;  %11466 = vst [vmem:[#allocation23_spill] sm:$0xff] %v10759_v57 }
0x1891   :  { %4908 = vmatprep.subr.bf16.mxu1 %v10644_v60  ;;  %v10735_v60 = vld [vmem:[%s11277_s5 + $0xa4] ss:$16 sps:$4 sm:$0xff]   ;;  %11463 = vst [vmem:[#allocation20_spill] sm:$0xff] %v10741_v14 }
0x18aa   :  { %v10607_v25 = vpop.f32.mrb[80].mxu1 }
0x18ab   :  { %v10609_v53 = vpop.f32.mrb[81].mxu1 }
0x18ac   :  { %v4702_v1 = vpop.f32.mrb[82].mxu1 }
0x18ad   :  { %v4703_v16 = vpop.f32.mrb[83].mxu1  ;;  %v10651_v1 = vld [vmem:[%s11277_s5 + $0x20] ss:$16 sps:$4 sm:$0xff]  }
0x18ae   :  { %v10658_v16 = vld [vmem:[%s11277_s5 + $0x28] ss:$16 sps:$4 sm:$0xff]  }
0x18af   :  { %11456 = vst [vmem:[#allocation16_spill] sm:$0xff] %v10658_v16  ;;  %4909 = vmatpush1.bf16.msra.mxu1 %v10658_v16  ;;  %v10717_v16 = vld [vmem:[%s11277_s5 + $0x8c] ss:$16 sps:$4 sm:$0xff]  }
0x18b0   :  { %11461 = vst [vmem:[#allocation18_spill] sm:$0xff] %v10717_v16 }
0x191a   :  { %v4360_v59 = vpop.xlane.xlu1 %4359 }
0x191b   :  { %vm4361_vm3 = vcmp.eq.f32.partialorder %v4352_v42, %v4360_v59  ;;  %v10623_v42 = vld [vmem:[%s11277_s5 + $0x4] ss:$16 sps:$4 sm:$0xff]  }
0x191c   :  { %v4362_v39 = vsel %vm4361_vm3, %v11391_v18, 128  ;;  %4865 = vmatprep.subr.bf16.mxu0 %v10623_v42  ;;  %v10663_v59 = vld [vmem:[%s11277_s5 + $0x44] ss:$16 sps:$4 sm:$0xff]  }
0x191d   :  { %v4364_v19 = vshra.s32 %v4362_v39, 16  ;;  %v4363_v44 = vand.u32 65535, %v4362_v39  ;;  %4866 = vmatpush1.bf16.msra.mxu0 %v10618_v10  ;;  %v10669_v39 = vld [vmem:[%s11277_s5 + $0x4c] ss:$16 sps:$4 sm:$0xff]  }
0x191e   :  { %4867 = vmatprep.subr.bf16.mxu0 %v10638_v8  ;;  %11457 = vst [vmem:[#allocation33_spill] sm:$0xff] %v10669_v39  ;;  %4910 = vmatprep.subr.bf16.mxu1 %v10669_v39  ;;  %v10711_v39 = vld [vmem:[%s11277_s5 + $0x84] ss:$16 sps:$4 sm:$0xff]  }
0x191f   :  { %v4366_v4 = vcvt.s32.f32 %v4364_v19  ;;  %v4365_v11 = vcvt.s32.f32 %v4363_v44  ;;  %v10675_v19 = vld [vmem:[%s11277_s5 + $0x40] ss:$16 sps:$4 sm:$0xff]   ;;  %v10687_v44 = vld [vmem:[%s11277_s5 + $0x64] ss:$16 sps:$4 sm:$0xff]  }
0x1921   :  { %4367 = vmin.xlane.f32.xlu0 %v4366_v4  ;;  %4868 = vmatpush1.bf16.msra.mxu0 %v10651_v1 }
0x1922   :  { %4869 = vmatprep.subr.bf16.mxu0 %v10663_v59 }
0x1925   :  { %4870 = vmatpush1.bf16.msra.mxu0 %v10675_v19 }
0x1926   :  { %4871 = vmatprep.subr.bf16.mxu0 %v10687_v44 }
0x19ae   :  { %v10612_v47 = vpop.xlane.xlu0 %4367 }
0x19af   :  { %vm4369_vm4 = vcmp.eq.f32.partialorder %v4366_v4, %v10612_v47  ;;  %v10682_v4 = vld [vmem:[%s11277_s5 + $0x48] ss:$16 sps:$4 sm:$0xff]  }
0x19b0   :  { %v4370_v49 = vsel %vm4369_vm4, %v4365_v11, inf  ;;  %11458 = vst [vmem:[#allocation15_spill] sm:$0xff] %v10682_v4  ;;  %v10693_v11 = vld [vmem:[%s11277_s5 + $0x6c] ss:$16 sps:$4 sm:$0xff]   ;;  %4911 = vmatpush1.bf16.msra.mxu1 %v10682_v4  ;;  %v10723_v4 = vld [vmem:[%s11277_s5 + $0x80] ss:$16 sps:$4 sm:$0xff]  }
0x19b1   :  { %4371 = vmin.xlane.f32.xlu0 %v4370_v49  ;;  %11459 = vst [vmem:[#allocation17_spill] sm:$0xff] %v10693_v11  ;;  %v10699_v49 = vld [vmem:[%s11277_s5 + $0x60] ss:$16 sps:$4 sm:$0xff]   ;;  %4912 = vmatprep.subr.bf16.mxu1 %v10693_v11  ;;  %v10730_v11 = vld [vmem:[%s11277_s5 + $0x88] ss:$16 sps:$4 sm:$0xff]  }
0x19b2   :  { %4872 = vmatpush1.bf16.msra.mxu0 %v10699_v49  ;;  %11462 = vst [vmem:[#allocation8_spill] sm:$0xff] %v10730_v11 }
0x19b3   :  { %4873 = vmatprep.subr.bf16.mxu0 %v10711_v39 }
0x19b4   :  { %4913 = vmatpush1.bf16.msra.mxu1 %v10706_v33  ;;  %v10747_v33 = vld [vmem:[%s11277_s5 + $0xa0] ss:$16 sps:$4 sm:$0xff]  }
0x19b5   :  { %4914 = vmatprep.subr.bf16.mxu1 %v10717_v16  ;;  %11464 = vst [vmem:[#allocation21_spill] sm:$0xff] %v10747_v33  ;;  %v10754_v16 = vld [vmem:[%s11277_s5 + $0xa8] ss:$16 sps:$4 sm:$0xff]  }
0x19b6   :  { %4874 = vmatpush1.bf16.msra.mxu0 %v10723_v4  ;;  %11465 = vst [vmem:[#allocation22_spill] sm:$0xff] %v10754_v16 }
0x19b7   :  { %4875 = vmatprep.subr.bf16.mxu0 %v10735_v60 }
0x19b8   :  { %4915 = vmatpush1.bf16.msra.mxu1 %v10730_v11  ;;  %v10771_v11 = vld [vmem:[%s11277_s5 + $0xc0] ss:$16 sps:$4 sm:$0xff]  }
0x19b9   :  { %4916 = vmatprep.subr.bf16.mxu1 %v10741_v14  ;;  %11468 = vst [vmem:[#allocation26_spill] sm:$0xff] %v10771_v11  ;;  %v10778_v14 = vld [vmem:[%s11277_s5 + $0xc8] ss:$16 sps:$4 sm:$0xff]  }
0x19ba   :  { %4876 = vmatpush1.bf16.msra.mxu0 %v10747_v33  ;;  %11469 = vst [vmem:[#allocation28_spill] sm:$0xff] %v10778_v14  ;;  %v4381_v33 = vstv %s4380_s12 }
0x19bb   :  { %4877 = vmatprep.subr.bf16.mxu0 %v10759_v57  ;;  %vm4382_vm5 = vcmp.eq.s32.totalorder %v4381_v33, 1 }
0x19bc   :  { %4917 = vmatpush1.bf16.msra.mxu1 %v10754_v16  ;;  %v10795_v16 = vld [vmem:[%s11277_s5 + $0xe0] ss:$16 sps:$4 sm:$0xff]  }
0x19bd   :  { %4918 = vmatprep.subr.bf16.mxu1 %v10765_v13  ;;  %11472 = vst [vmem:[#allocation34_spill] sm:$0xff] %v10795_v16  ;;  %v10802_v13 = vld [vmem:[%s11277_s5 + $0xe8] ss:$16 sps:$4 sm:$0xff]  }
0x19be   :  { %4878 = vmatpush1.bf16.msra.mxu0 %v10771_v11  ;;  %11473 = vst [vmem:[#allocation9_spill] sm:$0xff] %v10802_v13 }
0x19bf   :  { %4879 = vmatprep.subr.bf16.mxu0 %v10783_v48 }
0x19c0   :  { %4919 = vmatpush1.bf16.msra.mxu1 %v10778_v14  ;;  %v4374_v14 = vcvt.f32.s32 %v10612_v47 }
0x19c1   :  { %4920 = vmatprep.subr.bf16.mxu1 %v10789_v50  ;;  %v4379_v50 = vld [vmem:[%s11273_s1 + $0x4] sm:$0x1] }
0x19c2   :  { %4880 = vmatpush1.bf16.msra.mxu0 %v10795_v16  ;;  %v4375_v11 = vshll.u32 %v4374_v14, 16 }
0x19c3   :  { %7354 = vmatprep.subr.bf16.mxu0 %v10319_v22 }
0x19c4   :  { %4921 = vmatpush1.bf16.msra.mxu1 %v10802_v13 }
0x19c5   :  { %5346 = vmatprep.subr.bf16.mxu1 %v10365_v61 }
0x1a3e   :  { %v4372_v48 = vpop.xlane.xlu0 %4371 }
0x1a3f   :  { %v4373_v57 = vcvt.f32.s32 %v4372_v48 }
0x1a41   :  { %v4376_v56 = vadd.s32 %v4375_v11, %v4373_v57 }
0x1a43   :  { %v4386_v13 = vrot.slane %v4376_v56, %v9756_v46 }
0x1a45   :  { %v4387_v16 = vsel %vm4382_vm5, %v4379_v50, %v4386_v13 }
0x1a46   :  { %v4391_v61 = vrot.slane %v4387_v16, %v11392_v20 }
0x1a48   :  { %4393 = vbcast.lane.b32.xlu0 %v4391_v61, 256 }
0x1aba   :  { %v4394_v55 = vpop.permute.xlu0 %4393 }
0x1abb   :  { %vm4395_vm6 = vcmp.eq.s32.totalorder %v11391_v18, %v4394_v55 }
0x1abc   :  { %vm7034_vm7 = vmpackc.low %vm4395_vm6, %vm4395_vm6 }
0x1abd   :  { %7035 = vmatmul.mubr.msk.bf16.vlgmr.msra.gmra.mrb[84].mxu0 %vm7034_vm7, %v11393_v34  ;;  %7037 = vmatmul.mubr.msk.bf16.vlgmr.msra.gmra.mrb[84].mxu1 %vm7034_vm7, %v11393_v34 }
0x1abe   :  { %5347 = vmatpush1.bf16.msra.mxu1 %v10370_v0  ;;  %7370 = vmatprep.mubr.msk.bf16.mxu0 %vm8282_vm2, %v10319_v22  ;;  %v7790_v0 = vld [vmem:[%s11280_s8] sm:$0xff]  }
0x1abf   :  { %5348 = vmatprep.subr.bf16.mxu1 %v10381_v9  ;;  %5378 = vmatprep.mubr.bf16.mxu1 %v11375_v2  ;;  %v7791_v9 = vld [vmem:[%s11280_s8 + $0x8] sm:$0xff]  }
0x1ac0   :  { %7355 = vmatpush3.bf16.msra.mxu0 %v7790_v0 }
0x1ac1   :  { %7356 = vmatprep.subr.bf16.mxu0 %v10319_v22 }
0x1ac2   :  { %5349 = vmatpush1.bf16.msra.mxu1 %v10386_v24  ;;  %v7792_v24 = vld [vmem:[%s11280_s8 + $0x10] sm:$0xff]  }
0x1ac3   :  { %5350 = vmatprep.subr.bf16.mxu1 %v10397_v35  ;;  %v7793_v35 = vld [vmem:[%s11280_s8 + $0x18] sm:$0xff]  }
0x1ac4   :  { %7357 = vmatpush3.bf16.msra.mxu0 %v7791_v9 }
0x1ac5   :  { %7358 = vmatprep.subr.bf16.mxu0 %v10319_v22 }
0x1ac6   :  { %5351 = vmatpush1.bf16.msra.mxu1 %v10402_v43  ;;  %v7794_v43 = vld [vmem:[%s11280_s8 + $0x20] sm:$0xff]  }
0x1ac7   :  { %5352 = vmatprep.subr.bf16.mxu1 %v10413_v27  ;;  %v7795_v27 = vld [vmem:[%s11280_s8 + $0x28] sm:$0xff]  }
0x1ac8   :  { %7359 = vmatpush3.bf16.msra.mxu0 %v7792_v24 }
0x1ac9   :  { %7360 = vmatprep.subr.bf16.mxu0 %v10319_v22 }
0x1aca   :  { %5353 = vmatpush1.bf16.msra.mxu1 %v10418_v45  ;;  %v7796_v45 = vld [vmem:[%s11280_s8 + $0x30] sm:$0xff]  }
0x1acb   :  { %5354 = vmatprep.subr.bf16.mxu1 %v10429_v21  ;;  %v7797_v21 = vld [vmem:[%s11280_s8 + $0x38] sm:$0xff]  }
0x1acc   :  { %7361 = vmatpush3.bf16.msra.mxu0 %v7793_v35 }
0x1acd   :  { %7362 = vmatprep.subr.bf16.mxu0 %v10319_v22 }
0x1ace   :  { %5355 = vmatpush1.bf16.msra.mxu1 %v10434_v41 }
0x1acf   :  { %5356 = vmatprep.subr.bf16.mxu1 %v10450_v3 }
0x1ad0   :  { %7363 = vmatpush3.bf16.msra.mxu0 %v7794_v43 }
0x1ad1   :  { %7364 = vmatprep.subr.bf16.mxu0 %v10319_v22 }
0x1ad2   :  { %5357 = vmatpush1.bf16.msra.mxu1 %v10445_v15 }
0x1ad3   :  { %5358 = vmatprep.subr.bf16.mxu1 %v10455_v51 }
0x1ad4   :  { %7365 = vmatpush3.bf16.msra.mxu0 %v7795_v27 }
0x1ad5   :  { %7366 = vmatprep.subr.bf16.mxu0 %v10319_v22 }
0x1ad6   :  { %5359 = vmatpush1.bf16.msra.mxu1 %v10466_v31 }
0x1ad7   :  { %5360 = vmatprep.subr.bf16.mxu1 %v10472_v12 }
0x1ad8   :  { %7367 = vmatpush3.bf16.msra.mxu0 %v7796_v45 }
0x1ad9   :  { %7368 = vmatprep.subr.bf16.mxu0 %v10319_v22 }
0x1ada   :  { %5361 = vmatpush1.bf16.msra.mxu1 %v10482_v38 }
0x1adb   :  { %5588 = vmatprep.subr.bf16.mxu1 %v10623_v42 }
0x1adc   :  { %7369 = vmatpush3.bf16.msra.mxu0 %v7797_v21 }
0x1add   :  { %5387 = vmatprep.subr.bf16.mxu0 %v10487_v32 }
0x1b90   :  { %v4899_v41 = vpop.f32.mrb[84].mxu0  ;;  %v4940_v15 = vpop.f32.mrb[84].mxu1 }
0x1b91   :  { %v4900_v3 = vadd.f32 %v4899_v41, %v10597_v58  ;;  %v4941_v51 = vadd.f32 %v4940_v15, %v10607_v25  ;;  %v4901_v31 = vpop.f32.mrb[85].mxu0  ;;  %v4942_v12 = vpop.f32.mrb[85].mxu1 }
0x1b92   :  { %v4902_v38 = vadd.f32 %v4901_v31, %v10605_v37  ;;  %v4943_v55 = vadd.f32 %v4942_v12, %v10609_v53  ;;  %v4903_v56 = vpop.f32.mrb[86].mxu0  ;;  %v4944_v50 = vpop.f32.mrb[86].mxu1  ;;  %v11497_v31 = vld [vmem:[#allocation28_spill] sm:$0xff] }
0x1b93   :  { %v4947_v48 = vadd.f32 %v4900_v3, %v9667_v26  ;;  %v4904_v13 = vpop.f32.mrb[87].mxu0  ;;  %v4945_v33 = vpop.f32.mrb[87].mxu1  ;;  %v4949_v58 = vadd.f32 %v4941_v51, %v9677_v17  ;;  %v11495_v3 = vld [vmem:[#allocation22_spill] sm:$0xff]  ;;  %v11496_v51 = vld [vmem:[#allocation24_spill] sm:$0xff]  ;;  %v11500_v50 = vld [vmem:[#allocation13_spill] sm:$0xff] }
0x1b94   :  { %v4948_v32 = vadd.f32 %v4902_v38, %v9671_v62  ;;  %v4950_v25 = vadd.f32 %v4943_v55, %v9681_v7  ;;  %v11498_v12 = vld [vmem:[#allocation32_spill] sm:$0xff]  ;;  %v11499_v38 = vld [vmem:[#allocation9_spill] sm:$0xff] }
0x1b95   :  { %v7038_v47 = vmul.f32 -1.442695, %v4947_v48  ;;  %v7040_v14 = vmul.f32 -1.442695, %v4949_v58 }
0x1b96   :  { %v7039_v42 = vmul.f32 -1.442695, %v4948_v32 }
0x1b97   :  { %8134 = vpow2.f32 %v7038_v47 }
0x1b98   :  { %8136 = vpow2.f32 %v7039_v42 }
0x1b99   :  { %8138 = vtanh.f32 %v4950_v25 }
0x1b9a   :  { %8140 = vpow2.f32 %v7040_v14 }
0x1ba1   :  { %v8135_v37 = vpop.eup %8134 }
0x1ba2   :  { %v4960_v57 = vadd.f32 1.0, %v8135_v37  ;;  %v8137_v53 = vpop.eup %8136 }
0x1ba3   :  { %v4961_v16 = vadd.f32 1.0, %v8137_v53  ;;  %v8139_v11 = vpop.eup %8138 }
0x1ba4   :  { %8142 = vrcp.f32 %v4960_v57  ;;  %v8141_v61 = vpop.eup %8140 }
0x1ba5   :  { %8144 = vrcp.f32 %v4961_v16  ;;  %v4962_v35 = vadd.f32 1.0, %v8141_v61 }
0x1ba7   :  { %8146 = vrcp.f32 %v4962_v35 }
0x1bae   :  { %v8143_v0 = vpop.eup %8142 }
0x1baf   :  { %v4971_v9 = vmul.f32 %v8143_v0, %v8139_v11  ;;  %v8145_v24 = vpop.eup %8144 }
0x1bb0   :  { %v4970_v43 = vmul.f32 %v8145_v24, %v10501_v36  ;;  %v11474_v36 = vld [vmem:[#allocation10_spill] sm:$0xff] }
0x1bb1   :  { %v8147_v45 = vpop.eup %8146 }
0x1bb2   :  { %v10878_v27 = vadd.f32 %v4971_v9, %v4970_v43 }
0x1bb4   :  { %8148 = vtanh.f32 %v10878_v27 }
0x1bbe   :  { %v8149_v21 = vpop.eup %8148 }
0x1bbf   :  { %v4974_v41 = vmul.f32 %v8149_v21, %v8147_v45 }
0x1bc1   :  { %v4975_v15 = vpack.c.bf16 %v4974_v41, %v4974_v41 }
0x1bc3   :  { %7371 = vmatmul.mubr.bf16.vlgmr.msra.gmra.mrb[88].mxu0 %v4975_v15  ;;  %5379 = vmatmul.mubr.bf16.vlgmr.msra.gmra.mrb[88].mxu1 %v4975_v15 }
0x1bc4   :  { %5388 = vmatpush1.bf16.msra.mxu0 %v10507_v54  ;;  %5419 = vmatprep.mubr.bf16.mxu0 %v11375_v2  ;;  %v11475_v54 = vld [vmem:[#allocation11_spill] sm:$0xff] }
0x1bc5   :  { %5389 = vmatprep.subr.bf16.mxu0 %v10512_v63  ;;  %5589 = vmatpush1.bf16.msra.mxu1 %v10618_v10  ;;  %v11476_v63 = vld [vmem:[#allocation21_spill] sm:$0xff] }
0x1bc6   :  { %5590 = vmatprep.subr.bf16.mxu1 %v10638_v8  ;;  %5620 = vmatprep.mubr.bf16.mxu1 %v11375_v2  ;;  %v11485_v10 = vld [vmem:[#allocation29_spill] sm:$0xff]  ;;  %v11486_v8 = vld [vmem:[#allocation14_spill] sm:$0xff] }
0x1bc8   :  { %5390 = vmatpush1.bf16.msra.mxu0 %v10518_v30  ;;  %v11477_v30 = vld [vmem:[#allocation23_spill] sm:$0xff] }
0x1bc9   :  { %5391 = vmatprep.subr.bf16.mxu0 %v10525_v5  ;;  %5591 = vmatpush1.bf16.msra.mxu1 %v10651_v1  ;;  %v11478_v5 = vld [vmem:[#allocation25_spill] sm:$0xff] }
0x1bca   :  { %5592 = vmatprep.subr.bf16.mxu1 %v10663_v59  ;;  %v11488_v1 = vld [vmem:[#allocation33_spill] sm:$0xff]  ;;  %v11489_v59 = vld [vmem:[#allocation15_spill] sm:$0xff] }
0x1bcc   :  { %5392 = vmatpush1.bf16.msra.mxu0 %v10532_v6  ;;  %v11479_v6 = vld [vmem:[#allocation27_spill] sm:$0xff] }
0x1bcd   :  { %5393 = vmatprep.subr.bf16.mxu0 %v10538_v52  ;;  %5593 = vmatpush1.bf16.msra.mxu1 %v10675_v19  ;;  %v11480_v52 = vld [vmem:[#allocation26_spill] sm:$0xff]  ;;  %v11491_v19 = vld [vmem:[#allocation19_spill] sm:$0xff] }
0x1bce   :  { %5594 = vmatprep.subr.bf16.mxu1 %v10687_v44  ;;  %v11493_v44 = vld [vmem:[#allocation8_spill] sm:$0xff] }
0x1bd0   :  { %5394 = vmatpush1.bf16.msra.mxu0 %v10544_v28  ;;  %v11481_v28 = vld [vmem:[#allocation30_spill] sm:$0xff] }
0x1bd1   :  { %5395 = vmatprep.subr.bf16.mxu0 %v10550_v40  ;;  %5595 = vmatpush1.bf16.msra.mxu1 %v10699_v49  ;;  %v11482_v40 = vld [vmem:[#allocation12_spill] sm:$0xff] }
0x1bd2   :  { %5596 = vmatprep.subr.bf16.mxu1 %v10711_v39  ;;  %v11490_v39 = vld [vmem:[#allocation17_spill] sm:$0xff]  ;;  %v11494_v49 = vld [vmem:[#allocation20_spill] sm:$0xff] }
0x1bd4   :  { %5396 = vmatpush1.bf16.msra.mxu0 %v10556_v23  ;;  %v11483_v23 = vld [vmem:[#allocation31_spill] sm:$0xff] }
0x1bd5   :  { %5397 = vmatprep.subr.bf16.mxu0 %v10562_v29  ;;  %5597 = vmatpush1.bf16.msra.mxu1 %v10723_v4  ;;  %v11484_v29 = vld [vmem:[#allocation34_spill] sm:$0xff] }
0x1bd6   :  { %5598 = vmatprep.subr.bf16.mxu1 %v10735_v60  ;;  %v11487_v60 = vld [vmem:[#allocation16_spill] sm:$0xff]  ;;  %v11492_v4 = vld [vmem:[#allocation18_spill] sm:$0xff] }
0x1bd8   :  { %5398 = vmatpush1.bf16.msra.mxu0 %v11474_v36 }
0x1bd9   :  { %5399 = vmatprep.subr.bf16.mxu0 %v11475_v54  ;;  %5599 = vmatpush1.bf16.msra.mxu1 %v11476_v63  ;;  %v5102_v54 = vld [vmem:[%s11273_s1 + $0x5] sm:$0x1] }
0x1bda   :  { %5600 = vmatprep.subr.bf16.mxu1 %v11477_v30 }
0x1bdc   :  { %5400 = vmatpush1.bf16.msra.mxu0 %v11478_v5 }
0x1bdd   :  { %5401 = vmatprep.subr.bf16.mxu0 %v11479_v6  ;;  %5601 = vmatpush1.bf16.msra.mxu1 %v11480_v52  ;;  %v7798_v52 = vld [vmem:[%s11280_s8] sm:$0xff]  }
0x1bde   :  { %5602 = vmatprep.subr.bf16.mxu1 %v11481_v28  ;;  %v7801_v28 = vld [vmem:[%s11278_s6 + $0x4] ss:$16 sps:$4 sm:$0xff]  }
0x1be0   :  { %5402 = vmatpush1.bf16.msra.mxu0 %v11482_v40  ;;  %v7799_v40 = vld [vmem:[%s11278_s6] ss:$16 sps:$4 sm:$0xff]  }
0x1be1   :  { %5629 = vmatprep.subr.bf16.mxu0 %v11483_v23  ;;  %5603 = vmatpush1.bf16.msra.mxu1 %v11484_v29  ;;  %v7802_v23 = vld [vmem:[%s11280_s8 + $0x8] sm:$0xff]   ;;  %v7805_v29 = vld [vmem:[%s11278_s6 + $0x24] ss:$16 sps:$4 sm:$0xff]  }
0x1be2   :  { %7374 = vmatprep.subr.bf16.mxu1 %v10319_v22 }
0x1be3   :  { %5420 = vmatmul.mubr.bf16.vlgmr.msra.gmra.mrb[92].mxu0 %v4975_v15  ;;  %v5104_v15 = vstv %s5103_s28 }
0x1be4   :  { %5630 = vmatpush1.bf16.msra.mxu0 %v11485_v10  ;;  %5661 = vmatprep.mubr.bf16.mxu0 %v11375_v2  ;;  %vm5105_vm10 = vcmp.eq.s32.totalorder %v5104_v15, 1  ;;  %v7803_v10 = vld [vmem:[%s11278_s6 + $0x20] ss:$16 sps:$4 sm:$0xff]  }
0x1be5   :  { %5631 = vmatprep.subr.bf16.mxu0 %v11486_v8  ;;  %v10971_v8 = vld [vmem:[#allocation5] sm:$0xff] }
0x1be8   :  { %5632 = vmatpush1.bf16.msra.mxu0 %v11487_v60  ;;  %v7809_v60 = vld [vmem:[%s11278_s6 + $0x44] ss:$16 sps:$4 sm:$0xff]  }
0x1be9   :  { %5633 = vmatprep.subr.bf16.mxu0 %v11488_v1  ;;  %v7807_v1 = vld [vmem:[%s11278_s6 + $0x40] ss:$16 sps:$4 sm:$0xff]  }
0x1bec   :  { %5634 = vmatpush1.bf16.msra.mxu0 %v11489_v59  ;;  %v7810_v59 = vld [vmem:[%s11280_s8 + $0x18] sm:$0xff]  }
0x1bed   :  { %5635 = vmatprep.subr.bf16.mxu0 %v11490_v39  ;;  %v7813_v39 = vld [vmem:[%s11278_s6 + $0x64] ss:$16 sps:$4 sm:$0xff]  }
0x1bf0   :  { %5636 = vmatpush1.bf16.msra.mxu0 %v11491_v19  ;;  %v7811_v19 = vld [vmem:[%s11278_s6 + $0x60] ss:$16 sps:$4 sm:$0xff]  }
0x1bf1   :  { %5637 = vmatprep.subr.bf16.mxu0 %v11492_v4  ;;  %v7814_v4 = vld [vmem:[%s11280_s8 + $0x20] sm:$0xff]  }
0x1bf4   :  { %5638 = vmatpush1.bf16.msra.mxu0 %v11493_v44  ;;  %v7817_v44 = vld [vmem:[%s11278_s6 + $0x84] ss:$16 sps:$4 sm:$0xff]  }
0x1bf5   :  { %5639 = vmatprep.subr.bf16.mxu0 %v11494_v49  ;;  %v7815_v49 = vld [vmem:[%s11278_s6 + $0x80] ss:$16 sps:$4 sm:$0xff]  }
0x1bf8   :  { %5640 = vmatpush1.bf16.msra.mxu0 %v11495_v3  ;;  %v7818_v3 = vld [vmem:[%s11280_s8 + $0x28] sm:$0xff]  }
0x1bf9   :  { %5641 = vmatprep.subr.bf16.mxu0 %v11496_v51  ;;  %v7819_v51 = vld [vmem:[%s11278_s6 + $0xa0] ss:$16 sps:$4 sm:$0xff]  }
0x1bfc   :  { %5642 = vmatpush1.bf16.msra.mxu0 %v11497_v31  ;;  %v7821_v31 = vld [vmem:[%s11278_s6 + $0xa4] ss:$16 sps:$4 sm:$0xff]  }
0x1bfd   :  { %5643 = vmatprep.subr.bf16.mxu0 %v11498_v12  ;;  %v7825_v12 = vld [vmem:[%s11278_s6 + $0xc4] ss:$16 sps:$4 sm:$0xff]  }
0x1c00   :  { %5644 = vmatpush1.bf16.msra.mxu0 %v11499_v38  ;;  %v7822_v38 = vld [vmem:[%s11280_s8 + $0x30] sm:$0xff]  }
0x1c01   :  { %6069 = vmatprep.subr.bf16.mxu0 %v7801_v28 }
0x1c96   :  { %v5074_v55 = vpop.f32.mrb[88].mxu0  ;;  %v10931_v56 = vpop.f32.mrb[88].mxu1 }
0x1c97   :  { %v5075_v48 = vadd.f32 %v11500_v50, %v5074_v55  ;;  %v7372_v13 = vpop.f32.mrb[89].mxu0  ;;  %v10934_v33 = vpop.f32.mrb[89].mxu1  ;;  %v7823_v55 = vld [vmem:[%s11278_s6 + $0xc0] ss:$16 sps:$4 sm:$0xff]  }
0x1c98   :  { %v5077_v32 = vpop.f32.mrb[90].mxu0  ;;  %v5384_v47 = vpop.f32.mrb[90].mxu1  ;;  %v7826_v13 = vld [vmem:[%s11280_s8 + $0x38] sm:$0xff]  }
0x1c99   :  { %5081 = vst [vmem:[#allocation5 + $0x28] sm:$0xff] %v5075_v48  ;;  %v5385_v42 = vpop.f32.mrb[91].mxu1  ;;  %5082 = vmax.xlane.f32.xlu1 %v5075_v48  ;;  %v7373_v58 = vpop.f32.mrb[91].mxu0  ;;  %v7827_v32 = vld [vmem:[%s11278_s6 + $0xe0] ss:$16 sps:$4 sm:$0xff]  }
0x1c9a   :  { %v7832_v47 = vld [vmem:[%s11278_s6 + $0xc] ss:$16 sps:$4 sm:$0xff]  }
0x1cb6   :  { %v10936_v25 = vpop.f32.mrb[92].mxu0 }
0x1cb7   :  { %v10938_v14 = vpop.f32.mrb[93].mxu0 }
0x1cb8   :  { %v5425_v37 = vpop.f32.mrb[94].mxu0 }
0x1cb9   :  { %v5426_v57 = vpop.f32.mrb[95].mxu0 }
0x1d26   :  { %v5083_v53 = vpop.xlane.xlu1 %5082 }
0x1d27   :  { %vm5084_vm8 = vcmp.eq.f32.partialorder %v5075_v48, %v5083_v53  ;;  %v7829_v48 = vld [vmem:[%s11278_s6 + $0xe4] ss:$16 sps:$4 sm:$0xff]  }
0x1d28   :  { %v5085_v16 = vsel %vm5084_vm8, %v11391_v18, 128 }
0x1d29   :  { %v5087_v11 = vshra.s32 %v5085_v16, 16  ;;  %v5086_v0 = vand.u32 65535, %v5085_v16 }
0x1d2b   :  { %v5089_v61 = vcvt.s32.f32 %v5087_v11  ;;  %v5088_v24 = vcvt.s32.f32 %v5086_v0 }
0x1d2d   :  { %5090 = vmin.xlane.f32.xlu0 %v5089_v61 }
0x1dba   :  { %v5091_v9 = vpop.xlane.xlu0 %5090 }
0x1dbb   :  { %vm5092_vm9 = vcmp.eq.f32.partialorder %v5089_v61, %v5091_v9  ;;  %v5097_v43 = vcvt.f32.s32 %v5091_v9 }
0x1dbc   :  { %v5093_v35 = vsel %vm5092_vm9, %v5088_v24, inf }
0x1dbd   :  { %5094 = vmin.xlane.f32.xlu1 %v5093_v35  ;;  %v5098_v21 = vshll.u32 %v5097_v43, 16 }
0x1e4a   :  { %v5095_v45 = vpop.xlane.xlu1 %5094 }
0x1e4b   :  { %v5096_v41 = vcvt.f32.s32 %v5095_v45 }
0x1e4d   :  { %v5099_v36 = vadd.s32 %v5098_v21, %v5096_v41 }
0x1e4f   :  { %v5109_v63 = vrot.slane %v5099_v36, %v9756_v46 }
0x1e51   :  { %v5110_v30 = vsel %vm5105_vm10, %v5102_v54, %v5109_v63 }
0x1e52   :  { %v5114_v5 = vrot.slane %v5110_v30, %v11392_v20 }
0x1e54   :  { %5116 = vbcast.lane.b32.xlu1 %v5114_v5, 256 }
0x1ec6   :  { %v5117_v6 = vpop.permute.xlu1 %5116 }
0x1ec7   :  { %vm5118_vm11 = vcmp.eq.s32.totalorder %v11391_v18, %v5117_v6 }
0x1ec8   :  { %vm7115_vm12 = vmpackc.low %vm5118_vm11, %vm5118_vm11 }
0x1ec9   :  { %7116 = vmatmul.mubr.msk.bf16.vlgmr.msra.gmra.mrb[92].mxu1 %vm7115_vm12, %v11393_v34  ;;  %7118 = vmatmul.mubr.msk.bf16.vlgmr.msra.gmra.mrb[96].mxu0 %vm7115_vm12, %v11393_v34 }
0x1eca   :  { %7390 = vmatprep.mubr.msk.bf16.mxu1 %vm8282_vm2, %v10319_v22  ;;  %6101 = vmatprep.mubr.bf16.mxu0 %v11375_v2 }
0x1ecb   :  { %7375 = vmatpush3.bf16.msra.mxu1 %v7798_v52  ;;  %6070 = vmatpush1.bf16.msra.mxu0 %v7799_v40 }
0x1ecc   :  { %7376 = vmatprep.subr.bf16.mxu1 %v10319_v22  ;;  %6071 = vmatprep.subr.bf16.mxu0 %v7805_v29  ;;  %v7806_v22 = vld [vmem:[%s11280_s8 + $0x10] sm:$0xff]  }
0x1ecf   :  { %7377 = vmatpush3.bf16.msra.mxu1 %v7802_v23  ;;  %6072 = vmatpush1.bf16.msra.mxu0 %v7803_v10 }
0x1ed0   :  { %7378 = vmatprep.subr.bf16.mxu1 %v10971_v8  ;;  %6073 = vmatprep.subr.bf16.mxu0 %v7809_v60  ;;  %v7830_v60 = vld [vmem:[%s11278_s6 + $0x8] ss:$16 sps:$4 sm:$0xff]  }
0x1ed3   :  { %7379 = vmatpush3.bf16.msra.mxu1 %v7806_v22  ;;  %6074 = vmatpush1.bf16.msra.mxu0 %v7807_v1 }
0x1ed4   :  { %7380 = vmatprep.subr.bf16.mxu1 %v10971_v8  ;;  %6075 = vmatprep.subr.bf16.mxu0 %v7813_v39  ;;  %v7838_v39 = vld [vmem:[%s11278_s6 + $0x4c] ss:$16 sps:$4 sm:$0xff]  }
0x1ed7   :  { %7381 = vmatpush3.bf16.msra.mxu1 %v7810_v59  ;;  %6076 = vmatpush1.bf16.msra.mxu0 %v7811_v19  ;;  %v7835_v59 = vld [vmem:[%s11278_s6 + $0x2c] ss:$16 sps:$4 sm:$0xff]   ;;  %v7836_v19 = vld [vmem:[%s11278_s6 + $0x48] ss:$16 sps:$4 sm:$0xff]  }
0x1ed8   :  { %7382 = vmatprep.subr.bf16.mxu1 %v10971_v8  ;;  %6077 = vmatprep.subr.bf16.mxu0 %v7817_v44  ;;  %v7839_v44 = vld [vmem:[%s11278_s6 + $0x68] ss:$16 sps:$4 sm:$0xff]  }
0x1edb   :  { %7383 = vmatpush3.bf16.msra.mxu1 %v7814_v4  ;;  %6078 = vmatpush1.bf16.msra.mxu0 %v7815_v49  ;;  %v7841_v4 = vld [vmem:[%s11278_s6 + $0x6c] ss:$16 sps:$4 sm:$0xff]  }
0x1edc   :  { %7384 = vmatprep.subr.bf16.mxu1 %v10971_v8  ;;  %6079 = vmatprep.subr.bf16.mxu0 %v7821_v31  ;;  %v7844_v49 = vld [vmem:[%s11278_s6 + $0x8c] ss:$16 sps:$4 sm:$0xff]   ;;  %v7845_v31 = vld [vmem:[%s11278_s6 + $0xa8] ss:$16 sps:$4 sm:$0xff]  }
0x1edf   :  { %7385 = vmatpush3.bf16.msra.mxu1 %v7818_v3  ;;  %6080 = vmatpush1.bf16.msra.mxu0 %v7819_v51  ;;  %v7842_v3 = vld [vmem:[%s11278_s6 + $0x88] ss:$16 sps:$4 sm:$0xff]   ;;  %v7847_v51 = vld [vmem:[%s11278_s6 + $0xac] ss:$16 sps:$4 sm:$0xff]  }
0x1ee0   :  { %7386 = vmatprep.subr.bf16.mxu1 %v10971_v8  ;;  %6081 = vmatprep.subr.bf16.mxu0 %v7825_v12  ;;  %v7850_v12 = vld [vmem:[%s11278_s6 + $0xcc] ss:$16 sps:$4 sm:$0xff]  }
0x1ee3   :  { %7387 = vmatpush3.bf16.msra.mxu1 %v7822_v38  ;;  %6082 = vmatpush1.bf16.msra.mxu0 %v7823_v55  ;;  %v7848_v38 = vld [vmem:[%s11278_s6 + $0xc8] ss:$16 sps:$4 sm:$0xff]   ;;  %v7853_v55 = vld [vmem:[%s11278_s6 + $0xec] ss:$16 sps:$4 sm:$0xff]  }
0x1ee4   :  { %7388 = vmatprep.subr.bf16.mxu1 %v10971_v8  ;;  %6083 = vmatprep.subr.bf16.mxu0 %v7829_v48  ;;  %v7851_v48 = vld [vmem:[%s11278_s6 + $0xe8] ss:$16 sps:$4 sm:$0xff]  }
0x1ee7   :  { %7389 = vmatpush3.bf16.msra.mxu1 %v7826_v13  ;;  %6084 = vmatpush1.bf16.msra.mxu0 %v7827_v32 }
0x1ee8   :  { %6110 = vmatprep.subr.bf16.mxu1 %v7832_v47 }
0x1f9c   :  { %v5622_v42 = vpop.f32.mrb[92].mxu1  ;;  %v5663_v58 = vpop.f32.mrb[96].mxu0 }
0x1f9d   :  { %v5623_v37 = vadd.f32 %v5622_v42, %v10931_v56  ;;  %v5664_v57 = vadd.f32 %v5663_v58, %v10936_v25  ;;  %v5624_v53 = vpop.f32.mrb[93].mxu1  ;;  %v5665_v16 = vpop.f32.mrb[97].mxu0 }
0x1f9e   :  { %v5625_v11 = vadd.f32 %v5624_v53, %v10934_v33  ;;  %v5666_v61 = vadd.f32 %v5665_v16, %v10938_v14  ;;  %v5626_v0 = vpop.f32.mrb[94].mxu1  ;;  %v5667_v9 = vpop.f32.mrb[98].mxu0 }
0x1f9f   :  { %v5670_v24 = vadd.f32 %v5623_v37, %v9667_v26  ;;  %v5627_v35 = vpop.f32.mrb[95].mxu1  ;;  %v5668_v43 = vpop.f32.mrb[99].mxu0  ;;  %v5672_v56 = vadd.f32 %v5664_v57, %v9677_v17 }
0x1fa0   :  { %v5671_v45 = vadd.f32 %v5625_v11, %v9671_v62  ;;  %v5673_v25 = vadd.f32 %v5666_v61, %v9681_v7 }
0x1fa1   :  { %v7119_v21 = vmul.f32 -1.442695, %v5670_v24  ;;  %v7121_v15 = vmul.f32 -1.442695, %v5672_v56  ;;  %v7854_v56 = vld [vmem:[%s11277_s5] ss:$16 sps:$4 sm:$0xff]  }
0x1fa2   :  { %v7120_v41 = vmul.f32 -1.442695, %v5671_v45 }
0x1fa3   :  { %8150 = vpow2.f32 %v7119_v21 }
0x1fa4   :  { %8152 = vpow2.f32 %v7120_v41 }
0x1fa5   :  { %8154 = vtanh.f32 %v5673_v25  ;;  %v7856_v25 = vld [vmem:[%s11277_s5 + $0x4] ss:$16 sps:$4 sm:$0xff]  }
0x1fa6   :  { %8156 = vpow2.f32 %v7121_v15  ;;  %v7857_v15 = vld [vmem:[%s11277_s5 + $0x8] ss:$16 sps:$4 sm:$0xff]   ;;  %6311 = vmatprep.subr.bf16.mxu0 %v7856_v25 }
0x1fad   :  { %v8151_v33 = vpop.eup %8150 }
0x1fae   :  { %v5683_v36 = vadd.f32 1.0, %v8151_v33  ;;  %v8153_v14 = vpop.eup %8152  ;;  %v7859_v33 = vld [vmem:[%s11277_s5 + $0xc] ss:$16 sps:$4 sm:$0xff]  }
0x1faf   :  { %v5684_v54 = vadd.f32 1.0, %v8153_v14  ;;  %v8155_v63 = vpop.eup %8154  ;;  %v7865_v14 = vld [vmem:[%s11277_s5 + $0x2c] ss:$16 sps:$4 sm:$0xff]  }
0x1fb0   :  { %8158 = vrcp.f32 %v5683_v36  ;;  %v8157_v30 = vpop.eup %8156  ;;  %v7862_v36 = vld [vmem:[%s11277_s5 + $0x24] ss:$16 sps:$4 sm:$0xff]  }
0x1fb1   :  { %8160 = vrcp.f32 %v5684_v54  ;;  %v5685_v28 = vadd.f32 1.0, %v8157_v30  ;;  %v7860_v54 = vld [vmem:[%s11277_s5 + $0x20] ss:$16 sps:$4 sm:$0xff]   ;;  %v7868_v30 = vld [vmem:[%s11277_s5 + $0x44] ss:$16 sps:$4 sm:$0xff]  }
0x1fb3   :  { %8162 = vrcp.f32 %v5685_v28  ;;  %v7874_v28 = vld [vmem:[%s11277_s5 + $0x64] ss:$16 sps:$4 sm:$0xff]  }
0x1fba   :  { %v8159_v5 = vpop.eup %8158 }
0x1fbb   :  { %v5694_v6 = vmul.f32 %v8159_v5, %v8155_v63  ;;  %v8161_v52 = vpop.eup %8160  ;;  %v7863_v63 = vld [vmem:[%s11277_s5 + $0x28] ss:$16 sps:$4 sm:$0xff]   ;;  %v7871_v5 = vld [vmem:[%s11277_s5 + $0x4c] ss:$16 sps:$4 sm:$0xff]  }
0x1fbc   :  { %v5693_v40 = vmul.f32 %v8161_v52, %v10878_v27  ;;  %v7833_v27 = vld [vmem:[%s11278_s6 + $0x28] ss:$16 sps:$4 sm:$0xff]  }
0x1fbd   :  { %v8163_v29 = vpop.eup %8162  ;;  %v7869_v52 = vld [vmem:[%s11277_s5 + $0x48] ss:$16 sps:$4 sm:$0xff]  }
0x1fbe   :  { %v11045_v23 = vadd.f32 %v5694_v6, %v5693_v40  ;;  %v7866_v6 = vld [vmem:[%s11277_s5 + $0x40] ss:$16 sps:$4 sm:$0xff]   ;;  %v7877_v40 = vld [vmem:[%s11277_s5 + $0x6c] ss:$16 sps:$4 sm:$0xff]  }
0x1fc0   :  { %8164 = vtanh.f32 %v11045_v23 }
0x1fca   :  { %v8165_v10 = vpop.eup %8164 }
0x1fcb   :  { %v5697_v22 = vmul.f32 %v8165_v10, %v8163_v29  ;;  %v7872_v29 = vld [vmem:[%s11277_s5 + $0x60] ss:$16 sps:$4 sm:$0xff]   ;;  %v7875_v10 = vld [vmem:[%s11277_s5 + $0x68] ss:$16 sps:$4 sm:$0xff]  }
0x1fcd   :  { %v5698_v1 = vpack.c.bf16 %v5697_v22, %v5697_v22  ;;  %v7880_v22 = vld [vmem:[%s11277_s5 + $0x84] ss:$16 sps:$4 sm:$0xff]  }
0x1fcf   :  { %7391 = vmatmul.mubr.bf16.vlgmr.msra.gmra.mrb[96].mxu1 %v5698_v1  ;;  %6102 = vmatmul.mubr.bf16.vlgmr.msra.gmra.mrb[100].mxu0 %v5698_v1 }
0x1fd0   :  { %6111 = vmatpush1.bf16.msra.mxu1 %v7830_v60  ;;  %6142 = vmatprep.mubr.bf16.mxu1 %v11375_v2  ;;  %v7883_v60 = vld [vmem:[%s11277_s5 + $0x8c] ss:$16 sps:$4 sm:$0xff]  }
0x1fd1   :  { %6112 = vmatprep.subr.bf16.mxu1 %v7835_v59  ;;  %6343 = vmatprep.mubr.bf16.mxu0 %v11375_v2  ;;  %v7881_v59 = vld [vmem:[%s11277_s5 + $0x88] ss:$16 sps:$4 sm:$0xff]  }
0x1fd2   :  { %6312 = vmatpush1.bf16.msra.mxu0 %v7854_v56 }
0x1fd3   :  { %6313 = vmatprep.subr.bf16.mxu0 %v7862_v36 }
0x1fd4   :  { %6113 = vmatpush1.bf16.msra.mxu1 %v7833_v27  ;;  %v7886_v27 = vld [vmem:[%s11277_s5 + $0xa4] ss:$16 sps:$4 sm:$0xff]  }
0x1fd5   :  { %6114 = vmatprep.subr.bf16.mxu1 %v7838_v39  ;;  %v7889_v39 = vld [vmem:[%s11277_s5 + $0xac] ss:$16 sps:$4 sm:$0xff]  }
0x1fd6   :  { %6314 = vmatpush1.bf16.msra.mxu0 %v7860_v54 }
0x1fd7   :  { %6315 = vmatprep.subr.bf16.mxu0 %v7868_v30 }
0x1fd8   :  { %6115 = vmatpush1.bf16.msra.mxu1 %v7836_v19  ;;  %v7884_v19 = vld [vmem:[%s11277_s5 + $0xa0] ss:$16 sps:$4 sm:$0xff]  }
0x1fd9   :  { %6116 = vmatprep.subr.bf16.mxu1 %v7841_v4  ;;  %v7887_v4 = vld [vmem:[%s11277_s5 + $0xa8] ss:$16 sps:$4 sm:$0xff]  }
0x1fda   :  { %6316 = vmatpush1.bf16.msra.mxu0 %v7866_v6 }
0x1fdb   :  { %6317 = vmatprep.subr.bf16.mxu0 %v7874_v28 }
0x1fdc   :  { %6117 = vmatpush1.bf16.msra.mxu1 %v7839_v44  ;;  %v7892_v44 = vld [vmem:[%s11277_s5 + $0xc4] ss:$16 sps:$4 sm:$0xff]  }
0x1fdd   :  { %6118 = vmatprep.subr.bf16.mxu1 %v7844_v49  ;;  %v7895_v49 = vld [vmem:[%s11277_s5 + $0xcc] ss:$16 sps:$4 sm:$0xff]  }
0x1fde   :  { %6318 = vmatpush1.bf16.msra.mxu0 %v7872_v29 }
0x1fdf   :  { %6319 = vmatprep.subr.bf16.mxu0 %v7880_v22 }
0x1fe0   :  { %6119 = vmatpush1.bf16.msra.mxu1 %v7842_v3  ;;  %v7890_v3 = vld [vmem:[%s11277_s5 + $0xc0] ss:$16 sps:$4 sm:$0xff]  }
0x1fe1   :  { %6120 = vmatprep.subr.bf16.mxu1 %v7847_v51  ;;  %v7893_v51 = vld [vmem:[%s11277_s5 + $0xc8] ss:$16 sps:$4 sm:$0xff]  }
0x1fe4   :  { %6121 = vmatpush1.bf16.msra.mxu1 %v7845_v31  ;;  %v7898_v31 = vld [vmem:[%s11277_s5 + $0xe4] ss:$16 sps:$4 sm:$0xff]  }
0x1fe5   :  { %6122 = vmatprep.subr.bf16.mxu1 %v7850_v12  ;;  %v7901_v12 = vld [vmem:[%s11277_s5 + $0xec] ss:$16 sps:$4 sm:$0xff]  }
0x1fe8   :  { %6123 = vmatpush1.bf16.msra.mxu1 %v7848_v38  ;;  %v7896_v38 = vld [vmem:[%s11277_s5 + $0xe0] ss:$16 sps:$4 sm:$0xff]  }
0x1fe9   :  { %6124 = vmatprep.subr.bf16.mxu1 %v7853_v55  ;;  %v7899_v55 = vld [vmem:[%s11277_s5 + $0xe8] ss:$16 sps:$4 sm:$0xff]  }
0x1fec   :  { %6125 = vmatpush1.bf16.msra.mxu1 %v7851_v48 }
0x1fed   :  { %6352 = vmatprep.subr.bf16.mxu1 %v7859_v33 }
0x1fef   :  { %6143 = vmatmul.mubr.bf16.vlgmr.msra.gmra.mrb[100].mxu1 %v5698_v1  ;;  %v7878_v1 = vld [vmem:[%s11277_s5 + $0x80] ss:$16 sps:$4 sm:$0xff]  }
0x1ff0   :  { %6384 = vmatprep.mubr.bf16.mxu1 %v11375_v2  ;;  %6353 = vmatpush1.bf16.msra.mxu1 %v7857_v15 }
0x1ff1   :  { %6354 = vmatprep.subr.bf16.mxu1 %v7865_v14  ;;  %6320 = vmatpush1.bf16.msra.mxu0 %v7878_v1 }
0x1ff2   :  { %6321 = vmatprep.subr.bf16.mxu0 %v7886_v27 }
0x1ff4   :  { %6355 = vmatpush1.bf16.msra.mxu1 %v7863_v63 }
0x1ff5   :  { %6356 = vmatprep.subr.bf16.mxu1 %v7871_v5  ;;  %6322 = vmatpush1.bf16.msra.mxu0 %v7884_v19 }
0x1ff6   :  { %6323 = vmatprep.subr.bf16.mxu0 %v7892_v44  ;;  %v8239_v44 = vld [vmem:[%s11281_s9] ss:$0 sm:$0xff] }
0x1ff8   :  { %6357 = vmatpush1.bf16.msra.mxu1 %v7869_v52 }
0x1ff9   :  { %6358 = vmatprep.subr.bf16.mxu1 %v7877_v40  ;;  %6324 = vmatpush1.bf16.msra.mxu0 %v7890_v3 }
0x1ffa   :  { %6325 = vmatprep.subr.bf16.mxu0 %v7898_v31 }
0x1ffc   :  { %6359 = vmatpush1.bf16.msra.mxu1 %v7875_v10 }
0x1ffd   :  { %6360 = vmatprep.subr.bf16.mxu1 %v7883_v60  ;;  %6326 = vmatpush1.bf16.msra.mxu0 %v7896_v38 }
0x1ffe   :  { %7394 = vmatprep.subr.bf16.mxu0 %v10971_v8 }
0x2000   :  { %6361 = vmatpush1.bf16.msra.mxu1 %v7881_v59 }
0x2001   :  { %6362 = vmatprep.subr.bf16.mxu1 %v7889_v39 }
0x2004   :  { %6363 = vmatpush1.bf16.msra.mxu1 %v7887_v4 }
0x2005   :  { %6364 = vmatprep.subr.bf16.mxu1 %v7895_v49 }
0x2008   :  { %6365 = vmatpush1.bf16.msra.mxu1 %v7893_v51 }
0x2009   :  { %6366 = vmatprep.subr.bf16.mxu1 %v7901_v12 }
0x200c   :  { %6367 = vmatpush1.bf16.msra.mxu1 %v7899_v55 }
0x20a2   :  { %v5797_v13 = vpop.f32.mrb[96].mxu1  ;;  %v11096_v32 = vpop.f32.mrb[100].mxu0 }
0x20a3   :  { %v5798_v47 = vadd.f32 %v11500_v50, %v5797_v13  ;;  %v7392_v42 = vpop.f32.mrb[97].mxu1  ;;  %v11099_v58 = vpop.f32.mrb[101].mxu0 }
0x20a4   :  { %v5800_v37 = vpop.f32.mrb[98].mxu1  ;;  %v6107_v57 = vpop.f32.mrb[102].mxu0 }
0x20a5   :  { %5804 = vst [vmem:[#allocation5 + $0x30] sm:$0xff] %v5798_v47  ;;  %v6108_v53 = vpop.f32.mrb[103].mxu0  ;;  %5805 = vmax.xlane.f32.xlu1 %v5798_v47  ;;  %v7393_v16 = vpop.f32.mrb[99].mxu1  ;;  %v5827_v37 = vstv %s5826_s4 }
0x20a6   :  { %v5825_v53 = vld [vmem:[%s11273_s1 + $0x6] sm:$0x1]  ;;  %vm5828_vm15 = vcmp.eq.s32.totalorder %v5827_v37, 1 }
0x20c2   :  { %v11101_v11 = vpop.f32.mrb[100].mxu1 }
0x20c3   :  { %v11103_v61 = vpop.f32.mrb[101].mxu1 }
0x20c4   :  { %v6148_v0 = vpop.f32.mrb[102].mxu1 }
0x20c5   :  { %v6149_v2 = vpop.f32.mrb[103].mxu1 }
0x2132   :  { %v5806_v9 = vpop.xlane.xlu1 %5805 }
0x2133   :  { %vm5807_vm13 = vcmp.eq.f32.partialorder %v5798_v47, %v5806_v9 }
0x2134   :  { %v5808_v24 = vsel %vm5807_vm13, %v11391_v18, 128 }
0x2135   :  { %v5810_v50 = vshra.s32 %v5808_v24, 16  ;;  %v5809_v43 = vand.u32 65535, %v5808_v24  ;;  %v7902_v24 = vld [vmem:[%s11280_s8] sm:$0xff]  }
0x2137   :  { %v5812_v35 = vcvt.s32.f32 %v5810_v50  ;;  %v5811_v21 = vcvt.s32.f32 %v5809_v43  ;;  %v7907_v50 = vld [vmem:[%s11280_s8 + $0x28] sm:$0xff]   ;;  %v7909_v43 = vld [vmem:[%s11280_s8 + $0x38] sm:$0xff]  }
0x2139   :  { %5813 = vmin.xlane.f32.xlu0 %v5812_v35 }
0x21c6   :  { %v11106_v45 = vpop.xlane.xlu0 %5813 }
0x21c7   :  { %vm5815_vm14 = vcmp.eq.f32.partialorder %v5812_v35, %v11106_v45  ;;  %v5820_v48 = vcvt.f32.s32 %v11106_v45  ;;  %v7908_v35 = vld [vmem:[%s11280_s8 + $0x30] sm:$0xff]  }
0x21c8   :  { %v5816_v41 = vsel %vm5815_vm14, %v5811_v21, inf }
0x21c9   :  { %5817 = vmin.xlane.f32.xlu0 %v5816_v41  ;;  %v5821_v47 = vshll.u32 %v5820_v48, 16 }
0x2256   :  { %v5818_v13 = vpop.xlane.xlu0 %5817 }
0x2257   :  { %v5819_v42 = vcvt.f32.s32 %v5818_v13 }
0x2259   :  { %v5822_v57 = vadd.s32 %v5821_v47, %v5819_v42 }
0x225b   :  { %v5832_v16 = vrot.slane %v5822_v57, %v9756_v46  ;;  %v7903_v46 = vld [vmem:[%s11280_s8 + $0x8] sm:$0xff]  }
0x225d   :  { %v5833_v0 = vsel %vm5828_vm15, %v5825_v53, %v5832_v16 }
0x225e   :  { %v5837_v2 = vrot.slane %v5833_v0, %v11392_v20  ;;  %v7905_v20 = vld [vmem:[%s11280_s8 + $0x18] sm:$0xff]  }
0x2260   :  { %5839 = vbcast.lane.b32.xlu0 %v5837_v2, 256 }
0x22d2   :  { %v5840_v9 = vpop.permute.xlu0 %5839 }
0x22d3   :  { %vm5841_vm0 = vcmp.eq.s32.totalorder %v11391_v18, %v5840_v9  ;;  %v7904_v18 = vld [vmem:[%s11280_s8 + $0x10] sm:$0xff]  }
0x22d4   :  { %vm7196_vm1 = vmpackc.low %vm5841_vm0, %vm5841_vm0 }
0x22d5   :  { %7197 = vmatmul.mubr.msk.bf16.vlgmr.msra.gmra.mrb[104].mxu0 %vm7196_vm1, %v11393_v34  ;;  %7199 = vmatmul.mubr.msk.bf16.vlgmr.msra.gmra.mrb[104].mxu1 %vm7196_vm1, %v11393_v34  ;;  %v7906_v34 = vld [vmem:[%s11280_s8 + $0x20] sm:$0xff]   ;;  %s8283_s8 = smov [#allocation5]  }
0x22d6   :  { %7410 = vmatprep.mubr.msk.bf16.mxu0 %vm8282_vm2, %v10971_v8  ;;  %7395 = vmatpush3.bf16.msra.mxu0 %v7902_v24  ;;  %s6533_s17 = sshll.u32 %s8283_s8, 4  ;;  %s6534_s17 = int_to_ptr.vmem [resolvable:$true] %s6533_s17 }
0x22d7   :  { %7396 = vmatprep.subr.bf16.mxu0 %v10971_v8  ;;  %s8252_s20 = scalar_lea.vmem %s6534_s17, 1024  ;;  %p8257_p12 = scmp.lt.s32.totalorder %s6534_s17, %s6534_s17 }
0x22d8   :  { %p8253_p11 = scmp.ne.s32.totalorder %s6534_s17, %s8252_s20  ;;  %p8258_p13 = scmp.lt.s32.totalorder %s8252_s20, %s8252_s20 }
0x22da   :  { %7397 = vmatpush3.bf16.msra.mxu0 %v7903_v46  ;;  %p8259_p0 = por %p8258_p13, %p8257_p12 }
0x22db   :  { %7398 = vmatprep.subr.bf16.mxu0 %v10971_v8 }
0x22dc   :  { %p8260_p1 = pnand %p8259_p0, %p8253_p11 }
0x22de   :  { %7399 = vmatpush3.bf16.msra.mxu0 %v7904_v18 }
0x22df   :  { %7400 = vmatprep.subr.bf16.mxu0 %v10971_v8 }
0x22e2   :  { %7401 = vmatpush3.bf16.msra.mxu0 %v7905_v20 }
0x22e3   :  { %7402 = vmatprep.subr.bf16.mxu0 %v10971_v8 }
0x22e6   :  { %7403 = vmatpush3.bf16.msra.mxu0 %v7906_v34 }
0x22e7   :  { %7404 = vmatprep.subr.bf16.mxu0 %v10971_v8 }
0x22ea   :  { %7405 = vmatpush3.bf16.msra.mxu0 %v7907_v50 }
0x22eb   :  { %7406 = vmatprep.subr.bf16.mxu0 %v10971_v8 }
0x22ee   :  { %7407 = vmatpush3.bf16.msra.mxu0 %v7908_v35 }
0x22ef   :  { %7408 = vmatprep.subr.bf16.mxu0 %v10971_v8 }
0x22f2   :  { %7409 = vmatpush3.bf16.msra.mxu0 %v7909_v43 }
0x23a8   :  { %v6345_v45 = vpop.f32.mrb[104].mxu0  ;;  %v6386_v21 = vpop.f32.mrb[104].mxu1 }
0x23a9   :  { %v6346_v41 = vadd.f32 %v6345_v45, %v11096_v32  ;;  %v6387_v56 = vadd.f32 %v6386_v21, %v11101_v11  ;;  %v6347_v25 = vpop.f32.mrb[105].mxu0  ;;  %v6388_v15 = vpop.f32.mrb[105].mxu1 }
0x23aa   :  { %v6348_v33 = vadd.f32 %v6347_v25, %v11099_v58  ;;  %v6389_v36 = vadd.f32 %v6388_v15, %v11103_v61  ;;  %v6349_v14 = vpop.f32.mrb[106].mxu0  ;;  %v6390_v54 = vpop.f32.mrb[106].mxu1 }
0x23ab   :  { %v6393_v63 = vadd.f32 %v6346_v41, %v9667_v26  ;;  %v6350_v30 = vpop.f32.mrb[107].mxu0  ;;  %v6391_v5 = vpop.f32.mrb[107].mxu1  ;;  %v6395_v32 = vadd.f32 %v6387_v56, %v9677_v17 }
0x23ac   :  { %v6394_v8 = vadd.f32 %v6348_v33, %v9671_v62  ;;  %v6396_v11 = vadd.f32 %v6389_v36, %v9681_v7 }
0x23ad   :  { %v7200_v6 = vmul.f32 -1.442695, %v6393_v63  ;;  %v7202_v28 = vmul.f32 -1.442695, %v6395_v32 }
0x23ae   :  { %v7201_v52 = vmul.f32 -1.442695, %v6394_v8 }
0x23af   :  { %8166 = vpow2.f32 %v7200_v6 }
0x23b0   :  { %8168 = vpow2.f32 %v7201_v52 }
0x23b1   :  { %8170 = vtanh.f32 %v6396_v11 }
0x23b2   :  { %8172 = vpow2.f32 %v7202_v28 }
0x23b9   :  { %v8167_v58 = vpop.eup %8166 }
0x23ba   :  { %v6406_v40 = vadd.f32 1.0, %v8167_v58  ;;  %v8169_v61 = vpop.eup %8168 }
0x23bb   :  { %v6407_v26 = vadd.f32 1.0, %v8169_v61  ;;  %v8171_v29 = vpop.eup %8170 }
0x23bc   :  { %8174 = vrcp.f32 %v6406_v40  ;;  %v8173_v10 = vpop.eup %8172 }
0x23bd   :  { %8176 = vrcp.f32 %v6407_v26  ;;  %v6408_v1 = vadd.f32 1.0, %v8173_v10 }
0x23bf   :  { %8178 = vrcp.f32 %v6408_v1 }
0x23c6   :  { %v8175_v62 = vpop.eup %8174 }
0x23c7   :  { %v6417_v22 = vmul.f32 %v8175_v62, %v8171_v29  ;;  %v8177_v60 = vpop.eup %8176 }
0x23c8   :  { %v6416_v59 = vmul.f32 %v8177_v60, %v11045_v23 }
0x23c9   :  { %v8179_v7 = vpop.eup %8178 }
0x23ca   :  { %v6418_v17 = vadd.f32 %v6417_v22, %v6416_v59 }
0x23cc   :  { %8180 = vtanh.f32 %v6418_v17 }
0x23d6   :  { %v8181_v27 = vpop.eup %8180 }
0x23d7   :  { %v6420_v39 = vmul.f32 %v8181_v27, %v8179_v7 }
0x23d9   :  { %v6421_v19 = vpack.c.bf16 %v6420_v39, %v6420_v39 }
0x23db   :  { %7411 = vmatmul.mubr.bf16.vlgmr.msra.gmra.mrb[108].mxu0 %v6421_v19 }
0x24ae   :  { %v6520_v4 = vpop.f32.mrb[108].mxu0 }
0x24af   :  { %v6521_v49 = vadd.f32 %v8239_v44, %v6520_v4  ;;  %v7412_v3 = vpop.f32.mrb[109].mxu0 }
0x24b0   :  { %v6523_v51 = vpop.f32.mrb[110].mxu0 }
0x24b1   :  { %6527 = vst [vmem:[#allocation5 + $0x38] sm:$0xff] %v6521_v49  ;;  %v7413_v23 = vpop.f32.mrb[111].mxu0 }
0x24b2   :  { %8263 = shalt.err (!%p8260_p1)
}
0x24b3   :  { %s8264_s3 = scalar_lea.hbm %s11282_s10, 1024 }
0x24b4   :  { %p8265_p2 = scmp.ne.s32.totalorder %s11282_s10, %s8264_s3  ;;  %p8268_p3 = scmp.lt.u32.totalorder %s8264_s3, %s11282_s10 }
0x24b6   :  { %p8270_p4 = pnand %p8268_p3, %p8265_p2 }
0x24b8   :  { %8273 = shalt.err (!%p8270_p4)
}
0x24b9   :  { %s8284_s24 = smov 128   ;;  %s8285_s25 = smov 8  }
0x24ba   :  { %6539 = dma.vmem_to_hbm [thread:$0]  %s6534_s17, 1024, %s11282_s10, [#allocation3], %s8284_s24, %s8284_s24, %s8285_s25  }
0x24bb   :  { %8276 = dma.done.wait [#allocation3], 1024  }
0x24bc   :  { %8277 = vsyncadd [#allocation3], 4294966272 }
0x24bd   :  { %6543 = vsyncpa [#allocation3], 1 }
0x24be   :  { %6544 = vsyncpa [#allocation4], 1 }

</bundles_post_ra>
